<compile_context>
chip_gen: v6e
topology: v6e:2x2x1
jax: 0.10.0
libtpu: 0.0.40
codegen_flags: <defaults>
</compile_context>

<pallas_src>
import jax
import jax.numpy as jnp
from jax.experimental import pallas as pl
from jax.experimental.pallas import tpu as pltpu


# ---------------------------------------------------------------------------
# Pallas forward
# ---------------------------------------------------------------------------
def dsampling_forward(x, params, *, eps=1e-5):
    """x: (N, C, H, W) f32.  params: dict of per-branch (w, b, gamma, beta, mean, var)."""
    N, C, H, W = x.shape
    assert C % 4 == 0, "Dsampling_Module requires in_ch % 4 == 0"
    # TODO(synk): odd H/W (MaxPool2d truncation) not handled; real U-Net sizes are even here.
    assert H % 2 == 0 and W % 2 == 0
    out_ch = C // 4
    Ho, Wo = H // 2, W // 2
    Hq, Wq = Ho + 2, Wo + 2  # phase-plane spatial dims (pad-2 image, stride-2 phases)

    # ---- fold eval-mode BatchNorm into each conv (per-out-channel scale) ----
    def fold(w, b, gamma, beta, mean, var):
        scale = (gamma / jnp.sqrt(var + eps)).astype(jnp.float32)
        wf = w.astype(jnp.float32) * scale.reshape((-1,) + (1,) * (w.ndim - 1))
        bf = (beta + (b - mean) * scale).astype(jnp.float32)
        return wf, bf

    w1f, b1f = fold(*params["pool_1"])   # (out_ch, C, 1, 1)
    w2f, b2f = fold(*params["pool_2"])   # (out_ch, C, 1, 1)
    w3f, b3f = fold(*params["pool_3"])   # (out_ch, C, 3, 3)
    w4f, b4f = fold(*params["pool_4"])   # (out_ch, C, 5, 5)

    pieces = [w1f.ravel(), b1f, w2f.ravel(), b2f, w3f.ravel(), b3f, w4f.ravel(), b4f]
    prm = jnp.concatenate(pieces).astype(jnp.float32)
    offs, acc = [], 0
    for p in pieces:
        offs.append(acc)
        acc += p.size
    off_w1, off_b1, off_w2, off_b2, off_w3, off_b3, off_w4, off_b4 = offs

    # ---- pad by 2 and split into the 4 stride-2 phases (space-to-depth) ----
    # x_ph[n, 2*a+b, c, i, j] = x_pad[n, c, 2*i + a, 2*j + b]
    xf = x.astype(jnp.float32)
    xp = jnp.pad(xf, ((0, 0), (0, 0), (2, 2), (2, 2)))
    xp = xp.reshape(N, C, Hq, 2, Wq, 2)
    x_ph = jnp.transpose(xp, (0, 3, 5, 1, 2, 4)).reshape(N, 4, C, Hq, Wq)

    # ---- kernel (one batch element per grid step; everything fused) ----
    def kernel(prm_ref, x_ref, o_ref):
        # Phase planes, shape (C, Hq, Wq); all later reads are static slices of these.
        P = [[x_ref[0, 2 * a + b] for b in range(2)] for a in range(2)]

        # Interior of the original image per phase -> the 4 members of each 2x2 pool window.
        core = [[P[a][b][:, 1:1 + Ho, 1:1 + Wo] for b in range(2)] for a in range(2)]
        mp = jnp.maximum(jnp.maximum(core[0][0], core[0][1]),
                         jnp.maximum(core[1][0], core[1][1]))            # MaxPool2d(2), (C,Ho,Wo)
        ap = 0.25 * (core[0][0] + core[0][1] + core[1][0] + core[1][1])  # AvgPool2d(2)

        def w(i):  # SMEM scalar read (folded weight / bias)
            return prm_ref[i]

        # TODO(synk): unrolled (o, c, tap) loops are fine for small in_ch; for large
        # channel counts this should switch to a tiled VMEM-weight formulation.
        for o in range(out_ch):
            # --- pool_1 / pool_2: 1x1 conv (+folded BN) on pooled maps, ReLU ---
            acc1 = w(off_b1 + o)
            acc2 = w(off_b2 + o)
            for c in range(C):
                acc1 = acc1 + w(off_w1 + o * C + c) * mp[c]
                acc2 = acc2 + w(off_w2 + o * C + c) * ap[c]
            o_ref[0, o] = (mp[o] + jnp.maximum(acc1, 0.0)).astype(o_ref.dtype)
            o_ref[0, out_ch + o] = (mp[out_ch + o] + jnp.maximum(acc2, 0.0)).astype(o_ref.dtype)

            # --- pool_3: 3x3 stride-2 pad-1 conv (+folded BN), ReLU ---
            acc3 = w(off_b3 + o)
            for c in range(C):
                for kh in range(3):
                    a, rh = (kh + 1) % 2, (kh + 1) // 2
                    for kw in range(3):
                        b_, rw = (kw + 1) % 2, (kw + 1) // 2
                        wt = w(off_w3 + ((o * C + c) * 3 + kh) * 3 + kw)
                        acc3 = acc3 + wt * P[a][b_][c, rh:rh + Ho, rw:rw + Wo]
            o_ref[0, 2 * out_ch + o] = (mp[2 * out_ch + o]
                                        + jnp.maximum(acc3, 0.0)).astype(o_ref.dtype)

            # --- pool_4: 5x5 stride-2 pad-2 conv (+folded BN), ReLU ---
            acc4 = w(off_b4 + o)
            for c in range(C):
                for kh in range(5):
                    a, rh = kh % 2, kh // 2
                    for kw in range(5):
                        b_, rw = kw % 2, kw // 2
                        wt = w(off_w4 + ((o * C + c) * 5 + kh) * 5 + kw)
                        acc4 = acc4 + wt * P[a][b_][c, rh:rh + Ho, rw:rw + Wo]
            o_ref[0, 3 * out_ch + o] = (mp[3 * out_ch + o]
                                        + jnp.maximum(acc4, 0.0)).astype(o_ref.dtype)

    out = pl.pallas_call(
        kernel,
        out_shape=jax.ShapeDtypeStruct((N, C, Ho, Wo), jnp.float32),
        grid=(N,),
        in_specs=[
            pl.BlockSpec(memory_space=pltpu.MemorySpace.SMEM),           # folded params
            pl.BlockSpec((1, 4, C, Hq, Wq), lambda n: (n, 0, 0, 0, 0)),  # phase-split x
        ],
        out_specs=pl.BlockSpec((1, C, Ho, Wo), lambda n: (n, 0, 0, 0)),
        compiler_params=pltpu.CompilerParams(dimension_semantics=("parallel",)),
    )(prm, x_ph)
    return out


# ---------------------------------------------------------------------------
# Pure-JAX reference (independent path: reduce_window + conv_general_dilated)
# ---------------------------------------------------------------------------
def _maxpool2(v):
    return jax.lax.reduce_window(v, -jnp.inf, jax.lax.max, (1, 1, 2, 2), (1, 1, 2, 2), "VALID")


def _avgpool2(v):
    s = jax.lax.reduce_window(v, 0.0, jax.lax.add, (1, 1, 2, 2), (1, 1, 2, 2), "VALID")
    return s * 0.25


def _conv(v, w, stride, pad):
    return jax.lax.conv_general_dilated(
        v, w, (stride, stride), [(pad, pad), (pad, pad)],
        dimension_numbers=("NCHW", "OIHW", "NCHW"))


def _bn_relu(y, gamma, beta, mean, var, eps):
    scale = (gamma / jnp.sqrt(var + eps))[None, :, None, None]
    y = (y - mean[None, :, None, None]) * scale + beta[None, :, None, None]
    return jnp.maximum(y, 0.0)


def dsampling_reference(x, params, eps=1e-5):
    def branch(v, p, stride, pad):
        w, b, g, be, m, va = p
        return _bn_relu(_conv(v, w, stride, pad) + b[None, :, None, None], g, be, m, va, eps)

    y1 = branch(_maxpool2(x), params["pool_1"], 1, 0)
    y2 = branch(_avgpool2(x), params["pool_2"], 1, 0)
    y3 = branch(x, params["pool_3"], 2, 1)
    y4 = branch(x, params["pool_4"], 2, 2)
    return _maxpool2(x) + jnp.concatenate([y1, y2, y3, y4], axis=1)


# ---------------------------------------------------------------------------
if __name__ == "__main__":
    key = jax.random.PRNGKey(0)
    keys = jax.random.split(key, 8)

    N, C, H, W = 2, 4, 16, 16          # in_ch=4 -> out_ch=1, spatial 16 -> 8
    out_ch = C // 4
    x = jax.random.normal(keys[0], (N, C, H, W), dtype=jnp.float32)

    def mk_branch(kbase, ksize):
        kw, kb, kg, kbe, km, kv = jax.random.split(kbase, 6)
        w = 0.3 * jax.random.normal(kw, (out_ch, C, ksize, ksize), dtype=jnp.float32)
        b = 0.1 * jax.random.normal(kb, (out_ch,), dtype=jnp.float32)
        gamma = 0.5 + jax.random.uniform(kg, (out_ch,), dtype=jnp.float32)
        beta = 0.1 * jax.random.normal(kbe, (out_ch,), dtype=jnp.float32)
        mean = 0.1 * jax.random.normal(km, (out_ch,), dtype=jnp.float32)
        var = 0.5 + jax.random.uniform(kv, (out_ch,), dtype=jnp.float32)
        return (w, b, gamma, beta, mean, var)

    params = {
        "pool_1": mk_branch(keys[1], 1),
        "pool_2": mk_branch(keys[2], 1),
        "pool_3": mk_branch(keys[3], 3),
        "pool_4": mk_branch(keys[4], 5),
    }

    fwd = jax.jit(dsampling_forward)
    out = jax.block_until_ready(fwd(x, params))

    ref = dsampling_reference(x, params)
    assert out.shape == (N, C, H // 2, W // 2)
    err = float(jnp.max(jnp.abs(out - ref)))
    assert err < 1e-4, err

    print("KERNEL_OK")
</pallas_src>

<mosaic_0001>
module attributes {stable_mosaic.version = 11 : i64} {
  func.func @kernel(%arg0: i32, %arg1: memref<148xf32, #tpu.memory_space<smem>>, %arg2: memref<1x4x4x10x10xf32, #tpu.memory_space<vmem>>, %arg3: memref<1x4x8x8xf32, #tpu.memory_space<vmem>>) attributes {dimension_semantics = [#tpu.dimension_semantics<parallel>], iteration_bounds = array<i64: 2>, scalar_prefetch = 0 : i64, scratch_operands = 0 : i64, tpu.core_type = #tpu.core_type<tc>, window_params = [{transform_indices = @transform_0, window_bounds = array<i64: 148>}, {transform_indices = @transform_1, window_bounds = array<i64: 1, 4, 4, 10, 10>}, {transform_indices = @transform_2, window_bounds = array<i64: 1, 4, 8, 8>}]} {
    %c0 = arith.constant 0 : index
    %c0_0 = arith.constant 0 : index
    %c0_1 = arith.constant 0 : index
    %c0_2 = arith.constant 0 : index
    %c0_3 = arith.constant 0 : index
    %0 = vector.load %arg2[%c0, %c0_0, %c0_1, %c0_2, %c0_3] : memref<1x4x4x10x10xf32, #tpu.memory_space<vmem>>, vector<1x1x4x10x10xf32>
    %1 = vector.shape_cast %0 : vector<1x1x4x10x10xf32> to vector<4x10x10xf32>
    %c0_4 = arith.constant 0 : index
    %c1 = arith.constant 1 : index
    %c0_5 = arith.constant 0 : index
    %c0_6 = arith.constant 0 : index
    %c0_7 = arith.constant 0 : index
    %2 = vector.load %arg2[%c0_4, %c1, %c0_5, %c0_6, %c0_7] : memref<1x4x4x10x10xf32, #tpu.memory_space<vmem>>, vector<1x1x4x10x10xf32>
    %3 = vector.shape_cast %2 : vector<1x1x4x10x10xf32> to vector<4x10x10xf32>
    %c0_8 = arith.constant 0 : index
    %c2 = arith.constant 2 : index
    %c0_9 = arith.constant 0 : index
    %c0_10 = arith.constant 0 : index
    %c0_11 = arith.constant 0 : index
    %4 = vector.load %arg2[%c0_8, %c2, %c0_9, %c0_10, %c0_11] : memref<1x4x4x10x10xf32, #tpu.memory_space<vmem>>, vector<1x1x4x10x10xf32>
    %5 = vector.shape_cast %4 : vector<1x1x4x10x10xf32> to vector<4x10x10xf32>
    %c0_12 = arith.constant 0 : index
    %c3 = arith.constant 3 : index
    %c0_13 = arith.constant 0 : index
    %c0_14 = arith.constant 0 : index
    %c0_15 = arith.constant 0 : index
    %6 = vector.load %arg2[%c0_12, %c3, %c0_13, %c0_14, %c0_15] : memref<1x4x4x10x10xf32, #tpu.memory_space<vmem>>, vector<1x1x4x10x10xf32>
    %7 = vector.shape_cast %6 : vector<1x1x4x10x10xf32> to vector<4x10x10xf32>
    %8 = vector.extract_strided_slice %1 {offsets = [0, 1, 1], sizes = [4, 8, 8], strides = [1, 1, 1]} : vector<4x10x10xf32> to vector<4x8x8xf32>
    %9 = vector.extract_strided_slice %3 {offsets = [0, 1, 1], sizes = [4, 8, 8], strides = [1, 1, 1]} : vector<4x10x10xf32> to vector<4x8x8xf32>
    %10 = vector.extract_strided_slice %5 {offsets = [0, 1, 1], sizes = [4, 8, 8], strides = [1, 1, 1]} : vector<4x10x10xf32> to vector<4x8x8xf32>
    %11 = vector.extract_strided_slice %7 {offsets = [0, 1, 1], sizes = [4, 8, 8], strides = [1, 1, 1]} : vector<4x10x10xf32> to vector<4x8x8xf32>
    %12 = arith.maximumf %8, %9 : vector<4x8x8xf32>
    %13 = arith.maximumf %10, %11 : vector<4x8x8xf32>
    %14 = arith.maximumf %12, %13 : vector<4x8x8xf32>
    %15 = arith.addf %8, %9 : vector<4x8x8xf32>
    %16 = arith.addf %15, %10 : vector<4x8x8xf32>
    %17 = arith.addf %16, %11 : vector<4x8x8xf32>
    %cst = arith.constant 2.500000e-01 : f32
    %18 = vector.broadcast %cst : f32 to vector<4x8x8xf32>
    %19 = arith.mulf %18, %17 : vector<4x8x8xf32>
    %c4 = arith.constant 4 : index
    %20 = memref.load %arg1[%c4] : memref<148xf32, #tpu.memory_space<smem>>
    %c9 = arith.constant 9 : index
    %21 = memref.load %arg1[%c9] : memref<148xf32, #tpu.memory_space<smem>>
    %c0_16 = arith.constant 0 : index
    %22 = memref.load %arg1[%c0_16] : memref<148xf32, #tpu.memory_space<smem>>
    %23 = vector.extract_strided_slice %14 {offsets = [0, 0, 0], sizes = [1, 8, 8], strides = [1, 1, 1]} : vector<4x8x8xf32> to vector<1x8x8xf32>
    %24 = vector.shape_cast %23 : vector<1x8x8xf32> to vector<8x8xf32>
    %25 = vector.broadcast %22 : f32 to vector<8x8xf32>
    %26 = arith.mulf %25, %24 : vector<8x8xf32>
    %27 = vector.broadcast %20 : f32 to vector<8x8xf32>
    %28 = arith.addf %27, %26 : vector<8x8xf32>
    %c5 = arith.constant 5 : index
    %29 = memref.load %arg1[%c5] : memref<148xf32, #tpu.memory_space<smem>>
    %30 = vector.extract_strided_slice %19 {offsets = [0, 0, 0], sizes = [1, 8, 8], strides = [1, 1, 1]} : vector<4x8x8xf32> to vector<1x8x8xf32>
    %31 = vector.shape_cast %30 : vector<1x8x8xf32> to vector<8x8xf32>
    %32 = vector.broadcast %29 : f32 to vector<8x8xf32>
    %33 = arith.mulf %32, %31 : vector<8x8xf32>
    %34 = vector.broadcast %21 : f32 to vector<8x8xf32>
    %35 = arith.addf %34, %33 : vector<8x8xf32>
    %c1_17 = arith.constant 1 : index
    %36 = memref.load %arg1[%c1_17] : memref<148xf32, #tpu.memory_space<smem>>
    %37 = vector.extract_strided_slice %14 {offsets = [1, 0, 0], sizes = [1, 8, 8], strides = [1, 1, 1]} : vector<4x8x8xf32> to vector<1x8x8xf32>
    %38 = vector.shape_cast %37 : vector<1x8x8xf32> to vector<8x8xf32>
    %39 = vector.broadcast %36 : f32 to vector<8x8xf32>
    %40 = arith.mulf %39, %38 : vector<8x8xf32>
    %41 = arith.addf %28, %40 : vector<8x8xf32>
    %c6 = arith.constant 6 : index
    %42 = memref.load %arg1[%c6] : memref<148xf32, #tpu.memory_space<smem>>
    %43 = vector.extract_strided_slice %19 {offsets = [1, 0, 0], sizes = [1, 8, 8], strides = [1, 1, 1]} : vector<4x8x8xf32> to vector<1x8x8xf32>
    %44 = vector.shape_cast %43 : vector<1x8x8xf32> to vector<8x8xf32>
    %45 = vector.broadcast %42 : f32 to vector<8x8xf32>
    %46 = arith.mulf %45, %44 : vector<8x8xf32>
    %47 = arith.addf %35, %46 : vector<8x8xf32>
    %c2_18 = arith.constant 2 : index
    %48 = memref.load %arg1[%c2_18] : memref<148xf32, #tpu.memory_space<smem>>
    %49 = vector.extract_strided_slice %14 {offsets = [2, 0, 0], sizes = [1, 8, 8], strides = [1, 1, 1]} : vector<4x8x8xf32> to vector<1x8x8xf32>
    %50 = vector.shape_cast %49 : vector<1x8x8xf32> to vector<8x8xf32>
    %51 = vector.broadcast %48 : f32 to vector<8x8xf32>
    %52 = arith.mulf %51, %50 : vector<8x8xf32>
    %53 = arith.addf %41, %52 : vector<8x8xf32>
    %c7 = arith.constant 7 : index
    %54 = memref.load %arg1[%c7] : memref<148xf32, #tpu.memory_space<smem>>
    %55 = vector.extract_strided_slice %19 {offsets = [2, 0, 0], sizes = [1, 8, 8], strides = [1, 1, 1]} : vector<4x8x8xf32> to vector<1x8x8xf32>
    %56 = vector.shape_cast %55 : vector<1x8x8xf32> to vector<8x8xf32>
    %57 = vector.broadcast %54 : f32 to vector<8x8xf32>
    %58 = arith.mulf %57, %56 : vector<8x8xf32>
    %59 = arith.addf %47, %58 : vector<8x8xf32>
    %c3_19 = arith.constant 3 : index
    %60 = memref.load %arg1[%c3_19] : memref<148xf32, #tpu.memory_space<smem>>
    %61 = vector.extract_strided_slice %14 {offsets = [3, 0, 0], sizes = [1, 8, 8], strides = [1, 1, 1]} : vector<4x8x8xf32> to vector<1x8x8xf32>
    %62 = vector.shape_cast %61 : vector<1x8x8xf32> to vector<8x8xf32>
    %63 = vector.broadcast %60 : f32 to vector<8x8xf32>
    %64 = arith.mulf %63, %62 : vector<8x8xf32>
    %65 = arith.addf %53, %64 : vector<8x8xf32>
    %c8 = arith.constant 8 : index
    %66 = memref.load %arg1[%c8] : memref<148xf32, #tpu.memory_space<smem>>
    %67 = vector.extract_strided_slice %19 {offsets = [3, 0, 0], sizes = [1, 8, 8], strides = [1, 1, 1]} : vector<4x8x8xf32> to vector<1x8x8xf32>
    %68 = vector.shape_cast %67 : vector<1x8x8xf32> to vector<8x8xf32>
    %69 = vector.broadcast %66 : f32 to vector<8x8xf32>
    %70 = arith.mulf %69, %68 : vector<8x8xf32>
    %71 = arith.addf %59, %70 : vector<8x8xf32>
    %72 = vector.extract_strided_slice %14 {offsets = [0, 0, 0], sizes = [1, 8, 8], strides = [1, 1, 1]} : vector<4x8x8xf32> to vector<1x8x8xf32>
    %73 = vector.shape_cast %72 : vector<1x8x8xf32> to vector<8x8xf32>
    %cst_20 = arith.constant 0.000000e+00 : f32
    %74 = vector.broadcast %cst_20 : f32 to vector<8x8xf32>
    %75 = arith.maximumf %65, %74 : vector<8x8xf32>
    %76 = arith.addf %73, %75 : vector<8x8xf32>
    %c0_21 = arith.constant 0 : index
    %c0_22 = arith.constant 0 : index
    %c0_23 = arith.constant 0 : index
    %c0_24 = arith.constant 0 : index
    %77 = vector.load %arg3[%c0_21, %c0_22, %c0_23, %c0_24] : memref<1x4x8x8xf32, #tpu.memory_space<vmem>>, vector<1x1x8x8xf32>
    %78 = vector.shape_cast %77 : vector<1x1x8x8xf32> to vector<8x8xf32>
    %79 = vector.shape_cast %76 : vector<8x8xf32> to vector<1x1x8x8xf32>
    tpu.vector_store %arg3[%c0_21, %c0_22, %c0_23, %c0_24], %79 {strides = array<i32>} : memref<1x4x8x8xf32, #tpu.memory_space<vmem>>, vector<1x1x8x8xf32>,
    %80 = vector.extract_strided_slice %14 {offsets = [1, 0, 0], sizes = [1, 8, 8], strides = [1, 1, 1]} : vector<4x8x8xf32> to vector<1x8x8xf32>
    %81 = vector.shape_cast %80 : vector<1x8x8xf32> to vector<8x8xf32>
    %cst_25 = arith.constant 0.000000e+00 : f32
    %82 = vector.broadcast %cst_25 : f32 to vector<8x8xf32>
    %83 = arith.maximumf %71, %82 : vector<8x8xf32>
    %84 = arith.addf %81, %83 : vector<8x8xf32>
    %c0_26 = arith.constant 0 : index
    %c1_27 = arith.constant 1 : index
    %c0_28 = arith.constant 0 : index
    %c0_29 = arith.constant 0 : index
    %85 = vector.load %arg3[%c0_26, %c1_27, %c0_28, %c0_29] : memref<1x4x8x8xf32, #tpu.memory_space<vmem>>, vector<1x1x8x8xf32>
    %86 = vector.shape_cast %85 : vector<1x1x8x8xf32> to vector<8x8xf32>
    %87 = vector.shape_cast %84 : vector<8x8xf32> to vector<1x1x8x8xf32>
    tpu.vector_store %arg3[%c0_26, %c1_27, %c0_28, %c0_29], %87 {strides = array<i32>} : memref<1x4x8x8xf32, #tpu.memory_space<vmem>>, vector<1x1x8x8xf32>,
    %c46 = arith.constant 46 : index
    %88 = memref.load %arg1[%c46] : memref<148xf32, #tpu.memory_space<smem>>
    %c10 = arith.constant 10 : index
    %89 = memref.load %arg1[%c10] : memref<148xf32, #tpu.memory_space<smem>>
    %90 = vector.extract_strided_slice %7 {offsets = [0, 0, 0], sizes = [1, 8, 8], strides = [1, 1, 1]} : vector<4x10x10xf32> to vector<1x8x8xf32>
    %91 = vector.shape_cast %90 : vector<1x8x8xf32> to vector<8x8xf32>
    %92 = vector.broadcast %89 : f32 to vector<8x8xf32>
    %93 = arith.mulf %92, %91 : vector<8x8xf32>
    %94 = vector.broadcast %88 : f32 to vector<8x8xf32>
    %95 = arith.addf %94, %93 : vector<8x8xf32>
    %c11 = arith.constant 11 : index
    %96 = memref.load %arg1[%c11] : memref<148xf32, #tpu.memory_space<smem>>
    %97 = vector.extract_strided_slice %5 {offsets = [0, 0, 1], sizes = [1, 8, 8], strides = [1, 1, 1]} : vector<4x10x10xf32> to vector<1x8x8xf32>
    %98 = vector.shape_cast %97 : vector<1x8x8xf32> to vector<8x8xf32>
    %99 = vector.broadcast %96 : f32 to vector<8x8xf32>
    %100 = arith.mulf %99, %98 : vector<8x8xf32>
    %101 = arith.addf %95, %100 : vector<8x8xf32>
    %c12 = arith.constant 12 : index
    %102 = memref.load %arg1[%c12] : memref<148xf32, #tpu.memory_space<smem>>
    %103 = vector.extract_strided_slice %7 {offsets = [0, 0, 1], sizes = [1, 8, 8], strides = [1, 1, 1]} : vector<4x10x10xf32> to vector<1x8x8xf32>
    %104 = vector.shape_cast %103 : vector<1x8x8xf32> to vector<8x8xf32>
    %105 = vector.broadcast %102 : f32 to vector<8x8xf32>
    %106 = arith.mulf %105, %104 : vector<8x8xf32>
    %107 = arith.addf %101, %106 : vector<8x8xf32>
    %c13 = arith.constant 13 : index
    %108 = memref.load %arg1[%c13] : memref<148xf32, #tpu.memory_space<smem>>
    %109 = vector.extract_strided_slice %3 {offsets = [0, 1, 0], sizes = [1, 8, 8], strides = [1, 1, 1]} : vector<4x10x10xf32> to vector<1x8x8xf32>
    %110 = vector.shape_cast %109 : vector<1x8x8xf32> to vector<8x8xf32>
    %111 = vector.broadcast %108 : f32 to vector<8x8xf32>
    %112 = arith.mulf %111, %110 : vector<8x8xf32>
    %113 = arith.addf %107, %112 : vector<8x8xf32>
    %c14 = arith.constant 14 : index
    %114 = memref.load %arg1[%c14] : memref<148xf32, #tpu.memory_space<smem>>
    %115 = vector.extract_strided_slice %1 {offsets = [0, 1, 1], sizes = [1, 8, 8], strides = [1, 1, 1]} : vector<4x10x10xf32> to vector<1x8x8xf32>
    %116 = vector.shape_cast %115 : vector<1x8x8xf32> to vector<8x8xf32>
    %117 = vector.broadcast %114 : f32 to vector<8x8xf32>
    %118 = arith.mulf %117, %116 : vector<8x8xf32>
    %119 = arith.addf %113, %118 : vector<8x8xf32>
    %c15 = arith.constant 15 : index
    %120 = memref.load %arg1[%c15] : memref<148xf32, #tpu.memory_space<smem>>
    %121 = vector.extract_strided_slice %3 {offsets = [0, 1, 1], sizes = [1, 8, 8], strides = [1, 1, 1]} : vector<4x10x10xf32> to vector<1x8x8xf32>
    %122 = vector.shape_cast %121 : vector<1x8x8xf32> to vector<8x8xf32>
    %123 = vector.broadcast %120 : f32 to vector<8x8xf32>
    %124 = arith.mulf %123, %122 : vector<8x8xf32>
    %125 = arith.addf %119, %124 : vector<8x8xf32>
    %c16 = arith.constant 16 : index
    %126 = memref.load %arg1[%c16] : memref<148xf32, #tpu.memory_space<smem>>
    %127 = vector.extract_strided_slice %7 {offsets = [0, 1, 0], sizes = [1, 8, 8], strides = [1, 1, 1]} : vector<4x10x10xf32> to vector<1x8x8xf32>
    %128 = vector.shape_cast %127 : vector<1x8x8xf32> to vector<8x8xf32>
    %129 = vector.broadcast %126 : f32 to vector<8x8xf32>
    %130 = arith.mulf %129, %128 : vector<8x8xf32>
    %131 = arith.addf %125, %130 : vector<8x8xf32>
    %c17 = arith.constant 17 : index
    %132 = memref.load %arg1[%c17] : memref<148xf32, #tpu.memory_space<smem>>
    %133 = vector.extract_strided_slice %5 {offsets = [0, 1, 1], sizes = [1, 8, 8], strides = [1, 1, 1]} : vector<4x10x10xf32> to vector<1x8x8xf32>
    %134 = vector.shape_cast %133 : vector<1x8x8xf32> to vector<8x8xf32>
    %135 = vector.broadcast %132 : f32 to vector<8x8xf32>
    %136 = arith.mulf %135, %134 : vector<8x8xf32>
    %137 = arith.addf %131, %136 : vector<8x8xf32>
    %c18 = arith.constant 18 : index
    %138 = memref.load %arg1[%c18] : memref<148xf32, #tpu.memory_space<smem>>
    %139 = vector.extract_strided_slice %7 {offsets = [0, 1, 1], sizes = [1, 8, 8], strides = [1, 1, 1]} : vector<4x10x10xf32> to vector<1x8x8xf32>
    %140 = vector.shape_cast %139 : vector<1x8x8xf32> to vector<8x8xf32>
    %141 = vector.broadcast %138 : f32 to vector<8x8xf32>
    %142 = arith.mulf %141, %140 : vector<8x8xf32>
    %143 = arith.addf %137, %142 : vector<8x8xf32>
    %c19 = arith.constant 19 : index
    %144 = memref.load %arg1[%c19] : memref<148xf32, #tpu.memory_space<smem>>
    %145 = vector.extract_strided_slice %7 {offsets = [1, 0, 0], sizes = [1, 8, 8], strides = [1, 1, 1]} : vector<4x10x10xf32> to vector<1x8x8xf32>
    %146 = vector.shape_cast %145 : vector<1x8x8xf32> to vector<8x8xf32>
    %147 = vector.broadcast %144 : f32 to vector<8x8xf32>
    %148 = arith.mulf %147, %146 : vector<8x8xf32>
    %149 = arith.addf %143, %148 : vector<8x8xf32>
    %c20 = arith.constant 20 : index
    %150 = memref.load %arg1[%c20] : memref<148xf32, #tpu.memory_space<smem>>
    %151 = vector.extract_strided_slice %5 {offsets = [1, 0, 1], sizes = [1, 8, 8], strides = [1, 1, 1]} : vector<4x10x10xf32> to vector<1x8x8xf32>
    %152 = vector.shape_cast %151 : vector<1x8x8xf32> to vector<8x8xf32>
    %153 = vector.broadcast %150 : f32 to vector<8x8xf32>
    %154 = arith.mulf %153, %152 : vector<8x8xf32>
    %155 = arith.addf %149, %154 : vector<8x8xf32>
    %c21 = arith.constant 21 : index
    %156 = memref.load %arg1[%c21] : memref<148xf32, #tpu.memory_space<smem>>
    %157 = vector.extract_strided_slice %7 {offsets = [1, 0, 1], sizes = [1, 8, 8], strides = [1, 1, 1]} : vector<4x10x10xf32> to vector<1x8x8xf32>
    %158 = vector.shape_cast %157 : vector<1x8x8xf32> to vector<8x8xf32>
    %159 = vector.broadcast %156 : f32 to vector<8x8xf32>
    %160 = arith.mulf %159, %158 : vector<8x8xf32>
    %161 = arith.addf %155, %160 : vector<8x8xf32>
    %c22 = arith.constant 22 : index
    %162 = memref.load %arg1[%c22] : memref<148xf32, #tpu.memory_space<smem>>
    %163 = vector.extract_strided_slice %3 {offsets = [1, 1, 0], sizes = [1, 8, 8], strides = [1, 1, 1]} : vector<4x10x10xf32> to vector<1x8x8xf32>
    %164 = vector.shape_cast %163 : vector<1x8x8xf32> to vector<8x8xf32>
    %165 = vector.broadcast %162 : f32 to vector<8x8xf32>
    %166 = arith.mulf %165, %164 : vector<8x8xf32>
    %167 = arith.addf %161, %166 : vector<8x8xf32>
    %c23 = arith.constant 23 : index
    %168 = memref.load %arg1[%c23] : memref<148xf32, #tpu.memory_space<smem>>
    %169 = vector.extract_strided_slice %1 {offsets = [1, 1, 1], sizes = [1, 8, 8], strides = [1, 1, 1]} : vector<4x10x10xf32> to vector<1x8x8xf32>
    %170 = vector.shape_cast %169 : vector<1x8x8xf32> to vector<8x8xf32>
    %171 = vector.broadcast %168 : f32 to vector<8x8xf32>
    %172 = arith.mulf %171, %170 : vector<8x8xf32>
    %173 = arith.addf %167, %172 : vector<8x8xf32>
    %c24 = arith.constant 24 : index
    %174 = memref.load %arg1[%c24] : memref<148xf32, #tpu.memory_space<smem>>
    %175 = vector.extract_strided_slice %3 {offsets = [1, 1, 1], sizes = [1, 8, 8], strides = [1, 1, 1]} : vector<4x10x10xf32> to vector<1x8x8xf32>
    %176 = vector.shape_cast %175 : vector<1x8x8xf32> to vector<8x8xf32>
    %177 = vector.broadcast %174 : f32 to vector<8x8xf32>
    %178 = arith.mulf %177, %176 : vector<8x8xf32>
    %179 = arith.addf %173, %178 : vector<8x8xf32>
    %c25 = arith.constant 25 : index
    %180 = memref.load %arg1[%c25] : memref<148xf32, #tpu.memory_space<smem>>
    %181 = vector.extract_strided_slice %7 {offsets = [1, 1, 0], sizes = [1, 8, 8], strides = [1, 1, 1]} : vector<4x10x10xf32> to vector<1x8x8xf32>
    %182 = vector.shape_cast %181 : vector<1x8x8xf32> to vector<8x8xf32>
    %183 = vector.broadcast %180 : f32 to vector<8x8xf32>
    %184 = arith.mulf %183, %182 : vector<8x8xf32>
    %185 = arith.addf %179, %184 : vector<8x8xf32>
    %c26 = arith.constant 26 : index
    %186 = memref.load %arg1[%c26] : memref<148xf32, #tpu.memory_space<smem>>
    %187 = vector.extract_strided_slice %5 {offsets = [1, 1, 1], sizes = [1, 8, 8], strides = [1, 1, 1]} : vector<4x10x10xf32> to vector<1x8x8xf32>
    %188 = vector.shape_cast %187 : vector<1x8x8xf32> to vector<8x8xf32>
    %189 = vector.broadcast %186 : f32 to vector<8x8xf32>
    %190 = arith.mulf %189, %188 : vector<8x8xf32>
    %191 = arith.addf %185, %190 : vector<8x8xf32>
    %c27 = arith.constant 27 : index
    %192 = memref.load %arg1[%c27] : memref<148xf32, #tpu.memory_space<smem>>
    %193 = vector.extract_strided_slice %7 {offsets = [1, 1, 1], sizes = [1, 8, 8], strides = [1, 1, 1]} : vector<4x10x10xf32> to vector<1x8x8xf32>
    %194 = vector.shape_cast %193 : vector<1x8x8xf32> to vector<8x8xf32>
    %195 = vector.broadcast %192 : f32 to vector<8x8xf32>
    %196 = arith.mulf %195, %194 : vector<8x8xf32>
    %197 = arith.addf %191, %196 : vector<8x8xf32>
    %c28 = arith.constant 28 : index
    %198 = memref.load %arg1[%c28] : memref<148xf32, #tpu.memory_space<smem>>
    %199 = vector.extract_strided_slice %7 {offsets = [2, 0, 0], sizes = [1, 8, 8], strides = [1, 1, 1]} : vector<4x10x10xf32> to vector<1x8x8xf32>
    %200 = vector.shape_cast %199 : vector<1x8x8xf32> to vector<8x8xf32>
    %201 = vector.broadcast %198 : f32 to vector<8x8xf32>
    %202 = arith.mulf %201, %200 : vector<8x8xf32>
    %203 = arith.addf %197, %202 : vector<8x8xf32>
    %c29 = arith.constant 29 : index
    %204 = memref.load %arg1[%c29] : memref<148xf32, #tpu.memory_space<smem>>
    %205 = vector.extract_strided_slice %5 {offsets = [2, 0, 1], sizes = [1, 8, 8], strides = [1, 1, 1]} : vector<4x10x10xf32> to vector<1x8x8xf32>
    %206 = vector.shape_cast %205 : vector<1x8x8xf32> to vector<8x8xf32>
    %207 = vector.broadcast %204 : f32 to vector<8x8xf32>
    %208 = arith.mulf %207, %206 : vector<8x8xf32>
    %209 = arith.addf %203, %208 : vector<8x8xf32>
    %c30 = arith.constant 30 : index
    %210 = memref.load %arg1[%c30] : memref<148xf32, #tpu.memory_space<smem>>
    %211 = vector.extract_strided_slice %7 {offsets = [2, 0, 1], sizes = [1, 8, 8], strides = [1, 1, 1]} : vector<4x10x10xf32> to vector<1x8x8xf32>
    %212 = vector.shape_cast %211 : vector<1x8x8xf32> to vector<8x8xf32>
    %213 = vector.broadcast %210 : f32 to vector<8x8xf32>
    %214 = arith.mulf %213, %212 : vector<8x8xf32>
    %215 = arith.addf %209, %214 : vector<8x8xf32>
    %c31 = arith.constant 31 : index
    %216 = memref.load %arg1[%c31] : memref<148xf32, #tpu.memory_space<smem>>
    %217 = vector.extract_strided_slice %3 {offsets = [2, 1, 0], sizes = [1, 8, 8], strides = [1, 1, 1]} : vector<4x10x10xf32> to vector<1x8x8xf32>
    %218 = vector.shape_cast %217 : vector<1x8x8xf32> to vector<8x8xf32>
    %219 = vector.broadcast %216 : f32 to vector<8x8xf32>
    %220 = arith.mulf %219, %218 : vector<8x8xf32>
    %221 = arith.addf %215, %220 : vector<8x8xf32>
    %c32 = arith.constant 32 : index
    %222 = memref.load %arg1[%c32] : memref<148xf32, #tpu.memory_space<smem>>
    %223 = vector.extract_strided_slice %1 {offsets = [2, 1, 1], sizes = [1, 8, 8], strides = [1, 1, 1]} : vector<4x10x10xf32> to vector<1x8x8xf32>
    %224 = vector.shape_cast %223 : vector<1x8x8xf32> to vector<8x8xf32>
    %225 = vector.broadcast %222 : f32 to vector<8x8xf32>
    %226 = arith.mulf %225, %224 : vector<8x8xf32>
    %227 = arith.addf %221, %226 : vector<8x8xf32>
    %c33 = arith.constant 33 : index
    %228 = memref.load %arg1[%c33] : memref<148xf32, #tpu.memory_space<smem>>
    %229 = vector.extract_strided_slice %3 {offsets = [2, 1, 1], sizes = [1, 8, 8], strides = [1, 1, 1]} : vector<4x10x10xf32> to vector<1x8x8xf32>
    %230 = vector.shape_cast %229 : vector<1x8x8xf32> to vector<8x8xf32>
    %231 = vector.broadcast %228 : f32 to vector<8x8xf32>
    %232 = arith.mulf %231, %230 : vector<8x8xf32>
    %233 = arith.addf %227, %232 : vector<8x8xf32>
    %c34 = arith.constant 34 : index
    %234 = memref.load %arg1[%c34] : memref<148xf32, #tpu.memory_space<smem>>
    %235 = vector.extract_strided_slice %7 {offsets = [2, 1, 0], sizes = [1, 8, 8], strides = [1, 1, 1]} : vector<4x10x10xf32> to vector<1x8x8xf32>
    %236 = vector.shape_cast %235 : vector<1x8x8xf32> to vector<8x8xf32>
    %237 = vector.broadcast %234 : f32 to vector<8x8xf32>
    %238 = arith.mulf %237, %236 : vector<8x8xf32>
    %239 = arith.addf %233, %238 : vector<8x8xf32>
    %c35 = arith.constant 35 : index
    %240 = memref.load %arg1[%c35] : memref<148xf32, #tpu.memory_space<smem>>
    %241 = vector.extract_strided_slice %5 {offsets = [2, 1, 1], sizes = [1, 8, 8], strides = [1, 1, 1]} : vector<4x10x10xf32> to vector<1x8x8xf32>
    %242 = vector.shape_cast %241 : vector<1x8x8xf32> to vector<8x8xf32>
    %243 = vector.broadcast %240 : f32 to vector<8x8xf32>
    %244 = arith.mulf %243, %242 : vector<8x8xf32>
    %245 = arith.addf %239, %244 : vector<8x8xf32>
    %c36 = arith.constant 36 : index
    %246 = memref.load %arg1[%c36] : memref<148xf32, #tpu.memory_space<smem>>
    %247 = vector.extract_strided_slice %7 {offsets = [2, 1, 1], sizes = [1, 8, 8], strides = [1, 1, 1]} : vector<4x10x10xf32> to vector<1x8x8xf32>
    %248 = vector.shape_cast %247 : vector<1x8x8xf32> to vector<8x8xf32>
    %249 = vector.broadcast %246 : f32 to vector<8x8xf32>
    %250 = arith.mulf %249, %248 : vector<8x8xf32>
    %251 = arith.addf %245, %250 : vector<8x8xf32>
    %c37 = arith.constant 37 : index
    %252 = memref.load %arg1[%c37] : memref<148xf32, #tpu.memory_space<smem>>
    %253 = vector.extract_strided_slice %7 {offsets = [3, 0, 0], sizes = [1, 8, 8], strides = [1, 1, 1]} : vector<4x10x10xf32> to vector<1x8x8xf32>
    %254 = vector.shape_cast %253 : vector<1x8x8xf32> to vector<8x8xf32>
    %255 = vector.broadcast %252 : f32 to vector<8x8xf32>
    %256 = arith.mulf %255, %254 : vector<8x8xf32>
    %257 = arith.addf %251, %256 : vector<8x8xf32>
    %c38 = arith.constant 38 : index
    %258 = memref.load %arg1[%c38] : memref<148xf32, #tpu.memory_space<smem>>
    %259 = vector.extract_strided_slice %5 {offsets = [3, 0, 1], sizes = [1, 8, 8], strides = [1, 1, 1]} : vector<4x10x10xf32> to vector<1x8x8xf32>
    %260 = vector.shape_cast %259 : vector<1x8x8xf32> to vector<8x8xf32>
    %261 = vector.broadcast %258 : f32 to vector<8x8xf32>
    %262 = arith.mulf %261, %260 : vector<8x8xf32>
    %263 = arith.addf %257, %262 : vector<8x8xf32>
    %c39 = arith.constant 39 : index
    %264 = memref.load %arg1[%c39] : memref<148xf32, #tpu.memory_space<smem>>
    %265 = vector.extract_strided_slice %7 {offsets = [3, 0, 1], sizes = [1, 8, 8], strides = [1, 1, 1]} : vector<4x10x10xf32> to vector<1x8x8xf32>
    %266 = vector.shape_cast %265 : vector<1x8x8xf32> to vector<8x8xf32>
    %267 = vector.broadcast %264 : f32 to vector<8x8xf32>
    %268 = arith.mulf %267, %266 : vector<8x8xf32>
    %269 = arith.addf %263, %268 : vector<8x8xf32>
    %c40 = arith.constant 40 : index
    %270 = memref.load %arg1[%c40] : memref<148xf32, #tpu.memory_space<smem>>
    %271 = vector.extract_strided_slice %3 {offsets = [3, 1, 0], sizes = [1, 8, 8], strides = [1, 1, 1]} : vector<4x10x10xf32> to vector<1x8x8xf32>
    %272 = vector.shape_cast %271 : vector<1x8x8xf32> to vector<8x8xf32>
    %273 = vector.broadcast %270 : f32 to vector<8x8xf32>
    %274 = arith.mulf %273, %272 : vector<8x8xf32>
    %275 = arith.addf %269, %274 : vector<8x8xf32>
    %c41 = arith.constant 41 : index
    %276 = memref.load %arg1[%c41] : memref<148xf32, #tpu.memory_space<smem>>
    %277 = vector.extract_strided_slice %1 {offsets = [3, 1, 1], sizes = [1, 8, 8], strides = [1, 1, 1]} : vector<4x10x10xf32> to vector<1x8x8xf32>
    %278 = vector.shape_cast %277 : vector<1x8x8xf32> to vector<8x8xf32>
    %279 = vector.broadcast %276 : f32 to vector<8x8xf32>
    %280 = arith.mulf %279, %278 : vector<8x8xf32>
    %281 = arith.addf %275, %280 : vector<8x8xf32>
    %c42 = arith.constant 42 : index
    %282 = memref.load %arg1[%c42] : memref<148xf32, #tpu.memory_space<smem>>
    %283 = vector.extract_strided_slice %3 {offsets = [3, 1, 1], sizes = [1, 8, 8], strides = [1, 1, 1]} : vector<4x10x10xf32> to vector<1x8x8xf32>
    %284 = vector.shape_cast %283 : vector<1x8x8xf32> to vector<8x8xf32>
    %285 = vector.broadcast %282 : f32 to vector<8x8xf32>
    %286 = arith.mulf %285, %284 : vector<8x8xf32>
    %287 = arith.addf %281, %286 : vector<8x8xf32>
    %c43 = arith.constant 43 : index
    %288 = memref.load %arg1[%c43] : memref<148xf32, #tpu.memory_space<smem>>
    %289 = vector.extract_strided_slice %7 {offsets = [3, 1, 0], sizes = [1, 8, 8], strides = [1, 1, 1]} : vector<4x10x10xf32> to vector<1x8x8xf32>
    %290 = vector.shape_cast %289 : vector<1x8x8xf32> to vector<8x8xf32>
    %291 = vector.broadcast %288 : f32 to vector<8x8xf32>
    %292 = arith.mulf %291, %290 : vector<8x8xf32>
    %293 = arith.addf %287, %292 : vector<8x8xf32>
    %c44 = arith.constant 44 : index
    %294 = memref.load %arg1[%c44] : memref<148xf32, #tpu.memory_space<smem>>
    %295 = vector.extract_strided_slice %5 {offsets = [3, 1, 1], sizes = [1, 8, 8], strides = [1, 1, 1]} : vector<4x10x10xf32> to vector<1x8x8xf32>
    %296 = vector.shape_cast %295 : vector<1x8x8xf32> to vector<8x8xf32>
    %297 = vector.broadcast %294 : f32 to vector<8x8xf32>
    %298 = arith.mulf %297, %296 : vector<8x8xf32>
    %299 = arith.addf %293, %298 : vector<8x8xf32>
    %c45 = arith.constant 45 : index
    %300 = memref.load %arg1[%c45] : memref<148xf32, #tpu.memory_space<smem>>
    %301 = vector.extract_strided_slice %7 {offsets = [3, 1, 1], sizes = [1, 8, 8], strides = [1, 1, 1]} : vector<4x10x10xf32> to vector<1x8x8xf32>
    %302 = vector.shape_cast %301 : vector<1x8x8xf32> to vector<8x8xf32>
    %303 = vector.broadcast %300 : f32 to vector<8x8xf32>
    %304 = arith.mulf %303, %302 : vector<8x8xf32>
    %305 = arith.addf %299, %304 : vector<8x8xf32>
    %306 = vector.extract_strided_slice %14 {offsets = [2, 0, 0], sizes = [1, 8, 8], strides = [1, 1, 1]} : vector<4x8x8xf32> to vector<1x8x8xf32>
    %307 = vector.shape_cast %306 : vector<1x8x8xf32> to vector<8x8xf32>
    %cst_30 = arith.constant 0.000000e+00 : f32
    %308 = vector.broadcast %cst_30 : f32 to vector<8x8xf32>
    %309 = arith.maximumf %305, %308 : vector<8x8xf32>
    %310 = arith.addf %307, %309 : vector<8x8xf32>
    %c0_31 = arith.constant 0 : index
    %c2_32 = arith.constant 2 : index
    %c0_33 = arith.constant 0 : index
    %c0_34 = arith.constant 0 : index
    %311 = vector.load %arg3[%c0_31, %c2_32, %c0_33, %c0_34] : memref<1x4x8x8xf32, #tpu.memory_space<vmem>>, vector<1x1x8x8xf32>
    %312 = vector.shape_cast %311 : vector<1x1x8x8xf32> to vector<8x8xf32>
    %313 = vector.shape_cast %310 : vector<8x8xf32> to vector<1x1x8x8xf32>
    tpu.vector_store %arg3[%c0_31, %c2_32, %c0_33, %c0_34], %313 {strides = array<i32>} : memref<1x4x8x8xf32, #tpu.memory_space<vmem>>, vector<1x1x8x8xf32>,
    %c147 = arith.constant 147 : index
    %314 = memref.load %arg1[%c147] : memref<148xf32, #tpu.memory_space<smem>>
    %c47 = arith.constant 47 : index
    %315 = memref.load %arg1[%c47] : memref<148xf32, #tpu.memory_space<smem>>
    %316 = vector.extract_strided_slice %1 {offsets = [0, 0, 0], sizes = [1, 8, 8], strides = [1, 1, 1]} : vector<4x10x10xf32> to vector<1x8x8xf32>
    %317 = vector.shape_cast %316 : vector<1x8x8xf32> to vector<8x8xf32>
    %318 = vector.broadcast %315 : f32 to vector<8x8xf32>
    %319 = arith.mulf %318, %317 : vector<8x8xf32>
    %320 = vector.broadcast %314 : f32 to vector<8x8xf32>
    %321 = arith.addf %320, %319 : vector<8x8xf32>
    %c48 = arith.constant 48 : index
    %322 = memref.load %arg1[%c48] : memref<148xf32, #tpu.memory_space<smem>>
    %323 = vector.extract_strided_slice %3 {offsets = [0, 0, 0], sizes = [1, 8, 8], strides = [1, 1, 1]} : vector<4x10x10xf32> to vector<1x8x8xf32>
    %324 = vector.shape_cast %323 : vector<1x8x8xf32> to vector<8x8xf32>
    %325 = vector.broadcast %322 : f32 to vector<8x8xf32>
    %326 = arith.mulf %325, %324 : vector<8x8xf32>
    %327 = arith.addf %321, %326 : vector<8x8xf32>
    %c49 = arith.constant 49 : index
    %328 = memref.load %arg1[%c49] : memref<148xf32, #tpu.memory_space<smem>>
    %329 = vector.extract_strided_slice %1 {offsets = [0, 0, 1], sizes = [1, 8, 8], strides = [1, 1, 1]} : vector<4x10x10xf32> to vector<1x8x8xf32>
    %330 = vector.shape_cast %329 : vector<1x8x8xf32> to vector<8x8xf32>
    %331 = vector.broadcast %328 : f32 to vector<8x8xf32>
    %332 = arith.mulf %331, %330 : vector<8x8xf32>
    %333 = arith.addf %327, %332 : vector<8x8xf32>
    %c50 = arith.constant 50 : index
    %334 = memref.load %arg1[%c50] : memref<148xf32, #tpu.memory_space<smem>>
    %335 = vector.extract_strided_slice %3 {offsets = [0, 0, 1], sizes = [1, 8, 8], strides = [1, 1, 1]} : vector<4x10x10xf32> to vector<1x8x8xf32>
    %336 = vector.shape_cast %335 : vector<1x8x8xf32> to vector<8x8xf32>
    %337 = vector.broadcast %334 : f32 to vector<8x8xf32>
    %338 = arith.mulf %337, %336 : vector<8x8xf32>
    %339 = arith.addf %333, %338 : vector<8x8xf32>
    %c51 = arith.constant 51 : index
    %340 = memref.load %arg1[%c51] : memref<148xf32, #tpu.memory_space<smem>>
    %341 = vector.extract_strided_slice %1 {offsets = [0, 0, 2], sizes = [1, 8, 8], strides = [1, 1, 1]} : vector<4x10x10xf32> to vector<1x8x8xf32>
    %342 = vector.shape_cast %341 : vector<1x8x8xf32> to vector<8x8xf32>
    %343 = vector.broadcast %340 : f32 to vector<8x8xf32>
    %344 = arith.mulf %343, %342 : vector<8x8xf32>
    %345 = arith.addf %339, %344 : vector<8x8xf32>
    %c52 = arith.constant 52 : index
    %346 = memref.load %arg1[%c52] : memref<148xf32, #tpu.memory_space<smem>>
    %347 = vector.extract_strided_slice %5 {offsets = [0, 0, 0], sizes = [1, 8, 8], strides = [1, 1, 1]} : vector<4x10x10xf32> to vector<1x8x8xf32>
    %348 = vector.shape_cast %347 : vector<1x8x8xf32> to vector<8x8xf32>
    %349 = vector.broadcast %346 : f32 to vector<8x8xf32>
    %350 = arith.mulf %349, %348 : vector<8x8xf32>
    %351 = arith.addf %345, %350 : vector<8x8xf32>
    %c53 = arith.constant 53 : index
    %352 = memref.load %arg1[%c53] : memref<148xf32, #tpu.memory_space<smem>>
    %353 = vector.extract_strided_slice %7 {offsets = [0, 0, 0], sizes = [1, 8, 8], strides = [1, 1, 1]} : vector<4x10x10xf32> to vector<1x8x8xf32>
    %354 = vector.shape_cast %353 : vector<1x8x8xf32> to vector<8x8xf32>
    %355 = vector.broadcast %352 : f32 to vector<8x8xf32>
    %356 = arith.mulf %355, %354 : vector<8x8xf32>
    %357 = arith.addf %351, %356 : vector<8x8xf32>
    %c54 = arith.constant 54 : index
    %358 = memref.load %arg1[%c54] : memref<148xf32, #tpu.memory_space<smem>>
    %359 = vector.extract_strided_slice %5 {offsets = [0, 0, 1], sizes = [1, 8, 8], strides = [1, 1, 1]} : vector<4x10x10xf32> to vector<1x8x8xf32>
    %360 = vector.shape_cast %359 : vector<1x8x8xf32> to vector<8x8xf32>
    %361 = vector.broadcast %358 : f32 to vector<8x8xf32>
    %362 = arith.mulf %361, %360 : vector<8x8xf32>
    %363 = arith.addf %357, %362 : vector<8x8xf32>
    %c55 = arith.constant 55 : index
    %364 = memref.load %arg1[%c55] : memref<148xf32, #tpu.memory_space<smem>>
    %365 = vector.extract_strided_slice %7 {offsets = [0, 0, 1], sizes = [1, 8, 8], strides = [1, 1, 1]} : vector<4x10x10xf32> to vector<1x8x8xf32>
    %366 = vector.shape_cast %365 : vector<1x8x8xf32> to vector<8x8xf32>
    %367 = vector.broadcast %364 : f32 to vector<8x8xf32>
    %368 = arith.mulf %367, %366 : vector<8x8xf32>
    %369 = arith.addf %363, %368 : vector<8x8xf32>
    %c56 = arith.constant 56 : index
    %370 = memref.load %arg1[%c56] : memref<148xf32, #tpu.memory_space<smem>>
    %371 = vector.extract_strided_slice %5 {offsets = [0, 0, 2], sizes = [1, 8, 8], strides = [1, 1, 1]} : vector<4x10x10xf32> to vector<1x8x8xf32>
    %372 = vector.shape_cast %371 : vector<1x8x8xf32> to vector<8x8xf32>
    %373 = vector.broadcast %370 : f32 to vector<8x8xf32>
    %374 = arith.mulf %373, %372 : vector<8x8xf32>
    %375 = arith.addf %369, %374 : vector<8x8xf32>
    %c57 = arith.constant 57 : index
    %376 = memref.load %arg1[%c57] : memref<148xf32, #tpu.memory_space<smem>>
    %377 = vector.extract_strided_slice %1 {offsets = [0, 1, 0], sizes = [1, 8, 8], strides = [1, 1, 1]} : vector<4x10x10xf32> to vector<1x8x8xf32>
    %378 = vector.shape_cast %377 : vector<1x8x8xf32> to vector<8x8xf32>
    %379 = vector.broadcast %376 : f32 to vector<8x8xf32>
    %380 = arith.mulf %379, %378 : vector<8x8xf32>
    %381 = arith.addf %375, %380 : vector<8x8xf32>
    %c58 = arith.constant 58 : index
    %382 = memref.load %arg1[%c58] : memref<148xf32, #tpu.memory_space<smem>>
    %383 = vector.extract_strided_slice %3 {offsets = [0, 1, 0], sizes = [1, 8, 8], strides = [1, 1, 1]} : vector<4x10x10xf32> to vector<1x8x8xf32>
    %384 = vector.shape_cast %383 : vector<1x8x8xf32> to vector<8x8xf32>
    %385 = vector.broadcast %382 : f32 to vector<8x8xf32>
    %386 = arith.mulf %385, %384 : vector<8x8xf32>
    %387 = arith.addf %381, %386 : vector<8x8xf32>
    %c59 = arith.constant 59 : index
    %388 = memref.load %arg1[%c59] : memref<148xf32, #tpu.memory_space<smem>>
    %389 = vector.extract_strided_slice %1 {offsets = [0, 1, 1], sizes = [1, 8, 8], strides = [1, 1, 1]} : vector<4x10x10xf32> to vector<1x8x8xf32>
    %390 = vector.shape_cast %389 : vector<1x8x8xf32> to vector<8x8xf32>
    %391 = vector.broadcast %388 : f32 to vector<8x8xf32>
    %392 = arith.mulf %391, %390 : vector<8x8xf32>
    %393 = arith.addf %387, %392 : vector<8x8xf32>
    %c60 = arith.constant 60 : index
    %394 = memref.load %arg1[%c60] : memref<148xf32, #tpu.memory_space<smem>>
    %395 = vector.extract_strided_slice %3 {offsets = [0, 1, 1], sizes = [1, 8, 8], strides = [1, 1, 1]} : vector<4x10x10xf32> to vector<1x8x8xf32>
    %396 = vector.shape_cast %395 : vector<1x8x8xf32> to vector<8x8xf32>
    %397 = vector.broadcast %394 : f32 to vector<8x8xf32>
    %398 = arith.mulf %397, %396 : vector<8x8xf32>
    %399 = arith.addf %393, %398 : vector<8x8xf32>
    %c61 = arith.constant 61 : index
    %400 = memref.load %arg1[%c61] : memref<148xf32, #tpu.memory_space<smem>>
    %401 = vector.extract_strided_slice %1 {offsets = [0, 1, 2], sizes = [1, 8, 8], strides = [1, 1, 1]} : vector<4x10x10xf32> to vector<1x8x8xf32>
    %402 = vector.shape_cast %401 : vector<1x8x8xf32> to vector<8x8xf32>
    %403 = vector.broadcast %400 : f32 to vector<8x8xf32>
    %404 = arith.mulf %403, %402 : vector<8x8xf32>
    %405 = arith.addf %399, %404 : vector<8x8xf32>
    %c62 = arith.constant 62 : index
    %406 = memref.load %arg1[%c62] : memref<148xf32, #tpu.memory_space<smem>>
    %407 = vector.extract_strided_slice %5 {offsets = [0, 1, 0], sizes = [1, 8, 8], strides = [1, 1, 1]} : vector<4x10x10xf32> to vector<1x8x8xf32>
    %408 = vector.shape_cast %407 : vector<1x8x8xf32> to vector<8x8xf32>
    %409 = vector.broadcast %406 : f32 to vector<8x8xf32>
    %410 = arith.mulf %409, %408 : vector<8x8xf32>
    %411 = arith.addf %405, %410 : vector<8x8xf32>
    %c63 = arith.constant 63 : index
    %412 = memref.load %arg1[%c63] : memref<148xf32, #tpu.memory_space<smem>>
    %413 = vector.extract_strided_slice %7 {offsets = [0, 1, 0], sizes = [1, 8, 8], strides = [1, 1, 1]} : vector<4x10x10xf32> to vector<1x8x8xf32>
    %414 = vector.shape_cast %413 : vector<1x8x8xf32> to vector<8x8xf32>
    %415 = vector.broadcast %412 : f32 to vector<8x8xf32>
    %416 = arith.mulf %415, %414 : vector<8x8xf32>
    %417 = arith.addf %411, %416 : vector<8x8xf32>
    %c64 = arith.constant 64 : index
    %418 = memref.load %arg1[%c64] : memref<148xf32, #tpu.memory_space<smem>>
    %419 = vector.extract_strided_slice %5 {offsets = [0, 1, 1], sizes = [1, 8, 8], strides = [1, 1, 1]} : vector<4x10x10xf32> to vector<1x8x8xf32>
    %420 = vector.shape_cast %419 : vector<1x8x8xf32> to vector<8x8xf32>
    %421 = vector.broadcast %418 : f32 to vector<8x8xf32>
    %422 = arith.mulf %421, %420 : vector<8x8xf32>
    %423 = arith.addf %417, %422 : vector<8x8xf32>
    %c65 = arith.constant 65 : index
    %424 = memref.load %arg1[%c65] : memref<148xf32, #tpu.memory_space<smem>>
    %425 = vector.extract_strided_slice %7 {offsets = [0, 1, 1], sizes = [1, 8, 8], strides = [1, 1, 1]} : vector<4x10x10xf32> to vector<1x8x8xf32>
    %426 = vector.shape_cast %425 : vector<1x8x8xf32> to vector<8x8xf32>
    %427 = vector.broadcast %424 : f32 to vector<8x8xf32>
    %428 = arith.mulf %427, %426 : vector<8x8xf32>
    %429 = arith.addf %423, %428 : vector<8x8xf32>
    %c66 = arith.constant 66 : index
    %430 = memref.load %arg1[%c66] : memref<148xf32, #tpu.memory_space<smem>>
    %431 = vector.extract_strided_slice %5 {offsets = [0, 1, 2], sizes = [1, 8, 8], strides = [1, 1, 1]} : vector<4x10x10xf32> to vector<1x8x8xf32>
    %432 = vector.shape_cast %431 : vector<1x8x8xf32> to vector<8x8xf32>
    %433 = vector.broadcast %430 : f32 to vector<8x8xf32>
    %434 = arith.mulf %433, %432 : vector<8x8xf32>
    %435 = arith.addf %429, %434 : vector<8x8xf32>
    %c67 = arith.constant 67 : index
    %436 = memref.load %arg1[%c67] : memref<148xf32, #tpu.memory_space<smem>>
    %437 = vector.extract_strided_slice %1 {offsets = [0, 2, 0], sizes = [1, 8, 8], strides = [1, 1, 1]} : vector<4x10x10xf32> to vector<1x8x8xf32>
    %438 = vector.shape_cast %437 : vector<1x8x8xf32> to vector<8x8xf32>
    %439 = vector.broadcast %436 : f32 to vector<8x8xf32>
    %440 = arith.mulf %439, %438 : vector<8x8xf32>
    %441 = arith.addf %435, %440 : vector<8x8xf32>
    %c68 = arith.constant 68 : index
    %442 = memref.load %arg1[%c68] : memref<148xf32, #tpu.memory_space<smem>>
    %443 = vector.extract_strided_slice %3 {offsets = [0, 2, 0], sizes = [1, 8, 8], strides = [1, 1, 1]} : vector<4x10x10xf32> to vector<1x8x8xf32>
    %444 = vector.shape_cast %443 : vector<1x8x8xf32> to vector<8x8xf32>
    %445 = vector.broadcast %442 : f32 to vector<8x8xf32>
    %446 = arith.mulf %445, %444 : vector<8x8xf32>
    %447 = arith.addf %441, %446 : vector<8x8xf32>
    %c69 = arith.constant 69 : index
    %448 = memref.load %arg1[%c69] : memref<148xf32, #tpu.memory_space<smem>>
    %449 = vector.extract_strided_slice %1 {offsets = [0, 2, 1], sizes = [1, 8, 8], strides = [1, 1, 1]} : vector<4x10x10xf32> to vector<1x8x8xf32>
    %450 = vector.shape_cast %449 : vector<1x8x8xf32> to vector<8x8xf32>
    %451 = vector.broadcast %448 : f32 to vector<8x8xf32>
    %452 = arith.mulf %451, %450 : vector<8x8xf32>
    %453 = arith.addf %447, %452 : vector<8x8xf32>
    %c70 = arith.constant 70 : index
    %454 = memref.load %arg1[%c70] : memref<148xf32, #tpu.memory_space<smem>>
    %455 = vector.extract_strided_slice %3 {offsets = [0, 2, 1], sizes = [1, 8, 8], strides = [1, 1, 1]} : vector<4x10x10xf32> to vector<1x8x8xf32>
    %456 = vector.shape_cast %455 : vector<1x8x8xf32> to vector<8x8xf32>
    %457 = vector.broadcast %454 : f32 to vector<8x8xf32>
    %458 = arith.mulf %457, %456 : vector<8x8xf32>
    %459 = arith.addf %453, %458 : vector<8x8xf32>
    %c71 = arith.constant 71 : index
    %460 = memref.load %arg1[%c71] : memref<148xf32, #tpu.memory_space<smem>>
    %461 = vector.extract_strided_slice %1 {offsets = [0, 2, 2], sizes = [1, 8, 8], strides = [1, 1, 1]} : vector<4x10x10xf32> to vector<1x8x8xf32>
    %462 = vector.shape_cast %461 : vector<1x8x8xf32> to vector<8x8xf32>
    %463 = vector.broadcast %460 : f32 to vector<8x8xf32>
    %464 = arith.mulf %463, %462 : vector<8x8xf32>
    %465 = arith.addf %459, %464 : vector<8x8xf32>
    %c72 = arith.constant 72 : index
    %466 = memref.load %arg1[%c72] : memref<148xf32, #tpu.memory_space<smem>>
    %467 = vector.extract_strided_slice %1 {offsets = [1, 0, 0], sizes = [1, 8, 8], strides = [1, 1, 1]} : vector<4x10x10xf32> to vector<1x8x8xf32>
    %468 = vector.shape_cast %467 : vector<1x8x8xf32> to vector<8x8xf32>
    %469 = vector.broadcast %466 : f32 to vector<8x8xf32>
    %470 = arith.mulf %469, %468 : vector<8x8xf32>
    %471 = arith.addf %465, %470 : vector<8x8xf32>
    %c73 = arith.constant 73 : index
    %472 = memref.load %arg1[%c73] : memref<148xf32, #tpu.memory_space<smem>>
    %473 = vector.extract_strided_slice %3 {offsets = [1, 0, 0], sizes = [1, 8, 8], strides = [1, 1, 1]} : vector<4x10x10xf32> to vector<1x8x8xf32>
    %474 = vector.shape_cast %473 : vector<1x8x8xf32> to vector<8x8xf32>
    %475 = vector.broadcast %472 : f32 to vector<8x8xf32>
    %476 = arith.mulf %475, %474 : vector<8x8xf32>
    %477 = arith.addf %471, %476 : vector<8x8xf32>
    %c74 = arith.constant 74 : index
    %478 = memref.load %arg1[%c74] : memref<148xf32, #tpu.memory_space<smem>>
    %479 = vector.extract_strided_slice %1 {offsets = [1, 0, 1], sizes = [1, 8, 8], strides = [1, 1, 1]} : vector<4x10x10xf32> to vector<1x8x8xf32>
    %480 = vector.shape_cast %479 : vector<1x8x8xf32> to vector<8x8xf32>
    %481 = vector.broadcast %478 : f32 to vector<8x8xf32>
    %482 = arith.mulf %481, %480 : vector<8x8xf32>
    %483 = arith.addf %477, %482 : vector<8x8xf32>
    %c75 = arith.constant 75 : index
    %484 = memref.load %arg1[%c75] : memref<148xf32, #tpu.memory_space<smem>>
    %485 = vector.extract_strided_slice %3 {offsets = [1, 0, 1], sizes = [1, 8, 8], strides = [1, 1, 1]} : vector<4x10x10xf32> to vector<1x8x8xf32>
    %486 = vector.shape_cast %485 : vector<1x8x8xf32> to vector<8x8xf32>
    %487 = vector.broadcast %484 : f32 to vector<8x8xf32>
    %488 = arith.mulf %487, %486 : vector<8x8xf32>
    %489 = arith.addf %483, %488 : vector<8x8xf32>
    %c76 = arith.constant 76 : index
    %490 = memref.load %arg1[%c76] : memref<148xf32, #tpu.memory_space<smem>>
    %491 = vector.extract_strided_slice %1 {offsets = [1, 0, 2], sizes = [1, 8, 8], strides = [1, 1, 1]} : vector<4x10x10xf32> to vector<1x8x8xf32>
    %492 = vector.shape_cast %491 : vector<1x8x8xf32> to vector<8x8xf32>
    %493 = vector.broadcast %490 : f32 to vector<8x8xf32>
    %494 = arith.mulf %493, %492 : vector<8x8xf32>
    %495 = arith.addf %489, %494 : vector<8x8xf32>
    %c77 = arith.constant 77 : index
    %496 = memref.load %arg1[%c77] : memref<148xf32, #tpu.memory_space<smem>>
    %497 = vector.extract_strided_slice %5 {offsets = [1, 0, 0], sizes = [1, 8, 8], strides = [1, 1, 1]} : vector<4x10x10xf32> to vector<1x8x8xf32>
    %498 = vector.shape_cast %497 : vector<1x8x8xf32> to vector<8x8xf32>
    %499 = vector.broadcast %496 : f32 to vector<8x8xf32>
    %500 = arith.mulf %499, %498 : vector<8x8xf32>
    %501 = arith.addf %495, %500 : vector<8x8xf32>
    %c78 = arith.constant 78 : index
    %502 = memref.load %arg1[%c78] : memref<148xf32, #tpu.memory_space<smem>>
    %503 = vector.extract_strided_slice %7 {offsets = [1, 0, 0], sizes = [1, 8, 8], strides = [1, 1, 1]} : vector<4x10x10xf32> to vector<1x8x8xf32>
    %504 = vector.shape_cast %503 : vector<1x8x8xf32> to vector<8x8xf32>
    %505 = vector.broadcast %502 : f32 to vector<8x8xf32>
    %506 = arith.mulf %505, %504 : vector<8x8xf32>
    %507 = arith.addf %501, %506 : vector<8x8xf32>
    %c79 = arith.constant 79 : index
    %508 = memref.load %arg1[%c79] : memref<148xf32, #tpu.memory_space<smem>>
    %509 = vector.extract_strided_slice %5 {offsets = [1, 0, 1], sizes = [1, 8, 8], strides = [1, 1, 1]} : vector<4x10x10xf32> to vector<1x8x8xf32>
    %510 = vector.shape_cast %509 : vector<1x8x8xf32> to vector<8x8xf32>
    %511 = vector.broadcast %508 : f32 to vector<8x8xf32>
    %512 = arith.mulf %511, %510 : vector<8x8xf32>
    %513 = arith.addf %507, %512 : vector<8x8xf32>
    %c80 = arith.constant 80 : index
    %514 = memref.load %arg1[%c80] : memref<148xf32, #tpu.memory_space<smem>>
    %515 = vector.extract_strided_slice %7 {offsets = [1, 0, 1], sizes = [1, 8, 8], strides = [1, 1, 1]} : vector<4x10x10xf32> to vector<1x8x8xf32>
    %516 = vector.shape_cast %515 : vector<1x8x8xf32> to vector<8x8xf32>
    %517 = vector.broadcast %514 : f32 to vector<8x8xf32>
    %518 = arith.mulf %517, %516 : vector<8x8xf32>
    %519 = arith.addf %513, %518 : vector<8x8xf32>
    %c81 = arith.constant 81 : index
    %520 = memref.load %arg1[%c81] : memref<148xf32, #tpu.memory_space<smem>>
    %521 = vector.extract_strided_slice %5 {offsets = [1, 0, 2], sizes = [1, 8, 8], strides = [1, 1, 1]} : vector<4x10x10xf32> to vector<1x8x8xf32>
    %522 = vector.shape_cast %521 : vector<1x8x8xf32> to vector<8x8xf32>
    %523 = vector.broadcast %520 : f32 to vector<8x8xf32>
    %524 = arith.mulf %523, %522 : vector<8x8xf32>
    %525 = arith.addf %519, %524 : vector<8x8xf32>
    %c82 = arith.constant 82 : index
    %526 = memref.load %arg1[%c82] : memref<148xf32, #tpu.memory_space<smem>>
    %527 = vector.extract_strided_slice %1 {offsets = [1, 1, 0], sizes = [1, 8, 8], strides = [1, 1, 1]} : vector<4x10x10xf32> to vector<1x8x8xf32>
    %528 = vector.shape_cast %527 : vector<1x8x8xf32> to vector<8x8xf32>
    %529 = vector.broadcast %526 : f32 to vector<8x8xf32>
    %530 = arith.mulf %529, %528 : vector<8x8xf32>
    %531 = arith.addf %525, %530 : vector<8x8xf32>
    %c83 = arith.constant 83 : index
    %532 = memref.load %arg1[%c83] : memref<148xf32, #tpu.memory_space<smem>>
    %533 = vector.extract_strided_slice %3 {offsets = [1, 1, 0], sizes = [1, 8, 8], strides = [1, 1, 1]} : vector<4x10x10xf32> to vector<1x8x8xf32>
    %534 = vector.shape_cast %533 : vector<1x8x8xf32> to vector<8x8xf32>
    %535 = vector.broadcast %532 : f32 to vector<8x8xf32>
    %536 = arith.mulf %535, %534 : vector<8x8xf32>
    %537 = arith.addf %531, %536 : vector<8x8xf32>
    %c84 = arith.constant 84 : index
    %538 = memref.load %arg1[%c84] : memref<148xf32, #tpu.memory_space<smem>>
    %539 = vector.extract_strided_slice %1 {offsets = [1, 1, 1], sizes = [1, 8, 8], strides = [1, 1, 1]} : vector<4x10x10xf32> to vector<1x8x8xf32>
    %540 = vector.shape_cast %539 : vector<1x8x8xf32> to vector<8x8xf32>
    %541 = vector.broadcast %538 : f32 to vector<8x8xf32>
    %542 = arith.mulf %541, %540 : vector<8x8xf32>
    %543 = arith.addf %537, %542 : vector<8x8xf32>
    %c85 = arith.constant 85 : index
    %544 = memref.load %arg1[%c85] : memref<148xf32, #tpu.memory_space<smem>>
    %545 = vector.extract_strided_slice %3 {offsets = [1, 1, 1], sizes = [1, 8, 8], strides = [1, 1, 1]} : vector<4x10x10xf32> to vector<1x8x8xf32>
    %546 = vector.shape_cast %545 : vector<1x8x8xf32> to vector<8x8xf32>
    %547 = vector.broadcast %544 : f32 to vector<8x8xf32>
    %548 = arith.mulf %547, %546 : vector<8x8xf32>
    %549 = arith.addf %543, %548 : vector<8x8xf32>
    %c86 = arith.constant 86 : index
    %550 = memref.load %arg1[%c86] : memref<148xf32, #tpu.memory_space<smem>>
    %551 = vector.extract_strided_slice %1 {offsets = [1, 1, 2], sizes = [1, 8, 8], strides = [1, 1, 1]} : vector<4x10x10xf32> to vector<1x8x8xf32>
    %552 = vector.shape_cast %551 : vector<1x8x8xf32> to vector<8x8xf32>
    %553 = vector.broadcast %550 : f32 to vector<8x8xf32>
    %554 = arith.mulf %553, %552 : vector<8x8xf32>
    %555 = arith.addf %549, %554 : vector<8x8xf32>
    %c87 = arith.constant 87 : index
    %556 = memref.load %arg1[%c87] : memref<148xf32, #tpu.memory_space<smem>>
    %557 = vector.extract_strided_slice %5 {offsets = [1, 1, 0], sizes = [1, 8, 8], strides = [1, 1, 1]} : vector<4x10x10xf32> to vector<1x8x8xf32>
    %558 = vector.shape_cast %557 : vector<1x8x8xf32> to vector<8x8xf32>
    %559 = vector.broadcast %556 : f32 to vector<8x8xf32>
    %560 = arith.mulf %559, %558 : vector<8x8xf32>
    %561 = arith.addf %555, %560 : vector<8x8xf32>
    %c88 = arith.constant 88 : index
    %562 = memref.load %arg1[%c88] : memref<148xf32, #tpu.memory_space<smem>>
    %563 = vector.extract_strided_slice %7 {offsets = [1, 1, 0], sizes = [1, 8, 8], strides = [1, 1, 1]} : vector<4x10x10xf32> to vector<1x8x8xf32>
    %564 = vector.shape_cast %563 : vector<1x8x8xf32> to vector<8x8xf32>
    %565 = vector.broadcast %562 : f32 to vector<8x8xf32>
    %566 = arith.mulf %565, %564 : vector<8x8xf32>
    %567 = arith.addf %561, %566 : vector<8x8xf32>
    %c89 = arith.constant 89 : index
    %568 = memref.load %arg1[%c89] : memref<148xf32, #tpu.memory_space<smem>>
    %569 = vector.extract_strided_slice %5 {offsets = [1, 1, 1], sizes = [1, 8, 8], strides = [1, 1, 1]} : vector<4x10x10xf32> to vector<1x8x8xf32>
    %570 = vector.shape_cast %569 : vector<1x8x8xf32> to vector<8x8xf32>
    %571 = vector.broadcast %568 : f32 to vector<8x8xf32>
    %572 = arith.mulf %571, %570 : vector<8x8xf32>
    %573 = arith.addf %567, %572 : vector<8x8xf32>
    %c90 = arith.constant 90 : index
    %574 = memref.load %arg1[%c90] : memref<148xf32, #tpu.memory_space<smem>>
    %575 = vector.extract_strided_slice %7 {offsets = [1, 1, 1], sizes = [1, 8, 8], strides = [1, 1, 1]} : vector<4x10x10xf32> to vector<1x8x8xf32>
    %576 = vector.shape_cast %575 : vector<1x8x8xf32> to vector<8x8xf32>
    %577 = vector.broadcast %574 : f32 to vector<8x8xf32>
    %578 = arith.mulf %577, %576 : vector<8x8xf32>
    %579 = arith.addf %573, %578 : vector<8x8xf32>
    %c91 = arith.constant 91 : index
    %580 = memref.load %arg1[%c91] : memref<148xf32, #tpu.memory_space<smem>>
    %581 = vector.extract_strided_slice %5 {offsets = [1, 1, 2], sizes = [1, 8, 8], strides = [1, 1, 1]} : vector<4x10x10xf32> to vector<1x8x8xf32>
    %582 = vector.shape_cast %581 : vector<1x8x8xf32> to vector<8x8xf32>
    %583 = vector.broadcast %580 : f32 to vector<8x8xf32>
    %584 = arith.mulf %583, %582 : vector<8x8xf32>
    %585 = arith.addf %579, %584 : vector<8x8xf32>
    %c92 = arith.constant 92 : index
    %586 = memref.load %arg1[%c92] : memref<148xf32, #tpu.memory_space<smem>>
    %587 = vector.extract_strided_slice %1 {offsets = [1, 2, 0], sizes = [1, 8, 8], strides = [1, 1, 1]} : vector<4x10x10xf32> to vector<1x8x8xf32>
    %588 = vector.shape_cast %587 : vector<1x8x8xf32> to vector<8x8xf32>
    %589 = vector.broadcast %586 : f32 to vector<8x8xf32>
    %590 = arith.mulf %589, %588 : vector<8x8xf32>
    %591 = arith.addf %585, %590 : vector<8x8xf32>
    %c93 = arith.constant 93 : index
    %592 = memref.load %arg1[%c93] : memref<148xf32, #tpu.memory_space<smem>>
    %593 = vector.extract_strided_slice %3 {offsets = [1, 2, 0], sizes = [1, 8, 8], strides = [1, 1, 1]} : vector<4x10x10xf32> to vector<1x8x8xf32>
    %594 = vector.shape_cast %593 : vector<1x8x8xf32> to vector<8x8xf32>
    %595 = vector.broadcast %592 : f32 to vector<8x8xf32>
    %596 = arith.mulf %595, %594 : vector<8x8xf32>
    %597 = arith.addf %591, %596 : vector<8x8xf32>
    %c94 = arith.constant 94 : index
    %598 = memref.load %arg1[%c94] : memref<148xf32, #tpu.memory_space<smem>>
    %599 = vector.extract_strided_slice %1 {offsets = [1, 2, 1], sizes = [1, 8, 8], strides = [1, 1, 1]} : vector<4x10x10xf32> to vector<1x8x8xf32>
    %600 = vector.shape_cast %599 : vector<1x8x8xf32> to vector<8x8xf32>
    %601 = vector.broadcast %598 : f32 to vector<8x8xf32>
    %602 = arith.mulf %601, %600 : vector<8x8xf32>
    %603 = arith.addf %597, %602 : vector<8x8xf32>
    %c95 = arith.constant 95 : index
    %604 = memref.load %arg1[%c95] : memref<148xf32, #tpu.memory_space<smem>>
    %605 = vector.extract_strided_slice %3 {offsets = [1, 2, 1], sizes = [1, 8, 8], strides = [1, 1, 1]} : vector<4x10x10xf32> to vector<1x8x8xf32>
    %606 = vector.shape_cast %605 : vector<1x8x8xf32> to vector<8x8xf32>
    %607 = vector.broadcast %604 : f32 to vector<8x8xf32>
    %608 = arith.mulf %607, %606 : vector<8x8xf32>
    %609 = arith.addf %603, %608 : vector<8x8xf32>
    %c96 = arith.constant 96 : index
    %610 = memref.load %arg1[%c96] : memref<148xf32, #tpu.memory_space<smem>>
    %611 = vector.extract_strided_slice %1 {offsets = [1, 2, 2], sizes = [1, 8, 8], strides = [1, 1, 1]} : vector<4x10x10xf32> to vector<1x8x8xf32>
    %612 = vector.shape_cast %611 : vector<1x8x8xf32> to vector<8x8xf32>
    %613 = vector.broadcast %610 : f32 to vector<8x8xf32>
    %614 = arith.mulf %613, %612 : vector<8x8xf32>
    %615 = arith.addf %609, %614 : vector<8x8xf32>
    %c97 = arith.constant 97 : index
    %616 = memref.load %arg1[%c97] : memref<148xf32, #tpu.memory_space<smem>>
    %617 = vector.extract_strided_slice %1 {offsets = [2, 0, 0], sizes = [1, 8, 8], strides = [1, 1, 1]} : vector<4x10x10xf32> to vector<1x8x8xf32>
    %618 = vector.shape_cast %617 : vector<1x8x8xf32> to vector<8x8xf32>
    %619 = vector.broadcast %616 : f32 to vector<8x8xf32>
    %620 = arith.mulf %619, %618 : vector<8x8xf32>
    %621 = arith.addf %615, %620 : vector<8x8xf32>
    %c98 = arith.constant 98 : index
    %622 = memref.load %arg1[%c98] : memref<148xf32, #tpu.memory_space<smem>>
    %623 = vector.extract_strided_slice %3 {offsets = [2, 0, 0], sizes = [1, 8, 8], strides = [1, 1, 1]} : vector<4x10x10xf32> to vector<1x8x8xf32>
    %624 = vector.shape_cast %623 : vector<1x8x8xf32> to vector<8x8xf32>
    %625 = vector.broadcast %622 : f32 to vector<8x8xf32>
    %626 = arith.mulf %625, %624 : vector<8x8xf32>
    %627 = arith.addf %621, %626 : vector<8x8xf32>
    %c99 = arith.constant 99 : index
    %628 = memref.load %arg1[%c99] : memref<148xf32, #tpu.memory_space<smem>>
    %629 = vector.extract_strided_slice %1 {offsets = [2, 0, 1], sizes = [1, 8, 8], strides = [1, 1, 1]} : vector<4x10x10xf32> to vector<1x8x8xf32>
    %630 = vector.shape_cast %629 : vector<1x8x8xf32> to vector<8x8xf32>
    %631 = vector.broadcast %628 : f32 to vector<8x8xf32>
    %632 = arith.mulf %631, %630 : vector<8x8xf32>
    %633 = arith.addf %627, %632 : vector<8x8xf32>
    %c100 = arith.constant 100 : index
    %634 = memref.load %arg1[%c100] : memref<148xf32, #tpu.memory_space<smem>>
    %635 = vector.extract_strided_slice %3 {offsets = [2, 0, 1], sizes = [1, 8, 8], strides = [1, 1, 1]} : vector<4x10x10xf32> to vector<1x8x8xf32>
    %636 = vector.shape_cast %635 : vector<1x8x8xf32> to vector<8x8xf32>
    %637 = vector.broadcast %634 : f32 to vector<8x8xf32>
    %638 = arith.mulf %637, %636 : vector<8x8xf32>
    %639 = arith.addf %633, %638 : vector<8x8xf32>
    %c101 = arith.constant 101 : index
    %640 = memref.load %arg1[%c101] : memref<148xf32, #tpu.memory_space<smem>>
    %641 = vector.extract_strided_slice %1 {offsets = [2, 0, 2], sizes = [1, 8, 8], strides = [1, 1, 1]} : vector<4x10x10xf32> to vector<1x8x8xf32>
    %642 = vector.shape_cast %641 : vector<1x8x8xf32> to vector<8x8xf32>
    %643 = vector.broadcast %640 : f32 to vector<8x8xf32>
    %644 = arith.mulf %643, %642 : vector<8x8xf32>
    %645 = arith.addf %639, %644 : vector<8x8xf32>
    %c102 = arith.constant 102 : index
    %646 = memref.load %arg1[%c102] : memref<148xf32, #tpu.memory_space<smem>>
    %647 = vector.extract_strided_slice %5 {offsets = [2, 0, 0], sizes = [1, 8, 8], strides = [1, 1, 1]} : vector<4x10x10xf32> to vector<1x8x8xf32>
    %648 = vector.shape_cast %647 : vector<1x8x8xf32> to vector<8x8xf32>
    %649 = vector.broadcast %646 : f32 to vector<8x8xf32>
    %650 = arith.mulf %649, %648 : vector<8x8xf32>
    %651 = arith.addf %645, %650 : vector<8x8xf32>
    %c103 = arith.constant 103 : index
    %652 = memref.load %arg1[%c103] : memref<148xf32, #tpu.memory_space<smem>>
    %653 = vector.extract_strided_slice %7 {offsets = [2, 0, 0], sizes = [1, 8, 8], strides = [1, 1, 1]} : vector<4x10x10xf32> to vector<1x8x8xf32>
    %654 = vector.shape_cast %653 : vector<1x8x8xf32> to vector<8x8xf32>
    %655 = vector.broadcast %652 : f32 to vector<8x8xf32>
    %656 = arith.mulf %655, %654 : vector<8x8xf32>
    %657 = arith.addf %651, %656 : vector<8x8xf32>
    %c104 = arith.constant 104 : index
    %658 = memref.load %arg1[%c104] : memref<148xf32, #tpu.memory_space<smem>>
    %659 = vector.extract_strided_slice %5 {offsets = [2, 0, 1], sizes = [1, 8, 8], strides = [1, 1, 1]} : vector<4x10x10xf32> to vector<1x8x8xf32>
    %660 = vector.shape_cast %659 : vector<1x8x8xf32> to vector<8x8xf32>
    %661 = vector.broadcast %658 : f32 to vector<8x8xf32>
    %662 = arith.mulf %661, %660 : vector<8x8xf32>
    %663 = arith.addf %657, %662 : vector<8x8xf32>
    %c105 = arith.constant 105 : index
    %664 = memref.load %arg1[%c105] : memref<148xf32, #tpu.memory_space<smem>>
    %665 = vector.extract_strided_slice %7 {offsets = [2, 0, 1], sizes = [1, 8, 8], strides = [1, 1, 1]} : vector<4x10x10xf32> to vector<1x8x8xf32>
    %666 = vector.shape_cast %665 : vector<1x8x8xf32> to vector<8x8xf32>
    %667 = vector.broadcast %664 : f32 to vector<8x8xf32>
    %668 = arith.mulf %667, %666 : vector<8x8xf32>
    %669 = arith.addf %663, %668 : vector<8x8xf32>
    %c106 = arith.constant 106 : index
    %670 = memref.load %arg1[%c106] : memref<148xf32, #tpu.memory_space<smem>>
    %671 = vector.extract_strided_slice %5 {offsets = [2, 0, 2], sizes = [1, 8, 8], strides = [1, 1, 1]} : vector<4x10x10xf32> to vector<1x8x8xf32>
    %672 = vector.shape_cast %671 : vector<1x8x8xf32> to vector<8x8xf32>
    %673 = vector.broadcast %670 : f32 to vector<8x8xf32>
    %674 = arith.mulf %673, %672 : vector<8x8xf32>
    %675 = arith.addf %669, %674 : vector<8x8xf32>
    %c107 = arith.constant 107 : index
    %676 = memref.load %arg1[%c107] : memref<148xf32, #tpu.memory_space<smem>>
    %677 = vector.extract_strided_slice %1 {offsets = [2, 1, 0], sizes = [1, 8, 8], strides = [1, 1, 1]} : vector<4x10x10xf32> to vector<1x8x8xf32>
    %678 = vector.shape_cast %677 : vector<1x8x8xf32> to vector<8x8xf32>
    %679 = vector.broadcast %676 : f32 to vector<8x8xf32>
    %680 = arith.mulf %679, %678 : vector<8x8xf32>
    %681 = arith.addf %675, %680 : vector<8x8xf32>
    %c108 = arith.constant 108 : index
    %682 = memref.load %arg1[%c108] : memref<148xf32, #tpu.memory_space<smem>>
    %683 = vector.extract_strided_slice %3 {offsets = [2, 1, 0], sizes = [1, 8, 8], strides = [1, 1, 1]} : vector<4x10x10xf32> to vector<1x8x8xf32>
    %684 = vector.shape_cast %683 : vector<1x8x8xf32> to vector<8x8xf32>
    %685 = vector.broadcast %682 : f32 to vector<8x8xf32>
    %686 = arith.mulf %685, %684 : vector<8x8xf32>
    %687 = arith.addf %681, %686 : vector<8x8xf32>
    %c109 = arith.constant 109 : index
    %688 = memref.load %arg1[%c109] : memref<148xf32, #tpu.memory_space<smem>>
    %689 = vector.extract_strided_slice %1 {offsets = [2, 1, 1], sizes = [1, 8, 8], strides = [1, 1, 1]} : vector<4x10x10xf32> to vector<1x8x8xf32>
    %690 = vector.shape_cast %689 : vector<1x8x8xf32> to vector<8x8xf32>
    %691 = vector.broadcast %688 : f32 to vector<8x8xf32>
    %692 = arith.mulf %691, %690 : vector<8x8xf32>
    %693 = arith.addf %687, %692 : vector<8x8xf32>
    %c110 = arith.constant 110 : index
    %694 = memref.load %arg1[%c110] : memref<148xf32, #tpu.memory_space<smem>>
    %695 = vector.extract_strided_slice %3 {offsets = [2, 1, 1], sizes = [1, 8, 8], strides = [1, 1, 1]} : vector<4x10x10xf32> to vector<1x8x8xf32>
    %696 = vector.shape_cast %695 : vector<1x8x8xf32> to vector<8x8xf32>
    %697 = vector.broadcast %694 : f32 to vector<8x8xf32>
    %698 = arith.mulf %697, %696 : vector<8x8xf32>
    %699 = arith.addf %693, %698 : vector<8x8xf32>
    %c111 = arith.constant 111 : index
    %700 = memref.load %arg1[%c111] : memref<148xf32, #tpu.memory_space<smem>>
    %701 = vector.extract_strided_slice %1 {offsets = [2, 1, 2], sizes = [1, 8, 8], strides = [1, 1, 1]} : vector<4x10x10xf32> to vector<1x8x8xf32>
    %702 = vector.shape_cast %701 : vector<1x8x8xf32> to vector<8x8xf32>
    %703 = vector.broadcast %700 : f32 to vector<8x8xf32>
    %704 = arith.mulf %703, %702 : vector<8x8xf32>
    %705 = arith.addf %699, %704 : vector<8x8xf32>
    %c112 = arith.constant 112 : index
    %706 = memref.load %arg1[%c112] : memref<148xf32, #tpu.memory_space<smem>>
    %707 = vector.extract_strided_slice %5 {offsets = [2, 1, 0], sizes = [1, 8, 8], strides = [1, 1, 1]} : vector<4x10x10xf32> to vector<1x8x8xf32>
    %708 = vector.shape_cast %707 : vector<1x8x8xf32> to vector<8x8xf32>
    %709 = vector.broadcast %706 : f32 to vector<8x8xf32>
    %710 = arith.mulf %709, %708 : vector<8x8xf32>
    %711 = arith.addf %705, %710 : vector<8x8xf32>
    %c113 = arith.constant 113 : index
    %712 = memref.load %arg1[%c113] : memref<148xf32, #tpu.memory_space<smem>>
    %713 = vector.extract_strided_slice %7 {offsets = [2, 1, 0], sizes = [1, 8, 8], strides = [1, 1, 1]} : vector<4x10x10xf32> to vector<1x8x8xf32>
    %714 = vector.shape_cast %713 : vector<1x8x8xf32> to vector<8x8xf32>
    %715 = vector.broadcast %712 : f32 to vector<8x8xf32>
    %716 = arith.mulf %715, %714 : vector<8x8xf32>
    %717 = arith.addf %711, %716 : vector<8x8xf32>
    %c114 = arith.constant 114 : index
    %718 = memref.load %arg1[%c114] : memref<148xf32, #tpu.memory_space<smem>>
    %719 = vector.extract_strided_slice %5 {offsets = [2, 1, 1], sizes = [1, 8, 8], strides = [1, 1, 1]} : vector<4x10x10xf32> to vector<1x8x8xf32>
    %720 = vector.shape_cast %719 : vector<1x8x8xf32> to vector<8x8xf32>
    %721 = vector.broadcast %718 : f32 to vector<8x8xf32>
    %722 = arith.mulf %721, %720 : vector<8x8xf32>
    %723 = arith.addf %717, %722 : vector<8x8xf32>
    %c115 = arith.constant 115 : index
    %724 = memref.load %arg1[%c115] : memref<148xf32, #tpu.memory_space<smem>>
    %725 = vector.extract_strided_slice %7 {offsets = [2, 1, 1], sizes = [1, 8, 8], strides = [1, 1, 1]} : vector<4x10x10xf32> to vector<1x8x8xf32>
    %726 = vector.shape_cast %725 : vector<1x8x8xf32> to vector<8x8xf32>
    %727 = vector.broadcast %724 : f32 to vector<8x8xf32>
    %728 = arith.mulf %727, %726 : vector<8x8xf32>
    %729 = arith.addf %723, %728 : vector<8x8xf32>
    %c116 = arith.constant 116 : index
    %730 = memref.load %arg1[%c116] : memref<148xf32, #tpu.memory_space<smem>>
    %731 = vector.extract_strided_slice %5 {offsets = [2, 1, 2], sizes = [1, 8, 8], strides = [1, 1, 1]} : vector<4x10x10xf32> to vector<1x8x8xf32>
    %732 = vector.shape_cast %731 : vector<1x8x8xf32> to vector<8x8xf32>
    %733 = vector.broadcast %730 : f32 to vector<8x8xf32>
    %734 = arith.mulf %733, %732 : vector<8x8xf32>
    %735 = arith.addf %729, %734 : vector<8x8xf32>
    %c117 = arith.constant 117 : index
    %736 = memref.load %arg1[%c117] : memref<148xf32, #tpu.memory_space<smem>>
    %737 = vector.extract_strided_slice %1 {offsets = [2, 2, 0], sizes = [1, 8, 8], strides = [1, 1, 1]} : vector<4x10x10xf32> to vector<1x8x8xf32>
    %738 = vector.shape_cast %737 : vector<1x8x8xf32> to vector<8x8xf32>
    %739 = vector.broadcast %736 : f32 to vector<8x8xf32>
    %740 = arith.mulf %739, %738 : vector<8x8xf32>
    %741 = arith.addf %735, %740 : vector<8x8xf32>
    %c118 = arith.constant 118 : index
    %742 = memref.load %arg1[%c118] : memref<148xf32, #tpu.memory_space<smem>>
    %743 = vector.extract_strided_slice %3 {offsets = [2, 2, 0], sizes = [1, 8, 8], strides = [1, 1, 1]} : vector<4x10x10xf32> to vector<1x8x8xf32>
    %744 = vector.shape_cast %743 : vector<1x8x8xf32> to vector<8x8xf32>
    %745 = vector.broadcast %742 : f32 to vector<8x8xf32>
    %746 = arith.mulf %745, %744 : vector<8x8xf32>
    %747 = arith.addf %741, %746 : vector<8x8xf32>
    %c119 = arith.constant 119 : index
    %748 = memref.load %arg1[%c119] : memref<148xf32, #tpu.memory_space<smem>>
    %749 = vector.extract_strided_slice %1 {offsets = [2, 2, 1], sizes = [1, 8, 8], strides = [1, 1, 1]} : vector<4x10x10xf32> to vector<1x8x8xf32>
    %750 = vector.shape_cast %749 : vector<1x8x8xf32> to vector<8x8xf32>
    %751 = vector.broadcast %748 : f32 to vector<8x8xf32>
    %752 = arith.mulf %751, %750 : vector<8x8xf32>
    %753 = arith.addf %747, %752 : vector<8x8xf32>
    %c120 = arith.constant 120 : index
    %754 = memref.load %arg1[%c120] : memref<148xf32, #tpu.memory_space<smem>>
    %755 = vector.extract_strided_slice %3 {offsets = [2, 2, 1], sizes = [1, 8, 8], strides = [1, 1, 1]} : vector<4x10x10xf32> to vector<1x8x8xf32>
    %756 = vector.shape_cast %755 : vector<1x8x8xf32> to vector<8x8xf32>
    %757 = vector.broadcast %754 : f32 to vector<8x8xf32>
    %758 = arith.mulf %757, %756 : vector<8x8xf32>
    %759 = arith.addf %753, %758 : vector<8x8xf32>
    %c121 = arith.constant 121 : index
    %760 = memref.load %arg1[%c121] : memref<148xf32, #tpu.memory_space<smem>>
    %761 = vector.extract_strided_slice %1 {offsets = [2, 2, 2], sizes = [1, 8, 8], strides = [1, 1, 1]} : vector<4x10x10xf32> to vector<1x8x8xf32>
    %762 = vector.shape_cast %761 : vector<1x8x8xf32> to vector<8x8xf32>
    %763 = vector.broadcast %760 : f32 to vector<8x8xf32>
    %764 = arith.mulf %763, %762 : vector<8x8xf32>
    %765 = arith.addf %759, %764 : vector<8x8xf32>
    %c122 = arith.constant 122 : index
    %766 = memref.load %arg1[%c122] : memref<148xf32, #tpu.memory_space<smem>>
    %767 = vector.extract_strided_slice %1 {offsets = [3, 0, 0], sizes = [1, 8, 8], strides = [1, 1, 1]} : vector<4x10x10xf32> to vector<1x8x8xf32>
    %768 = vector.shape_cast %767 : vector<1x8x8xf32> to vector<8x8xf32>
    %769 = vector.broadcast %766 : f32 to vector<8x8xf32>
    %770 = arith.mulf %769, %768 : vector<8x8xf32>
    %771 = arith.addf %765, %770 : vector<8x8xf32>
    %c123 = arith.constant 123 : index
    %772 = memref.load %arg1[%c123] : memref<148xf32, #tpu.memory_space<smem>>
    %773 = vector.extract_strided_slice %3 {offsets = [3, 0, 0], sizes = [1, 8, 8], strides = [1, 1, 1]} : vector<4x10x10xf32> to vector<1x8x8xf32>
    %774 = vector.shape_cast %773 : vector<1x8x8xf32> to vector<8x8xf32>
    %775 = vector.broadcast %772 : f32 to vector<8x8xf32>
    %776 = arith.mulf %775, %774 : vector<8x8xf32>
    %777 = arith.addf %771, %776 : vector<8x8xf32>
    %c124 = arith.constant 124 : index
    %778 = memref.load %arg1[%c124] : memref<148xf32, #tpu.memory_space<smem>>
    %779 = vector.extract_strided_slice %1 {offsets = [3, 0, 1], sizes = [1, 8, 8], strides = [1, 1, 1]} : vector<4x10x10xf32> to vector<1x8x8xf32>
    %780 = vector.shape_cast %779 : vector<1x8x8xf32> to vector<8x8xf32>
    %781 = vector.broadcast %778 : f32 to vector<8x8xf32>
    %782 = arith.mulf %781, %780 : vector<8x8xf32>
    %783 = arith.addf %777, %782 : vector<8x8xf32>
    %c125 = arith.constant 125 : index
    %784 = memref.load %arg1[%c125] : memref<148xf32, #tpu.memory_space<smem>>
    %785 = vector.extract_strided_slice %3 {offsets = [3, 0, 1], sizes = [1, 8, 8], strides = [1, 1, 1]} : vector<4x10x10xf32> to vector<1x8x8xf32>
    %786 = vector.shape_cast %785 : vector<1x8x8xf32> to vector<8x8xf32>
    %787 = vector.broadcast %784 : f32 to vector<8x8xf32>
    %788 = arith.mulf %787, %786 : vector<8x8xf32>
    %789 = arith.addf %783, %788 : vector<8x8xf32>
    %c126 = arith.constant 126 : index
    %790 = memref.load %arg1[%c126] : memref<148xf32, #tpu.memory_space<smem>>
    %791 = vector.extract_strided_slice %1 {offsets = [3, 0, 2], sizes = [1, 8, 8], strides = [1, 1, 1]} : vector<4x10x10xf32> to vector<1x8x8xf32>
    %792 = vector.shape_cast %791 : vector<1x8x8xf32> to vector<8x8xf32>
    %793 = vector.broadcast %790 : f32 to vector<8x8xf32>
    %794 = arith.mulf %793, %792 : vector<8x8xf32>
    %795 = arith.addf %789, %794 : vector<8x8xf32>
    %c127 = arith.constant 127 : index
    %796 = memref.load %arg1[%c127] : memref<148xf32, #tpu.memory_space<smem>>
    %797 = vector.extract_strided_slice %5 {offsets = [3, 0, 0], sizes = [1, 8, 8], strides = [1, 1, 1]} : vector<4x10x10xf32> to vector<1x8x8xf32>
    %798 = vector.shape_cast %797 : vector<1x8x8xf32> to vector<8x8xf32>
    %799 = vector.broadcast %796 : f32 to vector<8x8xf32>
    %800 = arith.mulf %799, %798 : vector<8x8xf32>
    %801 = arith.addf %795, %800 : vector<8x8xf32>
    %c128 = arith.constant 128 : index
    %802 = memref.load %arg1[%c128] : memref<148xf32, #tpu.memory_space<smem>>
    %803 = vector.extract_strided_slice %7 {offsets = [3, 0, 0], sizes = [1, 8, 8], strides = [1, 1, 1]} : vector<4x10x10xf32> to vector<1x8x8xf32>
    %804 = vector.shape_cast %803 : vector<1x8x8xf32> to vector<8x8xf32>
    %805 = vector.broadcast %802 : f32 to vector<8x8xf32>
    %806 = arith.mulf %805, %804 : vector<8x8xf32>
    %807 = arith.addf %801, %806 : vector<8x8xf32>
    %c129 = arith.constant 129 : index
    %808 = memref.load %arg1[%c129] : memref<148xf32, #tpu.memory_space<smem>>
    %809 = vector.extract_strided_slice %5 {offsets = [3, 0, 1], sizes = [1, 8, 8], strides = [1, 1, 1]} : vector<4x10x10xf32> to vector<1x8x8xf32>
    %810 = vector.shape_cast %809 : vector<1x8x8xf32> to vector<8x8xf32>
    %811 = vector.broadcast %808 : f32 to vector<8x8xf32>
    %812 = arith.mulf %811, %810 : vector<8x8xf32>
    %813 = arith.addf %807, %812 : vector<8x8xf32>
    %c130 = arith.constant 130 : index
    %814 = memref.load %arg1[%c130] : memref<148xf32, #tpu.memory_space<smem>>
    %815 = vector.extract_strided_slice %7 {offsets = [3, 0, 1], sizes = [1, 8, 8], strides = [1, 1, 1]} : vector<4x10x10xf32> to vector<1x8x8xf32>
    %816 = vector.shape_cast %815 : vector<1x8x8xf32> to vector<8x8xf32>
    %817 = vector.broadcast %814 : f32 to vector<8x8xf32>
    %818 = arith.mulf %817, %816 : vector<8x8xf32>
    %819 = arith.addf %813, %818 : vector<8x8xf32>
    %c131 = arith.constant 131 : index
    %820 = memref.load %arg1[%c131] : memref<148xf32, #tpu.memory_space<smem>>
    %821 = vector.extract_strided_slice %5 {offsets = [3, 0, 2], sizes = [1, 8, 8], strides = [1, 1, 1]} : vector<4x10x10xf32> to vector<1x8x8xf32>
    %822 = vector.shape_cast %821 : vector<1x8x8xf32> to vector<8x8xf32>
    %823 = vector.broadcast %820 : f32 to vector<8x8xf32>
    %824 = arith.mulf %823, %822 : vector<8x8xf32>
    %825 = arith.addf %819, %824 : vector<8x8xf32>
    %c132 = arith.constant 132 : index
    %826 = memref.load %arg1[%c132] : memref<148xf32, #tpu.memory_space<smem>>
    %827 = vector.extract_strided_slice %1 {offsets = [3, 1, 0], sizes = [1, 8, 8], strides = [1, 1, 1]} : vector<4x10x10xf32> to vector<1x8x8xf32>
    %828 = vector.shape_cast %827 : vector<1x8x8xf32> to vector<8x8xf32>
    %829 = vector.broadcast %826 : f32 to vector<8x8xf32>
    %830 = arith.mulf %829, %828 : vector<8x8xf32>
    %831 = arith.addf %825, %830 : vector<8x8xf32>
    %c133 = arith.constant 133 : index
    %832 = memref.load %arg1[%c133] : memref<148xf32, #tpu.memory_space<smem>>
    %833 = vector.extract_strided_slice %3 {offsets = [3, 1, 0], sizes = [1, 8, 8], strides = [1, 1, 1]} : vector<4x10x10xf32> to vector<1x8x8xf32>
    %834 = vector.shape_cast %833 : vector<1x8x8xf32> to vector<8x8xf32>
    %835 = vector.broadcast %832 : f32 to vector<8x8xf32>
    %836 = arith.mulf %835, %834 : vector<8x8xf32>
    %837 = arith.addf %831, %836 : vector<8x8xf32>
    %c134 = arith.constant 134 : index
    %838 = memref.load %arg1[%c134] : memref<148xf32, #tpu.memory_space<smem>>
    %839 = vector.extract_strided_slice %1 {offsets = [3, 1, 1], sizes = [1, 8, 8], strides = [1, 1, 1]} : vector<4x10x10xf32> to vector<1x8x8xf32>
    %840 = vector.shape_cast %839 : vector<1x8x8xf32> to vector<8x8xf32>
    %841 = vector.broadcast %838 : f32 to vector<8x8xf32>
    %842 = arith.mulf %841, %840 : vector<8x8xf32>
    %843 = arith.addf %837, %842 : vector<8x8xf32>
    %c135 = arith.constant 135 : index
    %844 = memref.load %arg1[%c135] : memref<148xf32, #tpu.memory_space<smem>>
    %845 = vector.extract_strided_slice %3 {offsets = [3, 1, 1], sizes = [1, 8, 8], strides = [1, 1, 1]} : vector<4x10x10xf32> to vector<1x8x8xf32>
    %846 = vector.shape_cast %845 : vector<1x8x8xf32> to vector<8x8xf32>
    %847 = vector.broadcast %844 : f32 to vector<8x8xf32>
    %848 = arith.mulf %847, %846 : vector<8x8xf32>
    %849 = arith.addf %843, %848 : vector<8x8xf32>
    %c136 = arith.constant 136 : index
    %850 = memref.load %arg1[%c136] : memref<148xf32, #tpu.memory_space<smem>>
    %851 = vector.extract_strided_slice %1 {offsets = [3, 1, 2], sizes = [1, 8, 8], strides = [1, 1, 1]} : vector<4x10x10xf32> to vector<1x8x8xf32>
    %852 = vector.shape_cast %851 : vector<1x8x8xf32> to vector<8x8xf32>
    %853 = vector.broadcast %850 : f32 to vector<8x8xf32>
    %854 = arith.mulf %853, %852 : vector<8x8xf32>
    %855 = arith.addf %849, %854 : vector<8x8xf32>
    %c137 = arith.constant 137 : index
    %856 = memref.load %arg1[%c137] : memref<148xf32, #tpu.memory_space<smem>>
    %857 = vector.extract_strided_slice %5 {offsets = [3, 1, 0], sizes = [1, 8, 8], strides = [1, 1, 1]} : vector<4x10x10xf32> to vector<1x8x8xf32>
    %858 = vector.shape_cast %857 : vector<1x8x8xf32> to vector<8x8xf32>
    %859 = vector.broadcast %856 : f32 to vector<8x8xf32>
    %860 = arith.mulf %859, %858 : vector<8x8xf32>
    %861 = arith.addf %855, %860 : vector<8x8xf32>
    %c138 = arith.constant 138 : index
    %862 = memref.load %arg1[%c138] : memref<148xf32, #tpu.memory_space<smem>>
    %863 = vector.extract_strided_slice %7 {offsets = [3, 1, 0], sizes = [1, 8, 8], strides = [1, 1, 1]} : vector<4x10x10xf32> to vector<1x8x8xf32>
    %864 = vector.shape_cast %863 : vector<1x8x8xf32> to vector<8x8xf32>
    %865 = vector.broadcast %862 : f32 to vector<8x8xf32>
    %866 = arith.mulf %865, %864 : vector<8x8xf32>
    %867 = arith.addf %861, %866 : vector<8x8xf32>
    %c139 = arith.constant 139 : index
    %868 = memref.load %arg1[%c139] : memref<148xf32, #tpu.memory_space<smem>>
    %869 = vector.extract_strided_slice %5 {offsets = [3, 1, 1], sizes = [1, 8, 8], strides = [1, 1, 1]} : vector<4x10x10xf32> to vector<1x8x8xf32>
    %870 = vector.shape_cast %869 : vector<1x8x8xf32> to vector<8x8xf32>
    %871 = vector.broadcast %868 : f32 to vector<8x8xf32>
    %872 = arith.mulf %871, %870 : vector<8x8xf32>
    %873 = arith.addf %867, %872 : vector<8x8xf32>
    %c140 = arith.constant 140 : index
    %874 = memref.load %arg1[%c140] : memref<148xf32, #tpu.memory_space<smem>>
    %875 = vector.extract_strided_slice %7 {offsets = [3, 1, 1], sizes = [1, 8, 8], strides = [1, 1, 1]} : vector<4x10x10xf32> to vector<1x8x8xf32>
    %876 = vector.shape_cast %875 : vector<1x8x8xf32> to vector<8x8xf32>
    %877 = vector.broadcast %874 : f32 to vector<8x8xf32>
    %878 = arith.mulf %877, %876 : vector<8x8xf32>
    %879 = arith.addf %873, %878 : vector<8x8xf32>
    %c141 = arith.constant 141 : index
    %880 = memref.load %arg1[%c141] : memref<148xf32, #tpu.memory_space<smem>>
    %881 = vector.extract_strided_slice %5 {offsets = [3, 1, 2], sizes = [1, 8, 8], strides = [1, 1, 1]} : vector<4x10x10xf32> to vector<1x8x8xf32>
    %882 = vector.shape_cast %881 : vector<1x8x8xf32> to vector<8x8xf32>
    %883 = vector.broadcast %880 : f32 to vector<8x8xf32>
    %884 = arith.mulf %883, %882 : vector<8x8xf32>
    %885 = arith.addf %879, %884 : vector<8x8xf32>
    %c142 = arith.constant 142 : index
    %886 = memref.load %arg1[%c142] : memref<148xf32, #tpu.memory_space<smem>>
    %887 = vector.extract_strided_slice %1 {offsets = [3, 2, 0], sizes = [1, 8, 8], strides = [1, 1, 1]} : vector<4x10x10xf32> to vector<1x8x8xf32>
    %888 = vector.shape_cast %887 : vector<1x8x8xf32> to vector<8x8xf32>
    %889 = vector.broadcast %886 : f32 to vector<8x8xf32>
    %890 = arith.mulf %889, %888 : vector<8x8xf32>
    %891 = arith.addf %885, %890 : vector<8x8xf32>
    %c143 = arith.constant 143 : index
    %892 = memref.load %arg1[%c143] : memref<148xf32, #tpu.memory_space<smem>>
    %893 = vector.extract_strided_slice %3 {offsets = [3, 2, 0], sizes = [1, 8, 8], strides = [1, 1, 1]} : vector<4x10x10xf32> to vector<1x8x8xf32>
    %894 = vector.shape_cast %893 : vector<1x8x8xf32> to vector<8x8xf32>
    %895 = vector.broadcast %892 : f32 to vector<8x8xf32>
    %896 = arith.mulf %895, %894 : vector<8x8xf32>
    %897 = arith.addf %891, %896 : vector<8x8xf32>
    %c144 = arith.constant 144 : index
    %898 = memref.load %arg1[%c144] : memref<148xf32, #tpu.memory_space<smem>>
    %899 = vector.extract_strided_slice %1 {offsets = [3, 2, 1], sizes = [1, 8, 8], strides = [1, 1, 1]} : vector<4x10x10xf32> to vector<1x8x8xf32>
    %900 = vector.shape_cast %899 : vector<1x8x8xf32> to vector<8x8xf32>
    %901 = vector.broadcast %898 : f32 to vector<8x8xf32>
    %902 = arith.mulf %901, %900 : vector<8x8xf32>
    %903 = arith.addf %897, %902 : vector<8x8xf32>
    %c145 = arith.constant 145 : index
    %904 = memref.load %arg1[%c145] : memref<148xf32, #tpu.memory_space<smem>>
    %905 = vector.extract_strided_slice %3 {offsets = [3, 2, 1], sizes = [1, 8, 8], strides = [1, 1, 1]} : vector<4x10x10xf32> to vector<1x8x8xf32>
    %906 = vector.shape_cast %905 : vector<1x8x8xf32> to vector<8x8xf32>
    %907 = vector.broadcast %904 : f32 to vector<8x8xf32>
    %908 = arith.mulf %907, %906 : vector<8x8xf32>
    %909 = arith.addf %903, %908 : vector<8x8xf32>
    %c146 = arith.constant 146 : index
    %910 = memref.load %arg1[%c146] : memref<148xf32, #tpu.memory_space<smem>>
    %911 = vector.extract_strided_slice %1 {offsets = [3, 2, 2], sizes = [1, 8, 8], strides = [1, 1, 1]} : vector<4x10x10xf32> to vector<1x8x8xf32>
    %912 = vector.shape_cast %911 : vector<1x8x8xf32> to vector<8x8xf32>
    %913 = vector.broadcast %910 : f32 to vector<8x8xf32>
    %914 = arith.mulf %913, %912 : vector<8x8xf32>
    %915 = arith.addf %909, %914 : vector<8x8xf32>
    %916 = vector.extract_strided_slice %14 {offsets = [3, 0, 0], sizes = [1, 8, 8], strides = [1, 1, 1]} : vector<4x8x8xf32> to vector<1x8x8xf32>
    %917 = vector.shape_cast %916 : vector<1x8x8xf32> to vector<8x8xf32>
    %cst_35 = arith.constant 0.000000e+00 : f32
    %918 = vector.broadcast %cst_35 : f32 to vector<8x8xf32>
    %919 = arith.maximumf %915, %918 : vector<8x8xf32>
    %920 = arith.addf %917, %919 : vector<8x8xf32>
    %c0_36 = arith.constant 0 : index
    %c3_37 = arith.constant 3 : index
    %c0_38 = arith.constant 0 : index
    %c0_39 = arith.constant 0 : index
    %921 = vector.load %arg3[%c0_36, %c3_37, %c0_38, %c0_39] : memref<1x4x8x8xf32, #tpu.memory_space<vmem>>, vector<1x1x8x8xf32>
    %922 = vector.shape_cast %921 : vector<1x1x8x8xf32> to vector<8x8xf32>
    %923 = vector.shape_cast %920 : vector<8x8xf32> to vector<1x1x8x8xf32>
    tpu.vector_store %arg3[%c0_36, %c3_37, %c0_38, %c0_39], %923 {strides = array<i32>} : memref<1x4x8x8xf32, #tpu.memory_space<vmem>>, vector<1x1x8x8xf32>,
    return
  }
  func.func @transform_0(%arg0: i32) -> i32 {
    %c0_i32 = arith.constant 0 : i32
    %c0_i32_0 = arith.constant 0 : i32
    return %c0_i32 : i32
  }
  func.func @transform_1(%arg0: i32) -> (i32, i32, i32, i32, i32) {
    %c0_i32 = arith.constant 0 : i32
    %c0_i32_0 = arith.constant 0 : i32
    %c0_i32_1 = arith.constant 0 : i32
    %c0_i32_2 = arith.constant 0 : i32
    %c0_i32_3 = arith.constant 0 : i32
    return %arg0, %c0_i32, %c0_i32_0, %c0_i32_1, %c0_i32_2 : i32, i32, i32, i32, i32
  }
  func.func @transform_2(%arg0: i32) -> (i32, i32, i32, i32) {
    %c0_i32 = arith.constant 0 : i32
    %c0_i32_0 = arith.constant 0 : i32
    %c0_i32_1 = arith.constant 0 : i32
    %c0_i32_2 = arith.constant 0 : i32
    return %arg0, %c0_i32, %c0_i32_0, %c0_i32_1 : i32, i32, i32, i32
  }
}

</mosaic_0001>

<bundles_post_ra>
// kernel: dsampling_forward.1
= control target key start
LH: loop header
LB: loop body
LE: loop exit
PB: predicated region body
PF: predicated region fallthrough
CT: control target
= control target key end

     0   :  { %7 = vsyncpa [#allocation4], 0  ;;  %s3630_s0 = inlined_call_operand.vmem [shape: f32[148], index: 0, kind: input, shape index: {}]   ;;  %s3631_s1 = inlined_call_operand.vmem [shape: f32[2,4,4,10,10], index: 1, kind: input, shape index: {}]   ;;  %s3632_s2 = inlined_call_operand.hbm [shape: f32[2,4,8,8], index: 2, kind: output, shape index: {}]  }
   0x1   :  { %8 = vsyncpa [#allocation3], 0 }
   0x2   :  { %10 = vsyncpa [#allocation3 + $0x1], 0  ;;  %s2211_s9 = smov 0   ;;  %s2213_s10 = smov 0  }
   0x3   :  { %s2215_s11 = smov 0   ;;  %s2217_s12 = smov 0  }
   0x4 LB: > { %s2232_s13 = sadd.s32 4294967295, %s2187_s12   ;;  %s1826_s14 = sadd.s32 4294967294, %s2187_s12   ;;  %s2187_s12 = sphi %s2217_s12, %s3643_s12   ;;  %s2183_s11 = sphi %s2215_s11, %s3642_s11   ;;  %s2179_s10 = sphi %s2213_s10, %s3641_s10   ;;  %s2175_s9 = sphi %s2211_s9, %s3640_s9  }
   0x5   : > { %s2236_s15 = sadd.s32 1, %s2187_s12   ;;  %s70_s16 = sadd.s32 1, %s2183_s11 }
   0x6   : > { %s67_s17 = ssub.s32 %s2187_s12, %s2236_s15  ;;  %p80_p0 = scmp.ne.s32.totalorder %s2183_s11, %s2179_s10 }
   0x7   : > { %p68_p1 = scmp.eq.s32.totalorder %s67_s17, 0  ;;  %p81_p2 = scmp.eq.s32.totalorder %s2232_s13, 1 }
   0x8   : > { %p86_p3 = scmp.ne.s32.totalorder %s2179_s10, %s2175_s9  ;;  %p87_p4 = scmp.eq.s32.totalorder %s1826_s14, 1 }
   0x9   : > { %s2247_s18 = scalar_select %p68_p1, %s2183_s11, %s70_s16  }
   0xa   : > { %p2249_p5 = por %p81_p2, %p80_p0  ;;  %p2253_p6 = por %p87_p4, %p86_p3 }
   0xb   : > { %p1827_p7 = scmp.ge.s32.totalorder %s2187_s12, 1  ;;  %p94_p8 = scmp.lt.s32.totalorder %s2187_s12, 3 }
   0xc   : > { %p2033_p9 = scmp.eq.s32.totalorder %s2232_s13, 0  ;;  %s107_s24 = sshll.u32 %s3630_s0, 4  ;;  %s108_s24 = int_to_ptr.vmem [resolvable:$true] %s107_s24 }
   0xd   : > { %p2260_p10 = pnand %p1827_p7, %p94_p8  ;;  %s2108_s25 = scalar_lea.vmem %s108_s24, 32 }
   0xe   : > { %p2109_p13 = scmp.ne.s32.totalorder %s108_s24, %s2108_s25  ;;  %p2116_p3 = scmp.lt.s32.totalorder %s108_s24, %s108_s24 }
   0xf   : > { %p2025_p11 = pneg %p2260_p10  ;;  %p2117_p4 = scmp.lt.s32.totalorder %s2108_s25, %s2108_s25 }
  0x11   : > { %p2026_p12 = pnand %p2033_p9, %p2025_p11  ;;  %p2118_p7 = por %p2117_p4, %p2116_p3 }
  0x13   : > { %p2110_p0 = pneg %p2026_p12 }
  0x15   : > { %p2111_p1 = pnand %p2110_p0, %p2109_p13 }
  0x17   : > { %p2112_p2 = pneg %p2111_p1 }
  0x19   : > { %p2119_p8 = pnand %p2118_p7, %p2112_p2 }
  0x1b   : > { %2122 = shalt.err (!%p2119_p8)
}
  0x1c   : > { %s2189_s26 = smov [#allocation2]   ;;  %128 = sbr.rel (%p2260_p10) target bundleno = 609 (0x261), region = 28 }
  0x1d   : > { %2028 = dma.vmem_to_smem (!%p2026_p12), %s108_s24, 32, %s2189_s26, [#allocation4]  }
  0x21   : > { %2166 = dma.done.wait (%p2033_p9), [#allocation4], 32  }
  0x22   : > { %2168 = vsyncadd (%p2033_p9), [#allocation4], 4294967264 }
  0x23   : > { %134 = sfence }
  0x24   : > { %p151_p11 = scmp.lt.s32.totalorder %s2232_s13, 1  ;;  %s1912_s27 = sld [smem:[#allocation2 + $0x31]]  ;;  %vm358_vm0 = vcmask 1046528   ;;  %vm922_vm1 = vcmask 1045504   ;;  %vm311_vm2 = vcmask 64513   ;;  %vm313_vm3 = vcmask 57344  }
  0x25   : > { %s1913_s29 = sld [smem:[#allocation2 + $0x32]]  ;;  %s2190_s21 = smov 127  }
  0x26   : > { %s152_s28 = scalar_select %p151_p11, %s2232_s13, 1 }
  0x27   : > { %s1914_s3 = sld [smem:[#allocation2 + $0x33]]  ;;  %s2191_s25 = smov 126  }
  0x28   : > { %s2017_s30 = sshll.u32 %s152_s28, 8  ;;  %s1917_s7 = sld [smem:[#allocation2 + $0x36]] }
  0x29   : > { %s2282_s6 = scalar_lea.vmem %s3631_s1, %s2017_s30  ;;  %s1918_s8 = sld [smem:[#allocation2 + $0x37]] }
  0x2a   : > { %v2285_v0 = vld [vmem:[%s2282_s6] sm:$0xff]  ;;  %v739_v1 = vstv %s1912_s27  ;;  %s2290_s14 = sld [smem:[#allocation2 + $0x38]]  ;;  %v2309_v12 = vld [vmem:[%s2282_s6 + $0x8] sm:$0x3] }
  0x2b   : > { %v2288_v2 = vld [vmem:[%s2282_s6 + $0x40] sm:$0xff]  ;;  %v740_v3 = vmul.f32 %v739_v1, %v2285_v0  ;;  %s1922_s16 = sld [smem:[#allocation2 + $0x3b]]  ;;  %v747_v4 = vstv %s1913_s29  ;;  %v2317_v15 = vld [vmem:[%s2282_s6 + $0x48] sm:$0x3] }
  0x2c   : > { %s2293_s17 = sld [smem:[#allocation2 + $0x3c]]  ;;  %v748_v5 = vmul.f32 %v2288_v2, %v747_v4  ;;  %v2298_v7 = vld [vmem:[%s2282_s6 + $0x80] sm:$0xff]  ;;  %v2338_v29 = vld [vmem:[%s2282_s6 + $0x88] sm:$0x3] }
  0x2d   : > { %742 = vrot.lane.b32.xlu0 %v740_v3, %s2190_s21  ;;  %v755_v6 = vstv %s1914_s3  ;;  %s2300_s22 = sld [smem:[#allocation2 + $0x3d]]  ;;  %v2304_v10 = vld [vmem:[%s2282_s6 + $0xc0] sm:$0xff]  ;;  %v2341_v30 = vld [vmem:[%s2282_s6 + $0xc8] sm:$0x3] }
  0x2e   : > { %v756_v8 = vmul.f32 %v755_v6, %v2285_v0  ;;  %v771_v9 = vstv %s1917_s7  ;;  %s2306_s23 = sld [smem:[#allocation2 + $0x40]] }
  0x2f   : > { %v779_v11 = vstv %s1918_s8  ;;  %s2311_s24 = sld [smem:[#allocation2 + $0x41]]  ;;  %v772_v13 = vmul.f32 %v2298_v7, %v771_v9 }
  0x30   : > { %758 = vrot.lane.b32.xlu1 %v756_v8, %s2191_s25  ;;  %v787_v14 = vstv %s2290_s14  ;;  %s2319_s26 = sld [smem:[#allocation2 + $0x42]]  ;;  %v780_v16 = vmul.f32 %v2304_v10, %v779_v11 }
  0x31   : > { %750 = vrot.lane.b32.xlu0 %v748_v5, %s2190_s21  ;;  %v817_v17 = vstv %s1922_s16  ;;  %s2323_s27 = sld [smem:[#allocation2 + $0x45]]  ;;  %v788_v21 = vmul.f32 %v2298_v7, %v787_v14  ;;  %v2397_v14 = vld [vmem:[%s2282_s6 + $0x10] sm:$0xff] }
  0x32   : > { %v818_v18 = vmul.f32 %v817_v17, %v2285_v0  ;;  %v819_v19 = vmul.f32 %v817_v17, %v2309_v12  ;;  %v830_v20 = vstv %s2293_s17  ;;  %s2328_s28 = sld [smem:[#allocation2 + $0x46]] }
  0x33   : > { %v831_v22 = vmul.f32 %v2288_v2, %v830_v20  ;;  %v832_v23 = vmul.f32 %v2317_v15, %v830_v20  ;;  %v843_v24 = vstv %s2300_s22  ;;  %s2346_s29 = sld [smem:[#allocation2 + $0x47]] }
  0x34   : > { %774 = vrot.lane.b32.xlu1 %v772_v13, %s2190_s21  ;;  %v822_v25 = vrot.slane %v818_v18, 1  ;;  %v823_v26 = vrot.slane %v819_v19, 1  ;;  %v844_v27 = vmul.f32 %v843_v24, %v2285_v0  ;;  %v845_v28 = vmul.f32 %v843_v24, %v2309_v12  ;;  %s2370_s30 = sld [smem:[#allocation2 + $0x4a]]  ;;  %v2404_v18 = vld [vmem:[%s2282_s6 + $0x50] sm:$0xff] }
  0x35   : > { %782 = vrot.lane.b32.xlu0 %v780_v16, %s2190_s21  ;;  %v835_v31 = vrot.slane %v831_v22, 1  ;;  %v836_v32 = vrot.slane %v832_v23, 1  ;;  %v878_v33 = vstv %s2306_s23  ;;  %v891_v34 = vstv %s2311_s24  ;;  %s2374_s3 = sld [smem:[#allocation2 + $0x4b]]  ;;  %v2417_v23 = vld [vmem:[%s2282_s6 + $0x90] sm:$0xff] }
  0x36   : > { %v824_v35 = vsel %vm358_vm0, %v822_v25, %v823_v26  ;;  %v848_v36 = vrot.slane %v844_v27, 1  ;;  %v849_v37 = vrot.slane %v845_v28, 1  ;;  %v879_v38 = vmul.f32 %v2298_v7, %v878_v33  ;;  %s2377_s4 = sld [smem:[#allocation2 + $0x4c]]  ;;  %v2421_v25 = vld [vmem:[%s2282_s6 + $0x18] sm:$0x3] }
  0x37   : > { %v837_v39 = vsel %vm358_vm0, %v835_v31, %v836_v32  ;;  %v880_v40 = vmul.f32 %v2338_v29, %v878_v33  ;;  %v892_v41 = vmul.f32 %v2304_v10, %v891_v34  ;;  %v893_v42 = vmul.f32 %v2341_v30, %v891_v34  ;;  %s2380_s5 = sld [smem:[#allocation2 + $0x4f]]  ;;  %v2427_v27 = vld [vmem:[%s2282_s6 + $0x58] sm:$0x3]  ;;  %v2434_v33 = vld [vmem:[%s2282_s6 + $0xd0] sm:$0xff] }
  0x38   : > { %790 = vrot.lane.b32.xlu1 %v788_v21, %s2191_s25  ;;  %v850_v43 = vsel %vm358_vm0, %v848_v36, %v849_v37  ;;  %v883_v44 = vrot.slane %v879_v38, 1  ;;  %v904_v45 = vstv %s2319_s26  ;;  %v940_v46 = vstv %s2323_s27  ;;  %s2384_s7 = sld [smem:[#allocation2 + $0x50]] }
  0x39   : > { %825 = vrot.lane.b32.xlu0 %v824_v35, %s2190_s21  ;;  %v884_v47 = vrot.slane %v880_v40, 1  ;;  %v896_v48 = vrot.slane %v892_v41, 1  ;;  %v897_v49 = vrot.slane %v893_v42, 1  ;;  %v905_v50 = vmul.f32 %v2298_v7, %v904_v45  ;;  %s2387_s8 = sld [smem:[#allocation2 + $0x54]]  ;;  %v2445_v41 = vld [vmem:[%s2282_s6 + $0x98] sm:$0x3] }
  0x3a   : > { %v906_v51 = vmul.f32 %v2338_v29, %v904_v45  ;;  %v941_v52 = vmul.f32 %v940_v46, %v2285_v0  ;;  %v942_v53 = vmul.f32 %v940_v46, %v2309_v12  ;;  %v953_v54 = vstv %s2328_s28  ;;  %s2389_s14 = sld [smem:[#allocation2 + $0x55]] }
  0x3b   : > { %v885_v55 = vsel %vm358_vm0, %v883_v44, %v884_v47  ;;  %v909_v56 = vrot.slane %v905_v50, 1  ;;  %v954_v58 = vmul.f32 %v2288_v2, %v953_v54  ;;  %v955_v59 = vmul.f32 %v2317_v15, %v953_v54  ;;  %s2392_s16 = sld [smem:[#allocation2 + $0x51]] }
  0x3c   : > { %838 = vrot.lane.b32.xlu1 %v837_v39, %s2190_s21  ;;  %v910_v57 = vrot.slane %v906_v51, 1  ;;  %v966_v60 = vstv %s2346_s29  ;;  %v898_v61 = vsel %vm358_vm0, %v896_v48, %v897_v49  ;;  %v945_v62 = vrot.slane %v941_v52, 2  ;;  %s2400_s17 = sld [smem:[#allocation2 + $0x56]]  ;;  %v2462_v52 = vld [vmem:[%s2282_s6 + $0xd8] sm:$0x3] }
  0x3d   : > { %851 = vrot.lane.b32.xlu0 %v850_v43, %s2191_s25  ;;  %v946_v63 = vrot.slane %v942_v53, 2  ;;  %v967_v1 = vmul.f32 %v966_v60, %v2285_v0  ;;  %v968_v3 = vmul.f32 %v966_v60, %v2309_v12  ;;  %v958_v5 = vrot.slane %v954_v58, 2  ;;  %s2407_s22 = sld [smem:[#allocation2 + $0x59]] }
  0x3e   : > { %v911_v4 = vsel %vm358_vm0, %v909_v56, %v910_v57  ;;  %v959_v6 = vrot.slane %v955_v59, 2  ;;  %v987_v16 = vstv %s2370_s30  ;;  %v995_v19 = vstv %s2374_s3  ;;  %s2411_s23 = sld [smem:[#allocation2 + $0x5a]] }
  0x3f   : > { %v947_v8 = vsel %vm922_vm1, %v945_v62, %v946_v63  ;;  %v971_v9 = vrot.slane %v967_v1, 2  ;;  %v972_v11 = vrot.slane %v968_v3, 2  ;;  %v988_v20 = vmul.f32 %v987_v16, %v2397_v14  ;;  %s2424_s24 = sld [smem:[#allocation2 + $0x5b]] }
  0x40   : > { %886 = vrot.lane.b32.xlu1 %v885_v55, %s2190_s21  ;;  %v960_v13 = vsel %vm922_vm1, %v958_v5, %v959_v6  ;;  %v996_v21 = vmul.f32 %v2404_v18, %v995_v19  ;;  %v1003_v22 = vstv %s2377_s4  ;;  %v1019_v24 = vstv %s2380_s5  ;;  %s2448_s26 = sld [smem:[#allocation2 + $0x5e]] }
  0x41   : > { %899 = vrot.lane.b32.xlu0 %v898_v61, %s2190_s21  ;;  %v973_v17 = vsel %vm922_vm1, %v971_v9, %v972_v11  ;;  %v1065_v26 = vstv %s2387_s8  ;;  %v1078_v28 = vstv %s2389_s14  ;;  %v1004_v31 = vmul.f32 %v1003_v22, %v2397_v14  ;;  %s2451_s27 = sld [smem:[#allocation2 + $0x5f]] }
  0x42   : > { %v1020_v32 = vmul.f32 %v2417_v23, %v1019_v24  ;;  %v1027_v34 = vstv %s2384_s7  ;;  %v1035_v35 = vstv %s2392_s16  ;;  %v1066_v36 = vmul.f32 %v1065_v26, %v2397_v14  ;;  %s2465_s28 = sld [smem:[#allocation2 + $0x60]] }
  0x43   : > { %v1067_v37 = vmul.f32 %v1065_v26, %v2421_v25  ;;  %v1091_v38 = vstv %s2400_s17  ;;  %v1079_v39 = vmul.f32 %v2404_v18, %v1078_v28  ;;  %v1080_v40 = vmul.f32 %v2427_v27, %v1078_v28  ;;  %s1962_s29 = sld [smem:[#allocation2 + $0x63]] }
  0x44   : > { %912 = vrot.lane.b32.xlu1 %v911_v4, %s2191_s25  ;;  %v1126_v42 = vstv %s2407_s22  ;;  %v1028_v43 = vmul.f32 %v2434_v33, %v1027_v34  ;;  %v1036_v44 = vmul.f32 %v2417_v23, %v1035_v35  ;;  %v1092_v45 = vmul.f32 %v1091_v38, %v2397_v14  ;;  %s1963_s30 = sld [smem:[#allocation2 + $0x64]] }
  0x45   : > { %948 = vrot.lane.b32.xlu0 %v947_v8, %s2190_s21  ;;  %v1093_v46 = vmul.f32 %v1091_v38, %v2421_v25  ;;  %v1139_v47 = vstv %s2411_s23  ;;  %v1070_v48 = vrot.slane %v1066_v36, 1  ;;  %v1071_v49 = vrot.slane %v1067_v37, 1  ;;  %s1964_s3 = sld [smem:[#allocation2 + $0x65]] }
  0x46   : > { %v1127_v50 = vmul.f32 %v2417_v23, %v1126_v42  ;;  %v1128_v51 = vmul.f32 %v2445_v41, %v1126_v42  ;;  %v1083_v53 = vrot.slane %v1079_v39, 1  ;;  %v1084_v54 = vrot.slane %v1080_v40, 1  ;;  %s2492_s4 = sld [smem:[#allocation2 + $0x6d]]  ;;  %v2503_v42 = vld [vmem:[%s2282_s6 + $0x20] sm:$0xff] }
  0x47   : > { %v1152_v55 = vstv %s2424_s24  ;;  %v1096_v56 = vrot.slane %v1092_v45, 1  ;;  %v1097_v57 = vrot.slane %v1093_v46, 1  ;;  %v1140_v58 = vmul.f32 %v2434_v33, %v1139_v47  ;;  %s2495_s5 = sld [smem:[#allocation2 + $0x68]]  ;;  %v2514_v46 = vld [vmem:[%s2282_s6 + $0x60] sm:$0xff] }
  0x48   : > { %961 = vrot.lane.b32.xlu1 %v960_v13, %s2190_s21  ;;  %v1141_v59 = vmul.f32 %v2462_v52, %v1139_v47  ;;  %v1072_v60 = vsel %vm358_vm0, %v1070_v48, %v1071_v49  ;;  %v1131_v61 = vrot.slane %v1127_v50, 1  ;;  %v1132_v62 = vrot.slane %v1128_v51, 1  ;;  %s2499_s7 = sld [smem:[#allocation2 + $0x69]]  ;;  %v2519_v49 = vld [vmem:[%s2282_s6 + $0x28] sm:$0x3] }
  0x49   : > { %974 = vrot.lane.b32.xlu0 %v973_v17, %s2191_s25  ;;  %v1153_v63 = vmul.f32 %v2417_v23, %v1152_v55  ;;  %v1085_v1 = vsel %vm358_vm0, %v1083_v53, %v1084_v54  ;;  %v1154_v3 = vmul.f32 %v2445_v41, %v1152_v55  ;;  %v1187_v4 = vstv %s2448_s26  ;;  %s2505_s8 = sld [smem:[#allocation2 + $0x6e]]  ;;  %v2529_v54 = vld [vmem:[%s2282_s6 + $0xa0] sm:$0xff] }
  0x4a   : > { %v1200_v5 = vstv %s2451_s27  ;;  %v1098_v6 = vsel %vm358_vm0, %v1096_v56, %v1097_v57  ;;  %v1144_v8 = vrot.slane %v1140_v58, 1  ;;  %v1145_v9 = vrot.slane %v1141_v59, 1  ;;  %s2507_s14 = sld [smem:[#allocation2 + $0x6f]]  ;;  %v2533_v56 = vld [vmem:[%s2282_s6 + $0xe0] sm:$0xff] }
  0x4b   : > { %v1133_v11 = vsel %vm358_vm0, %v1131_v61, %v1132_v62  ;;  %v1157_v13 = vrot.slane %v1153_v63, 1  ;;  %v1188_v16 = vmul.f32 %v1187_v4, %v2397_v14  ;;  %v1189_v17 = vmul.f32 %v1187_v4, %v2421_v25  ;;  %s2516_s16 = sld [smem:[#allocation2 + $0x6a]] }
  0x4c   : > { %990 = vrot.lane.b32.xlu1 %v988_v20, %s2190_s21  ;;  %v1158_v19 = vrot.slane %v1154_v3, 1  ;;  %v1201_v20 = vmul.f32 %v2404_v18, %v1200_v5  ;;  %v1213_v22 = vstv %s2465_s28  ;;  %v1146_v24 = vsel %vm358_vm0, %v1144_v8, %v1145_v9  ;;  %s2524_s17 = sld [smem:[#allocation2 + $0x72]] }
  0x4d   : > { %998 = vrot.lane.b32.xlu0 %v996_v21, %s2190_s21  ;;  %v1202_v21 = vmul.f32 %v2427_v27, %v1200_v5  ;;  %v1192_v26 = vrot.slane %v1188_v16, 2  ;;  %v1193_v28 = vrot.slane %v1189_v17, 2  ;;  %v1242_v47 = vstv %s1963_s30  ;;  %s2542_s22 = sld [smem:[#allocation2 + $0xb]]  ;;  %v2565_v16 = vld [vmem:[%s2282_s6 + $0xa8] sm:$0x3] }
  0x4e   : > { %v1159_v34 = vsel %vm358_vm0, %v1157_v13, %v1158_v19  ;;  %v1205_v35 = vrot.slane %v1201_v20, 2  ;;  %v1250_v48 = vstv %s1964_s3  ;;  %v1312_v50 = vstv %s2492_s4  ;;  %s2545_s23 = sld [smem:[#allocation2 + $0xe]] }
  0x4f   : > { %v1206_v36 = vrot.slane %v1202_v21, 2  ;;  %v1194_v37 = vsel %vm922_vm1, %v1192_v26, %v1193_v28  ;;  %v1243_v51 = vmul.f32 %v2514_v46, %v1242_v47  ;;  %v1251_v53 = vmul.f32 %v1250_v48, %v2503_v42  ;;  %s2549_s24 = sld [smem:[#allocation2 + $0xc]] }
  0x50   : > { %1006 = vrot.lane.b32.xlu1 %v1004_v31, %s2191_s25  ;;  %v1214_v31 = vmul.f32 %v1213_v22, %v2397_v14  ;;  %v1266_v55 = vstv %s2495_s5  ;;  %v1274_v57 = vstv %s2499_s7  ;;  %v1313_v58 = vmul.f32 %v1312_v50, %v2503_v42  ;;  %s2556_s26 = sld [smem:[#allocation2 + $0x73]] }
  0x51   : > { %1022 = vrot.lane.b32.xlu0 %v1020_v32, %s2190_s21  ;;  %v1215_v32 = vmul.f32 %v1213_v22, %v2421_v25  ;;  %v1207_v40 = vsel %vm922_vm1, %v1205_v35, %v1206_v36  ;;  %v1314_v59 = vmul.f32 %v1312_v50, %v2519_v49  ;;  %v1325_v61 = vstv %s2505_s8  ;;  %s2560_s27 = sld [smem:[#allocation2 + $0xf]] }
  0x52   : > { %v1218_v38 = vrot.slane %v1214_v31, 2  ;;  %v1338_v62 = vstv %s2507_s14  ;;  %v1267_v63 = vmul.f32 %v2529_v54, %v1266_v55  ;;  %v1282_v3 = vstv %s2516_s16  ;;  %s2569_s28 = sld [smem:[#allocation2 + $0x74]] }
  0x53   : > { %v1219_v39 = vrot.slane %v1215_v32, 2  ;;  %v1326_v4 = vmul.f32 %v2514_v46, %v1325_v61  ;;  %v1318_v8 = vrot.slane %v1314_v59, 1  ;;  %v1339_v9 = vmul.f32 %v1338_v62, %v2503_v42  ;;  %v2579_v32 = vld [vmem:[%s2282_s6 + $0xe8] sm:$0x3]  ;;  %s2586_s30 = sld [smem:[#allocation2 + $0x12]] }
  0x54   : > { %1030 = vrot.lane.b32.xlu1 %v1028_v43, %s2190_s21  ;;  %v1234_v43 = vstv %s1962_s29  ;;  %v1283_v13 = vmul.f32 %v2529_v54, %v1282_v3  ;;  %v1373_v17 = vstv %s2524_s17  ;;  %s2572_s29 = sld [smem:[#allocation2 + $0x11]]  ;;  %v365_v31 = vstv %s2545_s23 }
  0x55   : > { %1038 = vrot.lane.b32.xlu0 %v1036_v44, %s2191_s25  ;;  %v1220_v44 = vsel %vm922_vm1, %v1218_v38, %v1219_v39  ;;  %v1235_v45 = vmul.f32 %v1234_v43, %v2503_v42  ;;  %v1330_v19 = vrot.slane %v1326_v4, 1  ;;  %v1343_v22 = vrot.slane %v1339_v9, 1  ;;  %s2592_s3 = sld [smem:[#allocation2 + $0x77]] }
  0x56   : > { %v1374_v26 = vmul.f32 %v2529_v54, %v1373_v17  ;;  %v1375_v28 = vmul.f32 %v2565_v16, %v1373_v17  ;;  %v337_v35 = vstv %s2542_s22  ;;  %v345_v36 = vstv %s2549_s24  ;;  %s2604_s4 = sld [smem:[#allocation2 + $0x78]] }
  0x57   : > { %v366_v39 = vmul.f32 %v365_v31, %v2285_v0  ;;  %v378_v43 = vstv %s2560_s27  ;;  %v338_v47 = vmul.f32 %v2298_v7, %v337_v35  ;;  %s2613_s5 = sld [smem:[#allocation2 + $0x79]] }
  0x58   : > { %1073 = vrot.lane.b32.xlu1 %v1072_v60, %s2190_s21  ;;  %v2539_v60 = vld [vmem:[%s2282_s6 + $0x68] sm:$0x3]  ;;  %v380_v55 = vmul.f32 %v2317_v15, %v378_v43  ;;  %s2624_s7 = sld [smem:[#allocation2 + $0x14]] }
  0x59   : > { %1086 = vrot.lane.b32.xlu0 %v1085_v1, %s2190_s21  ;;  %v1275_v1 = vmul.f32 %v2533_v56, %v1274_v57  ;;  %v1327_v5 = vmul.f32 %v2539_v60, %v1325_v61  ;;  %v1399_v57 = vstv %s2569_s28  ;;  %v415_v9 = vstv %s2586_s30  ;;  %s2629_s8 = sld [smem:[#allocation2 + $0x17]] }
  0x5a   : > { %v402_v61 = vstv %s2572_s29  ;;  %v1400_v3 = vmul.f32 %v2529_v54, %v1399_v57  ;;  %v1401_v4 = vmul.f32 %v2565_v16, %v1399_v57  ;;  %s2637_s14 = sld [smem:[#allocation2 + $0x15]] }
  0x5b   : > { %v1331_v20 = vrot.slane %v1327_v5, 1  ;;  %v1434_v17 = vstv %s2592_s3  ;;  %s2640_s16 = sld [smem:[#allocation2 + $0x18]] }
  0x5c   : > { %1099 = vrot.lane.b32.xlu1 %v1098_v6, %s2191_s25  ;;  %v1317_v6 = vrot.slane %v1313_v58, 1  ;;  %v370_v58 = vrot.slane %v366_v39, 1  ;;  %v1436_v35 = vmul.f32 %v1434_v17, %v2519_v49  ;;  %s2645_s17 = sld [smem:[#allocation2 + $0x7c]] }
  0x5d   : > { %1134 = vrot.lane.b32.xlu0 %v1133_v11, %s2190_s21  ;;  %v1340_v11 = vmul.f32 %v1338_v62, %v2519_v49  ;;  %s2651_s22 = sld [smem:[#allocation2 + $0x2f]] }
  0x5e   : > { %v1319_v21 = vsel %vm358_vm0, %v1317_v6, %v1318_v8  ;;  %v384_v6 = vrot.slane %v380_v55, 1  ;;  %v403_v8 = vmul.f32 %v2298_v7, %v402_v61  ;;  %s2654_s23 = sld [smem:[#allocation2 + $0x1a]] }
  0x5f   : > { %s2658_s24 = sld [smem:[#allocation2 + $0x93]] }
  0x60   : > { %1147 = vrot.lane.b32.xlu1 %v1146_v24, %s2190_s21  ;;  %v1344_v24 = vrot.slane %v1340_v11, 1  ;;  %s2668_s27 = sld [smem:[#allocation2 + $0x1b]] }
  0x61   : > { %1160 = vrot.lane.b32.xlu0 %v1159_v34, %s2191_s25  ;;  %v1332_v34 = vsel %vm358_vm0, %v1330_v19, %v1331_v20  ;;  %v1404_v19 = vrot.slane %v1400_v3, 1  ;;  %v1405_v20 = vrot.slane %v1401_v4, 1  ;;  %v440_v4 = vstv %s2637_s14  ;;  %s2670_s28 = sld [smem:[#allocation2 + $0x30]] }
  0x62   : > { %v1345_v38 = vsel %vm358_vm0, %v1343_v22, %v1344_v24  ;;  %s2676_s29 = sld [smem:[#allocation2 + $0x7e]] }
  0x63   : > { %s2684_s30 = sld [smem:[#allocation2 + $0x39]] }
  0x64   : > { %1195 = vrot.lane.b32.xlu1 %v1194_v37, %s2190_s21  ;;  %v1386_v37 = vstv %s2556_s26  ;;  %s2665_s26 = sld [smem:[#allocation2 + $0x7d]] }
  0x65   : > { %1208 = vrot.lane.b32.xlu0 %v1207_v40, %s2190_s21  ;;  %v367_v40 = vmul.f32 %v365_v31, %v2309_v12  ;;  %v1387_v48 = vmul.f32 %v2533_v56, %v1386_v37  ;;  %v1388_v50 = vmul.f32 %v2579_v32, %v1386_v37  ;;  %v1406_v37 = vsel %vm358_vm0, %v1404_v19, %v1405_v20  ;;  %s2686_s3 = sld [smem:[#allocation2 + $0x34]] }
  0x66   : > { %s2712_s14 = sld [smem:[#allocation2 + $0x82]] }
  0x67   : > { %v371_v59 = vrot.slane %v367_v40, 1 }
  0x68   : > { %1221 = vrot.lane.b32.xlu1 %v1220_v44, %s2191_s25  ;;  %v1378_v44 = vrot.slane %v1374_v26, 1  ;;  %v407_v26 = vrot.slane %v403_v8, 1  ;;  %v472_v8 = vstv %s2640_s16  ;;  %s2717_s16 = sld [smem:[#allocation2 + $0x20]] }
  0x69   : > { %1237 = vrot.lane.b32.xlu0 %v1235_v45, %s2190_s21  ;;  %v1379_v45 = vrot.slane %v1375_v28, 1  ;;  %v372_v11 = vsel %vm358_vm0, %v370_v58, %v371_v59  ;;  %v417_v28 = vmul.f32 %v2341_v30, %v415_v9  ;;  %v432_v58 = vstv %s2624_s7  ;;  %s2702_s7 = sld [smem:[#allocation2 + $0x81]] }
  0x6a   : > { %v473_v19 = vmul.f32 %v2404_v18, %v472_v8  ;;  %v474_v20 = vmul.f32 %v2427_v27, %v472_v8 }
  0x6b   : > { %v1380_v62 = vsel %vm358_vm0, %v1378_v44, %v1379_v45  ;;  %v421_v39 = vrot.slane %v417_v28, 1  ;;  %v1460_v44 = vstv %s2613_s5  ;;  %s2694_s5 = sld [smem:[#allocation2 + $0x3a]]  ;;  %v2699_v28 = vld [vmem:[%s2282_s6 + $0x70] sm:$0xff] }
  0x6c   : > { %1245 = vrot.lane.b32.xlu1 %v1243_v51, %s2190_s21  ;;  %v346_v51 = vmul.f32 %v2304_v10, %v345_v36  ;;  %v1447_v36 = vstv %s2604_s4  ;;  %s2689_s4 = sld [smem:[#allocation2 + $0x35]]  ;;  %v477_v27 = vrot.slane %v473_v19, 1 }
  0x6d   : > { %1253 = vrot.lane.b32.xlu0 %v1251_v53, %s2191_s25  ;;  %v379_v53 = vmul.f32 %v2288_v2, %v378_v43  ;;  %v1448_v40 = vmul.f32 %v2514_v46, %v1447_v36  ;;  %v1449_v43 = vmul.f32 %v2539_v60, %v1447_v36 }
  0x6f   : > { %v383_v5 = vrot.slane %v379_v53, 1  ;;  %v1452_v55 = vrot.slane %v1448_v40, 2  ;;  %v1453_v57 = vrot.slane %v1449_v43, 2  ;;  %v1497_v43 = vstv %s2676_s29  ;;  %s2768_s29 = sld [smem:[#allocation2 + $0x23]] }
  0x70   : > { %1269 = vrot.lane.b32.xlu1 %v1267_v63, %s2190_s21  ;;  %v1391_v63 = vrot.slane %v1387_v48, 1  ;;  %v1440_v48 = vrot.slane %v1436_v35, 2 }
  0x71   : > { %1277 = vrot.lane.b32.xlu0 %v1275_v1, %s2190_s21  ;;  %v1392_v1 = vrot.slane %v1388_v50, 1  ;;  %v385_v24 = vsel %vm358_vm0, %v383_v5, %v384_v6  ;;  %v1461_v50 = vmul.f32 %v1460_v44, %v2503_v42  ;;  %v1454_v3 = vsel %vm922_vm1, %v1452_v55, %v1453_v57 }
  0x72   : > { %v806_v55 = vstv %s2694_s5  ;;  %s2802_s5 = sld [smem:[#allocation2 + $0x8b]] }
  0x73   : > { %v1393_v22 = vsel %vm358_vm0, %v1391_v63, %v1392_v1  ;;  %v1465_v63 = vrot.slane %v1461_v50, 2 }
  0x74   : > { %1285 = vrot.lane.b32.xlu1 %v1283_v13, %s2191_s25  ;;  %v404_v13 = vmul.f32 %v2338_v29, %v402_v61  ;;  %v459_v61 = vstv %s2629_s8  ;;  %s2708_s8 = sld [smem:[#allocation2 + $0x1d]] }
  0x75   : > { %1320 = vrot.lane.b32.xlu0 %v1319_v21, %s2190_s21  ;;  %v416_v21 = vmul.f32 %v2304_v10, %v415_v9  ;;  %v460_v5 = vmul.f32 %v459_v61, %v2397_v14  ;;  %v461_v6 = vmul.f32 %v459_v61, %v2421_v25 }
  0x76   : > { %v408_v31 = vrot.slane %v404_v13, 1  ;;  %v1481_v13 = vstv %s2645_s17  ;;  %s2724_s17 = sld [smem:[#allocation2 + $0x21]] }
  0x77   : > { %v464_v14 = vrot.slane %v460_v5, 1  ;;  %v465_v25 = vrot.slane %v461_v6, 1  ;;  %v807_v5 = vmul.f32 %v2288_v2, %v806_v55  ;;  %v808_v6 = vmul.f32 %v2317_v15, %v806_v55 }
  0x78   : > { %1333 = vrot.lane.b32.xlu1 %v1332_v34, %s2190_s21  ;;  %v1435_v34 = vmul.f32 %v1434_v17, %v2503_v42  ;;  %v409_v45 = vsel %vm358_vm0, %v407_v26, %v408_v31  ;;  %v2680_v17 = vld [vmem:[%s2282_s6 + $0x30] sm:$0xff]  ;;  %v478_v26 = vrot.slane %v474_v20, 1  ;;  %v1489_v31 = vstv %s2665_s26  ;;  %s2740_s26 = sld [smem:[#allocation2 + $0x3e]] }
  0x79   : > { %1346 = vrot.lane.b32.xlu0 %v1345_v38, %s2191_s25  ;;  %v420_v38 = vrot.slane %v416_v21, 1  ;;  %v730_v21 = vstv %s2651_s22  ;;  %v466_v18 = vsel %vm358_vm0, %v464_v14, %v465_v25  ;;  %v1490_v40 = vmul.f32 %v2699_v28, %v1489_v31  ;;  %s2727_s22 = sld [smem:[#allocation2 + $0x1e]] }
  0x7a   : > { %v526_v8 = vstv %s2708_s8  ;;  %s2822_s8 = sld [smem:[#allocation2 + $0x26]] }
  0x7b   : > { %v422_v53 = vsel %vm358_vm0, %v420_v38, %v421_v39  ;;  %v732_v38 = vstv %s2658_s24  ;;  %v735_v39 = vstv %s2670_s28  ;;  %s2736_s24 = sld [smem:[#allocation2 + $0x83]] }
  0x7c   : > { %340 = vrot.lane.b32.xlu1 %v338_v47, %s2190_s21  ;;  %v1439_v47 = vrot.slane %v1435_v34, 2  ;;  %v731_v34 = vmul.f32 %v730_v21, %v2285_v0  ;;  %s2752_s28 = sld [smem:[#allocation2 + $0x3f]]  ;;  %v2764_v21 = vld [vmem:[%s2282_s6 + $0xf0] sm:$0xff] }
  0x7d   : > { %348 = vrot.lane.b32.xlu0 %v346_v51, %s2190_s21  ;;  %v1462_v51 = vmul.f32 %v1460_v44, %v2519_v49 }
  0x7e   : > { %v1441_v59 = vsel %vm922_vm1, %v1439_v47, %v1440_v48  ;;  %v736_v47 = vmul.f32 %v2288_v2, %v735_v39  ;;  %v733_v48 = vadd.f32 %v732_v38, %v731_v34  ;;  %v566_v2 = vstv %s2724_s17  ;;  %v2780_v38 = vld [vmem:[%s2282_s6 + $0x38] sm:$0x3]  ;;  %s2834_s17 = sld [smem:[#allocation2 + $0x27]] }
  0x7f   : > { %v1466_v1 = vrot.slane %v1462_v51, 2  ;;  %v534_v15 = vstv %s2727_s22  ;;  %v812_v39 = vrot.slane %v808_v6, 1  ;;  %s2840_s22 = sld [smem:[#allocation2 + $0x29]] }
  0x80   : > { %1381 = vrot.lane.b32.xlu1 %v1380_v62, %s2190_s21  ;;  %v433_v62 = vmul.f32 %v2417_v23, %v432_v58  ;;  %v737_v61 = vadd.f32 %v736_v47, %v733_v48 }
  0x81   : > { %373 = vrot.lane.b32.xlu0 %v372_v11, %s2190_s21  ;;  %v1467_v9 = vsel %vm922_vm1, %v1465_v63, %v1466_v1  ;;  %v441_v11 = vmul.f32 %v2434_v33, %v440_v4  ;;  %v2744_v63 = vld [vmem:[%s2282_s6 + $0xb0] sm:$0xff]  ;;  %v1513_v1 = vstv %s2702_s7  ;;  %v767_v4 = vstv %s2689_s4  ;;  %s2799_s4 = sld [smem:[#allocation2 + $0x43]] }
  0x82   : > { %v1514_v14 = vmul.f32 %v2744_v63, %v1513_v1  ;;  %v768_v19 = vmul.f32 %v2304_v10, %v767_v4  ;;  %v867_v47 = vstv %s2752_s28  ;;  %v590_v4 = vstv %s2768_s29  ;;  %s2816_s7 = sld [smem:[#allocation2 + $0x44]] }
  0x83   : > { %v869_v6 = vmul.f32 %v2341_v30, %v867_v47  ;;  %v591_v30 = vmul.f32 %v2529_v54, %v590_v4  ;;  %s2920_s28 = sld [smem:[#allocation2 + $0x2d]] }
  0x84   : > { %1394 = vrot.lane.b32.xlu1 %v1393_v22, %s2190_s21  ;;  %v496_v22 = vstv %s2654_s23  ;;  %s2729_s23 = sld [smem:[#allocation2 + $0x86]] }
  0x85   : > { %386 = vrot.lane.b32.xlu0 %v385_v24, %s2190_s21  ;;  %v1482_v24 = vmul.f32 %v1481_v13, %v2680_v17  ;;  %v497_v35 = vmul.f32 %v2417_v23, %v496_v22  ;;  %v498_v36 = vmul.f32 %v2445_v41, %v496_v22  ;;  %v479_v23 = vsel %vm358_vm0, %v477_v27, %v478_v26  ;;  %s2925_s29 = sld [smem:[#allocation2 + $0x92]] }
  0x86   : > { %v1521_v22 = vstv %s2712_s14  ;;  %v527_v27 = vmul.f32 %v2529_v54, %v526_v8  ;;  %s2827_s14 = sld [smem:[#allocation2 + $0x8c]]  ;;  %v873_v54 = vrot.slane %v869_v6, 1 }
  0x87   : > { %v501_v50 = vrot.slane %v497_v35, 1  ;;  %v502_v51 = vrot.slane %v498_v36, 1  ;;  %v567_v36 = vmul.f32 %v2514_v46, %v566_v2  ;;  %v2791_v46 = vld [vmem:[%s2282_s6 + $0x78] sm:$0x3] }
  0x88   : > { %1407 = vrot.lane.b32.xlu1 %v1406_v37, %s2191_s25  ;;  %v509_v37 = vstv %s2668_s27  ;;  %s2747_s27 = sld [smem:[#allocation2 + $0x87]] }
  0x89   : > { %410 = vrot.lane.b32.xlu0 %v409_v45, %s2190_s21  ;;  %v510_v41 = vmul.f32 %v2434_v33, %v509_v37  ;;  %v511_v44 = vmul.f32 %v2462_v52, %v509_v37  ;;  %v795_v45 = vstv %s2684_s30  ;;  %v1498_v33 = vmul.f32 %v1497_v43, %v2680_v17  ;;  %s2773_s30 = sld [smem:[#allocation2 + $0x88]] }
  0x8a   : > { %v796_v52 = vmul.f32 %v795_v45, %v2285_v0  ;;  %v1559_v31 = vstv %s2729_s23  ;;  %v568_v37 = vmul.f32 %v2539_v60, %v566_v2  ;;  %v535_v43 = vmul.f32 %v2533_v56, %v534_v15  ;;  %s2859_s23 = sld [smem:[#allocation2 + $0x2a]] }
  0x8b   : > { %v514_v57 = vrot.slane %v510_v41, 1  ;;  %v515_v58 = vrot.slane %v511_v44, 1  ;;  %v856_v44 = vstv %s2740_s26  ;;  %v592_v2 = vmul.f32 %v2565_v16, %v590_v4  ;;  %s2886_s26 = sld [smem:[#allocation2 + $0x90]] }
  0x8c   : > { %423 = vrot.lane.b32.xlu1 %v422_v53, %s2190_s21  ;;  %v763_v53 = vstv %s2686_s3  ;;  %s2794_s3 = sld [smem:[#allocation2 + $0x24]]  ;;  %v572_v55 = vrot.slane %v568_v37, 1  ;;  %v929_v4 = vstv %s2816_s7 }
  0x8d   : > { %1442 = vrot.lane.b32.xlu0 %v1441_v59, %s2190_s21  ;;  %v797_v59 = vmul.f32 %v795_v45, %v2309_v12  ;;  %v800_v12 = vrot.slane %v796_v52, 1  ;;  %v571_v52 = vrot.slane %v567_v36, 1  ;;  %v595_v36 = vrot.slane %v591_v30, 1  ;;  %s1945_s7 = sld [smem:[#allocation2 + $0x52]] }
  0x8e   : > { %v1572_v45 = vstv %s2747_s27  ;;  %v596_v37 = vrot.slane %v592_v2, 1  ;;  %s2912_s27 = sld [smem:[#allocation2 + $0x91]] }
  0x8f   : > { %v801_v13 = vrot.slane %v797_v59, 1  ;;  %v1573_v59 = vmul.f32 %v2699_v28, %v1572_v45 }
  0x90   : > { %1455 = vrot.lane.b32.xlu1 %v1454_v3, %s2190_s21  ;;  %v764_v3 = vmul.f32 %v2298_v7, %v763_v53 }
  0x91   : > { %435 = vrot.lane.b32.xlu0 %v433_v62, %s2190_s21  ;;  %v503_v62 = vsel %vm358_vm0, %v501_v50, %v502_v51  ;;  %v1560_v50 = vmul.f32 %v1559_v31, %v2680_v17  ;;  %v1561_v51 = vmul.f32 %v1559_v31, %v2780_v38 }
  0x92   : > { %v603_v15 = vstv %s2794_s3  ;;  %s2954_s3 = sld [smem:[#allocation2 + $0x49]] }
  0x93   : > { %v1564_v8 = vrot.slane %v1560_v50, 1 }
  0x94   : > { %1468 = vrot.lane.b32.xlu1 %v1467_v9, %s2191_s25  ;;  %v553_v9 = vstv %s2717_s16  ;;  %s2832_s16 = sld [smem:[#allocation2 + $0x8d]] }
  0x95   : > { %443 = vrot.lane.b32.xlu0 %v441_v11, %s2190_s21  ;;  %v516_v11 = vsel %vm358_vm0, %v514_v57, %v515_v58  ;;  %v554_v26 = vmul.f32 %v553_v9, %v2503_v42  ;;  %v555_v35 = vmul.f32 %v553_v9, %v2519_v49  ;;  %v2783_v42 = vsel %vm358_vm0, %v800_v12, %v801_v13 }
  0x96   : > { %v1529_v49 = vstv %s2736_s24  ;;  %v868_v12 = vmul.f32 %v2304_v10, %v867_v47  ;;  %v1585_v9 = vstv %s2773_s30  ;;  %v1577_v10 = vrot.slane %v1573_v59, 1  ;;  %s2873_s24 = sld [smem:[#allocation2 + $0x2c]]  ;;  %v2075_v59 = vld [vmem:[%s2282_s6 + $0x8] sm:$0x3] }
  0x97   : > { %v558_v48 = vrot.slane %v554_v26, 1  ;;  %v1530_v58 = vmul.f32 %v2744_v63, %v1529_v49  ;;  %s2938_s30 = sld [smem:[#allocation2 + $0x48]] }
  0x98   : > { %467 = vrot.lane.b32.xlu1 %v466_v18, %s2190_s21  ;;  %v811_v18 = vrot.slane %v807_v5, 1 }
  0x99   : > { %1484 = vrot.lane.b32.xlu0 %v1482_v24, %s2190_s21 }
  0x9a   : > { %v813_v57 = vsel %vm358_vm0, %v811_v18, %v812_v39  ;;  %v604_v39 = vmul.f32 %v2533_v56, %v603_v15 }
  0x9c   : > { %480 = vrot.lane.b32.xlu1 %v479_v23, %s2190_s21 }
  0x9d   : > { %1492 = vrot.lane.b32.xlu0 %v1490_v40, %s2190_s21  ;;  %v1522_v40 = vmul.f32 %v2764_v21, %v1521_v22  ;;  %v1587_v22 = vmul.f32 %v1585_v9, %v2780_v38 }
  0x9f   : > { %v743_v0 = vpop.permute.xlu0 %742 }
  0xa0   : > { %1500 = vrot.lane.b32.xlu1 %v1498_v33, %s2191_s25  ;;  %v745_v25 = vadd.f32 %v743_v0, %v737_v61  ;;  %v559_v33 = vrot.slane %v555_v35, 1  ;;  %v1574_v61 = vmul.f32 %v2791_v46, %v1572_v45  ;;  %v857_v0 = vmul.f32 %v2298_v7, %v856_v44 }
  0xa1   : > { %504 = vrot.lane.b32.xlu0 %v503_v62, %s2190_s21  ;;  %v573_v7 = vsel %vm358_vm0, %v571_v52, %v572_v55  ;;  %v1620_v35 = vstv %s2802_s5  ;;  %v1591_v45 = vrot.slane %v1587_v22, 1  ;;  %v608_v52 = vrot.slane %v604_v39, 1  ;;  %v2907_v22 = vld [vmem:[%s2282_s6 + $0x48] sm:$0x3]  ;;  %s2994_s5 = sld [smem:[#allocation2 + $0x4e]] }
  0xa2   : > { %v759_v20 = vpop.permute.xlu1 %758  ;;  %v560_v13 = vsel %vm358_vm0, %v558_v48, %v559_v33  ;;  %v2863_v48 = vld [vmem:[%s2282_s6] sm:$0xff]  ;;  %v597_v33 = vsel %vm358_vm0, %v595_v36, %v596_v37 }
  0xa3   : > { %v751_v24 = vpop.permute.xlu0 %750 }
  0xa4   : > { %v753_v34 = vadd.f32 %v751_v24, %v745_v25  ;;  %517 = vrot.lane.b32.xlu1 %v516_v11, %s2190_s21  ;;  %v861_v24 = vrot.slane %v857_v0, 1  ;;  %v2883_v0 = vld [vmem:[%s2282_s6 + $0xf8] sm:$0x3] }
  0xa5   : > { %1516 = vrot.lane.b32.xlu0 %v1514_v14, %s2190_s21  ;;  %v1578_v14 = vrot.slane %v1574_v61, 1 }
  0xa6   : > { %v761_v23 = vadd.f32 %v759_v20, %v753_v34  ;;  %v775_v41 = vpop.permute.xlu1 %774  ;;  %v1586_v20 = vmul.f32 %v1585_v9, %v2680_v17  ;;  %v917_v34 = vstv %s2799_s4  ;;  %s2984_s4 = sld [smem:[#allocation2 + $0x4d]] }
  0xa7   : > { %v783_v60 = vpop.permute.xlu0 %782  ;;  %v1579_v49 = vsel %vm358_vm0, %v1577_v10, %v1578_v14  ;;  %v2866_v50 = vmul.f32 %v2863_v48, %v917_v34  ;;  %v2877_v61 = vmul.f32 %v2075_v59, %v917_v34 }
  0xa8   : > { %v765_v53 = vadd.f32 %v764_v3, %v761_v23  ;;  %529 = vrot.lane.b32.xlu1 %v527_v27, %s2190_s21  ;;  %v858_v3 = vmul.f32 %v2338_v29, %v856_v44  ;;  %v1565_v29 = vrot.slane %v1561_v51, 1  ;;  %v872_v27 = vrot.slane %v868_v12, 1 }
  0xa9   : > { %1524 = vrot.lane.b32.xlu0 %v1522_v40, %s2190_s21  ;;  %v605_v40 = vmul.f32 %v2579_v32, %v603_v15  ;;  %v1590_v44 = vrot.slane %v1586_v20, 1  ;;  %v1621_v32 = vmul.f32 %v2744_v63, %v1620_v35  ;;  %v620_v51 = vstv %s2822_s8  ;;  %s3008_s8 = sld [smem:[#allocation2 + $0x53]] }
  0xaa   : > { %v769_v62 = vadd.f32 %v768_v19, %v765_v53  ;;  %v791_v1 = vpop.permute.xlu1 %790  ;;  %v862_v18 = vrot.slane %v858_v3, 1  ;;  %v1566_v31 = vsel %vm358_vm0, %v1564_v8, %v1565_v29  ;;  %v2854_v47 = vsel %vm358_vm0, %v872_v27, %v873_v54 }
  0xab   : > { %v2812_v5 = vpop.permute.xlu0 %825  ;;  %v609_v55 = vrot.slane %v605_v40, 1  ;;  %v1646_v3 = vstv %s2832_s16  ;;  %v621_v6 = vmul.f32 %v2744_v63, %v620_v51  ;;  %v628_v8 = vstv %s2834_s17  ;;  %s3054_s16 = sld [smem:[#allocation2 + $0xa]] }
  0xac   : > { %v777_v11 = vadd.f32 %v775_v41, %v769_v62  ;;  %537 = vrot.lane.b32.xlu1 %v535_v43, %s2190_s21  ;;  %v2846_v43 = vld [vmem:[%s2282_s6 + $0xb8] sm:$0x3]  ;;  %v1647_v14 = vmul.f32 %v2744_v63, %v1646_v3  ;;  %v931_v15 = vmul.f32 %v2907_v22, %v929_v4  ;;  %s3056_s17 = sld [smem:[#allocation2 + $0xd]] }
  0xad   : > { %1532 = vrot.lane.b32.xlu0 %v1530_v58, %s2191_s25  ;;  %v1622_v53 = vmul.f32 %v2846_v43, %v1620_v35  ;;  %v610_v29 = vsel %vm358_vm0, %v608_v52, %v609_v55  ;;  %v1648_v30 = vmul.f32 %v2846_v43, %v1646_v3  ;;  %v629_v35 = vmul.f32 %v2764_v21, %v628_v8 }
  0xae   : > { %v785_v25 = vadd.f32 %v783_v60, %v777_v11  ;;  %v839_v19 = vpop.permute.xlu1 %838  ;;  %v863_v60 = vsel %vm358_vm0, %v861_v24, %v862_v18  ;;  %v924_v18 = vrot.slane %v2877_v61, 2  ;;  %v1651_v39 = vrot.slane %v1647_v14, 1 }
  0xaf   : > { %v852_v26 = vpop.permute.xlu0 %851  ;;  %v1626_v11 = vrot.slane %v1622_v53, 1  ;;  %v1652_v40 = vrot.slane %v1648_v30, 1 }
  0xb0   : > { %v793_v16 = vadd.f32 %v791_v1, %v785_v25  ;;  %561 = vrot.lane.b32.xlu1 %v560_v13, %s2190_s21  ;;  %v1592_v1 = vsel %vm358_vm0, %v1590_v44, %v1591_v45  ;;  %v923_v25 = vrot.slane %v2866_v50, 2  ;;  %v935_v50 = vrot.slane %v931_v15, 2 }
  0xb1   : > { %574 = vrot.lane.b32.xlu0 %v573_v7, %s2190_s21  ;;  %v647_v7 = vstv %s2840_s22  ;;  %s3065_s22 = sld [smem:[#allocation2 + $0x2e]] }
  0xb2   : > { %v804_v23 = vadd.f32 %v2783_v42, %v793_v16  ;;  %v2849_v41 = vpop.permute.xlu1 %886  ;;  %v648_v54 = vmul.f32 %v647_v7, %v2680_v17  ;;  %v660_v16 = vstv %s2859_s23  ;;  %s3070_s23 = sld [smem:[#allocation2 + $0x5c]] }
  0xb3   : > { %v2856_v56 = vpop.permute.xlu0 %899  ;;  %v661_v45 = vmul.f32 %v2699_v28, %v660_v16 }
  0xb4   : > { %v815_v42 = vadd.f32 %v813_v57, %v804_v23  ;;  %1567 = vrot.lane.b32.xlu1 %v1566_v31, %s2190_s21  ;;  %v1633_v57 = vstv %s2827_s14  ;;  %v684_v23 = vstv %s2873_s24  ;;  %v652_v53 = vrot.slane %v648_v54, 1  ;;  %s3043_s14 = sld [smem:[#allocation2 + $0x58]] }
  0xb5   : > { %1580 = vrot.lane.b32.xlu0 %v1579_v49, %s2190_s21  ;;  %v1634_v13 = vmul.f32 %v2764_v21, %v1633_v57  ;;  %v1635_v10 = vmul.f32 %v2883_v0, %v1633_v57  ;;  %v686_v55 = vmul.f32 %v2846_v43, %v684_v23  ;;  %v665_v3 = vrot.slane %v661_v45, 1  ;;  %v2990_v45 = vld [vmem:[%s2282_s6 + $0x10] sm:$0xff]  ;;  %s3080_s24 = sld [smem:[#allocation2 + $0x5d]] }
  0xb6   : > { %v828_v58 = vadd.f32 %v2812_v5, %v815_v42  ;;  %v2879_v62 = vpop.permute.xlu1 %912  ;;  %v1625_v5 = vrot.slane %v1621_v32, 1  ;;  %v1681_v32 = vstv %s2886_s26  ;;  %v925_v43 = vsel %vm922_vm1, %v923_v25, %v924_v18  ;;  %s3085_s26 = sld [smem:[#allocation2 + $0x10]] }
  0xb7   : > { %v2889_v12 = vpop.permute.xlu0 %948  ;;  %v1638_v36 = vrot.slane %v1634_v13, 1  ;;  %v1639_v37 = vrot.slane %v1635_v10, 1  ;;  %v1682_v59 = vmul.f32 %v1681_v32, %v2680_v17  ;;  %v1683_v61 = vmul.f32 %v1681_v32, %v2780_v38 }
  0xb8   : > { %v841_v9 = vadd.f32 %v839_v19, %v828_v58  ;;  %598 = vrot.lane.b32.xlu1 %v597_v33, %s2190_s21  ;;  %v2903_v19 = vld [vmem:[%s2282_s6 + $0x40] sm:$0xff]  ;;  %v1627_v34 = vsel %vm358_vm0, %v1625_v5, %v1626_v11  ;;  %v1653_v58 = vsel %vm358_vm0, %v1651_v39, %v1652_v40  ;;  %v690_v13 = vrot.slane %v686_v55, 1 }
  0xb9   : > { %1593 = vrot.lane.b32.xlu0 %v1592_v1, %s2191_s25  ;;  %v930_v20 = vmul.f32 %v2903_v19, %v929_v4  ;;  %v1640_v57 = vsel %vm358_vm0, %v1638_v36, %v1639_v37  ;;  %v1694_v4 = vstv %s2912_s27  ;;  %v1687_v10 = vrot.slane %v1683_v61, 2  ;;  %s3129_s27 = sld [smem:[#allocation2 + $0x13]] }
  0xba   : > { %v854_v2 = vadd.f32 %v852_v26, %v841_v9  ;;  %v2910_v24 = vpop.permute.xlu1 %961  ;;  %v649_v26 = vmul.f32 %v647_v7, %v2780_v38  ;;  %v697_v9 = vstv %s2920_s28  ;;  %v1707_v7 = vstv %s2925_s29  ;;  %s3131_s28 = sld [smem:[#allocation2 + $0x61]] }
  0xbb   : > { %v2915_v27 = vpop.permute.xlu0 %974  ;;  %v934_v42 = vrot.slane %v930_v20, 2  ;;  %v1695_v14 = vmul.f32 %v2699_v28, %v1694_v4  ;;  %v1696_v30 = vmul.f32 %v2791_v46, %v1694_v4  ;;  %v699_v15 = vmul.f32 %v2883_v0, %v697_v9  ;;  %s3134_s29 = sld [smem:[#allocation2 + $0x16]] }
  0xbc   : > { %v865_v31 = vadd.f32 %v863_v60, %v854_v2  ;;  %611 = vrot.lane.b32.xlu1 %v610_v29, %s2190_s21  ;;  %v662_v60 = vmul.f32 %v2791_v46, %v660_v16  ;;  %v653_v33 = vrot.slane %v649_v26, 1  ;;  %v1686_v29 = vrot.slane %v1682_v59, 2 }
  0xbd   : > { %623 = vrot.lane.b32.xlu0 %v621_v6, %s2190_s21  ;;  %v936_v6 = vsel %vm922_vm1, %v934_v42, %v935_v50  ;;  %v979_v26 = vstv %s2938_s30  ;;  %v1708_v28 = vmul.f32 %v1707_v7, %v2680_v17  ;;  %v703_v40 = vrot.slane %v699_v15, 1  ;;  %v2999_v42 = vld [vmem:[%s2282_s6 + $0x50] sm:$0xff]  ;;  %s3137_s30 = sld [smem:[#allocation2 + $0x62]] }
  0xbe   : > { %v876_v49 = vadd.f32 %v2854_v47, %v865_v31  ;;  %v2930_v44 = vpop.permute.xlu1 %990  ;;  %v685_v47 = vmul.f32 %v2744_v63, %v684_v23  ;;  %v666_v63 = vrot.slane %v662_v60, 1  ;;  %v654_v8 = vsel %vm358_vm0, %v652_v53, %v653_v33 }
  0xbf   : > { %v2935_v51 = vpop.permute.xlu0 %998  ;;  %v1688_v16 = vsel %vm922_vm1, %v1686_v29, %v1687_v10  ;;  %v1699_v31 = vrot.slane %v1695_v14, 2  ;;  %v983_v23 = vstv %s2954_s3  ;;  %v1712_v60 = vrot.slane %v1708_v28, 2  ;;  %s3148_s3 = sld [smem:[#allocation2 + $0x19]] }
  0xc0   : > { %v889_v52 = vadd.f32 %v2849_v41, %v876_v49  ;;  %1628 = vrot.lane.b32.xlu1 %v1627_v34, %s2190_s21  ;;  %v667_v20 = vsel %vm358_vm0, %v665_v3, %v666_v63  ;;  %v1700_v34 = vrot.slane %v1696_v30, 2  ;;  %v984_v50 = vmul.f32 %v2999_v42, %v983_v23  ;;  %v3023_v63 = vld [vmem:[%s2282_s6 + $0x90] sm:$0xff]  ;;  %v3049_v30 = vld [vmem:[%s2282_s6 + $0x58] sm:$0x3] }
  0xc1   : > { %631 = vrot.lane.b32.xlu0 %v629_v35, %s2190_s21 }
  0xc2   : > { %v902_v41 = vadd.f32 %v2856_v56, %v889_v52  ;;  %v2949_v1 = vpop.permute.xlu1 %1006  ;;  %v689_v56 = vrot.slane %v685_v47, 1 }
  0xc3   : > { %v2956_v5 = vpop.permute.xlu0 %1022 }
  0xc4   : > { %v915_v11 = vadd.f32 %v2879_v62, %v902_v41  ;;  %1641 = vrot.lane.b32.xlu1 %v1640_v57, %s2190_s21  ;;  %v698_v62 = vmul.f32 %v2764_v21, %v697_v9  ;;  %v1709_v21 = vmul.f32 %v1707_v7, %v2780_v38  ;;  %v691_v37 = vsel %vm358_vm0, %v689_v56, %v690_v13  ;;  %v3031_v9 = vld [vmem:[%s2282_s6 + $0xd0] sm:$0xff]  ;;  %v3040_v13 = vld [vmem:[%s2282_s6 + $0x18] sm:$0x3] }
  0xc5   : > { %1654 = vrot.lane.b32.xlu0 %v1653_v58, %s2191_s25  ;;  %v980_v38 = vmul.f32 %v2990_v45, %v979_v26  ;;  %v1011_v58 = vstv %s2984_s4  ;;  %v1015_v41 = vstv %s2994_s5  ;;  %v1054_v56 = vstv %s3008_s8  ;;  %s3153_s4 = sld [smem:[#allocation2 + $0x66]] }
  0xc6   : > { %v927_v2 = vadd.f32 %v925_v43, %v915_v11  ;;  %v2966_v25 = vpop.permute.xlu1 %1030  ;;  %v702_v39 = vrot.slane %v698_v62, 1  ;;  %v1713_v32 = vrot.slane %v1709_v21, 2  ;;  %v1012_v4 = vmul.f32 %v3023_v63, %v1011_v58  ;;  %s3161_s5 = sld [smem:[#allocation2 + $0x67]] }
  0xc7   : > { %v2971_v18 = vpop.permute.xlu0 %1038  ;;  %v1043_v43 = vstv %s1945_s7  ;;  %v1016_v11 = vmul.f32 %v3031_v9, %v1015_v41  ;;  %v1055_v14 = vmul.f32 %v2999_v42, %v1054_v56  ;;  %s3172_s7 = sld [smem:[#allocation2 + $0x6b]] }
  0xc8   : > { %v938_v54 = vadd.f32 %v936_v6, %v927_v2  ;;  %655 = vrot.lane.b32.xlu1 %v654_v8, %s2190_s21  ;;  %v704_v33 = vsel %vm358_vm0, %v702_v39, %v703_v40  ;;  %v1714_v55 = vsel %vm922_vm1, %v1712_v60, %v1713_v32  ;;  %v1045_v7 = vmul.f32 %v3040_v13, %v1043_v43  ;;  %v3089_v32 = vld [vmem:[%s2282_s6 + $0xd8] sm:$0x3]  ;;  %s3174_s8 = sld [smem:[#allocation2 + $0x6c]] }
  0xc9   : > { %668 = vrot.lane.b32.xlu0 %v667_v20, %s2190_s21  ;;  %v1059_v28 = vrot.slane %v1055_v14, 1  ;;  %v1115_v39 = vstv %s3043_s14  ;;  %s3201_s14 = sld [smem:[#allocation2 + $0x1c]] }
  0xca   : > { %v951_v35 = vadd.f32 %v2889_v12, %v938_v54  ;;  %v2980_v36 = vpop.permute.xlu1 %1073  ;;  %v1701_v12 = vsel %vm922_vm1, %v1699_v31, %v1700_v34  ;;  %v1049_v15 = vrot.slane %v1045_v7, 1  ;;  %v1116_v60 = vmul.f32 %v3031_v9, %v1115_v39 }
  0xcb   : > { %v2986_v17 = vpop.permute.xlu0 %1086  ;;  %v1165_v7 = vstv %s3070_s23  ;;  %s3231_s23 = sld [smem:[#allocation2 + $0x75]] }
  0xcc   : > { %v964_v49 = vadd.f32 %v2910_v24, %v951_v35  ;;  %1689 = vrot.lane.b32.xlu1 %v1688_v16, %s2190_s21 }
  0xcd   : > { %692 = vrot.lane.b32.xlu0 %v691_v37, %s2190_s21 }
  0xce   : > { %v977_v24 = vadd.f32 %v2915_v27, %v964_v49  ;;  %v3003_v53 = vpop.permute.xlu1 %1099  ;;  %v3077_v49 = vld [vmem:[%s2282_s6 + $0x98] sm:$0x3] }
  0xcf   : > { %v3006_v52 = vpop.permute.xlu0 %1134 }
  0xd0   : > { %v981_v47 = vadd.f32 %v980_v38, %v977_v24  ;;  %1702 = vrot.lane.b32.xlu1 %v1701_v12, %s2190_s21  ;;  %v332_v12 = vstv %s3054_s16  ;;  %v353_v24 = vstv %s3056_s17  ;;  %s3210_s16 = sld [smem:[#allocation2 + $0x1f]] }
  0xd1   : > { %705 = vrot.lane.b32.xlu0 %v704_v33, %s2190_s21  ;;  %s3212_s17 = sld [smem:[#allocation2 + $0x71]] }
  0xd2   : > { %v985_v27 = vadd.f32 %v984_v50, %v981_v47  ;;  %v3013_v57 = vpop.permute.xlu1 %1147  ;;  %v1117_v50 = vmul.f32 %v3089_v32, %v1115_v39 }
  0xd3   : > { %v3016_v59 = vpop.permute.xlu0 %1160 }
  0xd4   : > { %v993_v61 = vadd.f32 %v2930_v44, %v985_v27  ;;  %1715 = vrot.lane.b32.xlu1 %v1714_v55, %s2191_s25  ;;  %s3036_s25 = sld [smem:[#allocation2 + $0x57]] }
  0xd6   : > { %v1001_v3 = vadd.f32 %v2935_v51, %v993_v61  ;;  %v3026_v6 = vpop.permute.xlu1 %1195  ;;  %v1044_v51 = vmul.f32 %v2990_v45, %v1043_v43  ;;  %v3098_v61 = vld [vmem:[%s2282_s6 + $0xc0] sm:$0xff]  ;;  %v354_v43 = vmul.f32 %v2903_v19, %v353_v24 }
  0xd7   : > { %v3028_v8 = vpop.permute.xlu0 %1208  ;;  %v333_v41 = vmul.f32 %v3098_v61, %v332_v12 }
  0xd8   : > { %v1009_v44 = vadd.f32 %v2949_v1, %v1001_v3  ;;  %v1056_v1 = vmul.f32 %v3049_v30, %v1054_v56  ;;  %v1048_v62 = vrot.slane %v1044_v51, 1  ;;  %v1121_v56 = vrot.slane %v1117_v50, 1 }
  0xda   : > { %v1013_v29 = vadd.f32 %v1012_v4, %v1009_v44  ;;  %v3045_v10 = vpop.permute.xlu1 %1221  ;;  %v1060_v16 = vrot.slane %v1056_v1, 1  ;;  %v1104_v21 = vstv %s3036_s25  ;;  %v1050_v35 = vsel %vm358_vm0, %v1048_v62, %v1049_v15  ;;  %s3198_s25 = sld [smem:[#allocation2 + $0x70]] }
  0xdb   : > { %v3052_v2 = vpop.permute.xlu0 %1237  ;;  %v1105_v23 = vmul.f32 %v3023_v63, %v1104_v21  ;;  %v334_v4 = vstv %s3065_s22  ;;  %v1120_v44 = vrot.slane %v1116_v60, 1  ;;  %v1176_v1 = vstv %s3080_s24  ;;  %s3223_s22 = sld [smem:[#allocation2 + $0x22]] }
  0xdc   : > { %v1017_v20 = vadd.f32 %v1016_v11, %v1013_v29  ;;  %v1061_v40 = vsel %vm358_vm0, %v1059_v28, %v1060_v16  ;;  %v355_v11 = vmul.f32 %v2907_v22, %v353_v24  ;;  %v359_v15 = vrot.slane %v354_v43, 1  ;;  %s3236_s24 = sld [smem:[#allocation2 + $0x76]] }
  0xdd   : > { %v1109_v55 = vrot.slane %v1105_v23, 1  ;;  %v391_v28 = vstv %s3085_s26  ;;  %v1122_v22 = vsel %vm358_vm0, %v1120_v44, %v1121_v56  ;;  %v1166_v16 = vmul.f32 %v2990_v45, %v1165_v7  ;;  %s3263_s26 = sld [smem:[#allocation2 + $0x28]] }
  0xde   : > { %v1025_v54 = vadd.f32 %v2956_v5, %v1017_v20  ;;  %v3059_v26 = vpop.permute.xlu1 %1245  ;;  %v392_v23 = vmul.f32 %v3098_v61, %v391_v28 }
  0xdf   : > { %v3061_v31 = vpop.permute.xlu0 %1253  ;;  %v1170_v60 = vrot.slane %v1166_v16, 2  ;;  %v1226_v16 = vstv %s3131_s28  ;;  %s3271_s28 = sld [smem:[#allocation2 + $0x7b]] }
  0xe0   : > { %v1033_v34 = vadd.f32 %v2966_v25, %v1025_v54  ;;  %v1106_v25 = vmul.f32 %v3077_v49, %v1104_v21  ;;  %v360_v54 = vrot.slane %v355_v11, 1  ;;  %v1177_v21 = vmul.f32 %v2999_v42, %v1176_v1 }
  0xe1   : > { %v396_v43 = vrot.slane %v392_v23, 1 }
  0xe2   : > { %v1041_v37 = vadd.f32 %v2971_v18, %v1033_v34  ;;  %v3072_v5 = vpop.permute.xlu1 %1269  ;;  %v1110_v27 = vrot.slane %v1106_v25, 1  ;;  %v361_v12 = vsel %vm358_vm0, %v359_v15, %v360_v54 }
  0xe3   : > { %v3082_v38 = vpop.permute.xlu0 %1277 }
  0xe4   : > { %v1052_v18 = vadd.f32 %v1050_v35, %v1041_v37  ;;  %v1111_v14 = vsel %vm358_vm0, %v1109_v55, %v1110_v27  ;;  %v1178_v37 = vmul.f32 %v3049_v30, %v1176_v1  ;;  %v1181_v55 = vrot.slane %v1177_v21, 2 }
  0xe5   : > { %v448_v21 = vstv %s3134_s29  ;;  %s3276_s29 = sld [smem:[#allocation2 + $0x7f]] }
  0xe6   : > { %v1063_v33 = vadd.f32 %v1061_v40, %v1052_v18  ;;  %v3093_v47 = vpop.permute.xlu1 %1285 }
  0xe7   : > { %v3095_v58 = vpop.permute.xlu0 %1320 }
  0xe8   : > { %v1076_v3 = vadd.f32 %v2980_v36, %v1063_v33  ;;  %v335_v36 = vadd.f32 %v334_v4, %v333_v41  ;;  %v1182_v41 = vrot.slane %v1178_v37, 2 }
  0xea   : > { %v1089_v51 = vadd.f32 %v2986_v17, %v1076_v3  ;;  %v3107_v29 = vpop.permute.xlu1 %1333  ;;  %v1167_v17 = vmul.f32 %v3040_v13, %v1165_v7 }
  0xeb   : > { %v3111_v20 = vpop.permute.xlu0 %1346 }
  0xec   : > { %v1102_v62 = vadd.f32 %v3003_v53, %v1089_v51  ;;  %v3122_v53 = vld [vmem:[%s2282_s6 + $0xc8] sm:$0x3]  ;;  %v1171_v50 = vrot.slane %v1167_v17, 2 }
  0xed   : > { %v393_v25 = vmul.f32 %v3122_v53, %v391_v28 }
  0xee   : > { %v1113_v34 = vadd.f32 %v1111_v14, %v1102_v62  ;;  %v341_v35 = vpop.permute.xlu1 %340  ;;  %v1183_v14 = vsel %vm922_vm1, %v1181_v55, %v1182_v41 }
  0xef   : > { %v343_v39 = vadd.f32 %v341_v35, %v335_v36  ;;  %v349_v40 = vpop.permute.xlu0 %348  ;;  %v397_v11 = vrot.slane %v393_v25, 1  ;;  %v1230_v35 = vstv %s3137_s30  ;;  %s3281_s30 = sld [smem:[#allocation2 + $0x25]] }
  0xf0   : > { %v1124_v18 = vadd.f32 %v1122_v22, %v1113_v34  ;;  %v428_v22 = vstv %s3129_s27  ;;  %s3266_s27 = sld [smem:[#allocation2 + $0x7a]] }
  0xf1   : > { %v351_v24 = vadd.f32 %v349_v40, %v343_v39  ;;  %v398_v36 = vsel %vm358_vm0, %v396_v43, %v397_v11  ;;  %v429_v37 = vmul.f32 %v3031_v9, %v428_v22  ;;  %v3158_v40 = vld [vmem:[%s2282_s6 + $0x20] sm:$0xff]  ;;  %v485_v11 = vstv %s3148_s3  ;;  %s3283_s3 = sld [smem:[#allocation2 + $0x80]] }
  0xf2   : > { %v1137_v33 = vadd.f32 %v3006_v52, %v1124_v18  ;;  %v3127_v27 = vpop.permute.xlu1 %1381  ;;  %v1172_v52 = vsel %vm922_vm1, %v1170_v60, %v1171_v50  ;;  %v1227_v23 = vmul.f32 %v3158_v40, %v1226_v16  ;;  %v450_v60 = vmul.f32 %v3049_v30, %v448_v21 }
  0xf3   : > { %v363_v3 = vadd.f32 %v361_v12, %v351_v24  ;;  %v374_v4 = vpop.permute.xlu0 %373  ;;  %v449_v12 = vmul.f32 %v2999_v42, %v448_v21  ;;  %v1290_v16 = vstv %s3172_s7  ;;  %s3293_s7 = sld [smem:[#allocation2]] }
  0xf4   : > { %v1150_v44 = vadd.f32 %v3013_v57, %v1137_v33  ;;  %v454_v43 = vrot.slane %v450_v60, 1 }
  0xf5   : > { %v376_v56 = vadd.f32 %v374_v4, %v363_v3  ;;  %v453_v4 = vrot.slane %v449_v12, 1 }
  0xf6   : > { %v1163_v51 = vadd.f32 %v3016_v59, %v1150_v44  ;;  %v3140_v7 = vpop.permute.xlu1 %1394 }
  0xf7   : > { %v387_v1 = vpop.permute.xlu0 %386 }
  0xf8   : > { %v1174_v57 = vadd.f32 %v1172_v52, %v1163_v51  ;;  %v389_v62 = vadd.f32 %v387_v1, %v376_v56  ;;  %v1258_v52 = vstv %s3153_s4  ;;  %v1262_v51 = vstv %s3161_s5  ;;  %s3285_s4 = sld [smem:[#allocation2 + $0x84]] }
  0xf9   : > { %v486_v1 = vmul.f32 %v3031_v9, %v485_v11  ;;  %s3290_s5 = sld [smem:[#allocation2 + $0x2b]] }
  0xfa   : > { %v1185_v15 = vadd.f32 %v1183_v14, %v1174_v57  ;;  %v3144_v54 = vpop.permute.xlu1 %1407  ;;  %v400_v28 = vadd.f32 %v398_v36, %v389_v62  ;;  %v487_v36 = vmul.f32 %v3089_v32, %v485_v11  ;;  %v455_v62 = vsel %vm358_vm0, %v453_v4, %v454_v43 }
  0xfb   : > { %v411_v17 = vpop.permute.xlu0 %410 }
  0xfc   : > { %v1198_v59 = vadd.f32 %v3026_v6, %v1185_v15  ;;  %v413_v34 = vadd.f32 %v411_v17, %v400_v28  ;;  %v3189_v28 = vld [vmem:[%s2282_s6 + $0xa0] sm:$0xff] }
  0xfd   : > { %v1259_v22 = vmul.f32 %v3189_v28, %v1258_v52 }
  0xfe   : > { %v1211_v39 = vadd.f32 %v3028_v8, %v1198_v59  ;;  %v424_v25 = vpop.permute.xlu1 %423  ;;  %v3169_v8 = vld [vmem:[%s2282_s6 + $0x60] sm:$0xff] }
  0xff   : > { %v426_v18 = vadd.f32 %v424_v25, %v413_v34  ;;  %v3163_v6 = vpop.permute.xlu0 %1442  ;;  %v1231_v24 = vmul.f32 %v3169_v8, %v1230_v35  ;;  %v1301_v34 = vstv %s3174_s8  ;;  %v3205_v25 = vld [vmem:[%s2282_s6 + $0x28] sm:$0x3]  ;;  %s3310_s8 = sld [smem:[#allocation2 + $0x4]] }
 0x100   : > { %v1224_v50 = vadd.f32 %v3045_v10, %v1211_v39  ;;  %v491_v39 = vrot.slane %v487_v36, 1 }
 0x101   : > { %v430_v33 = vadd.f32 %v429_v37, %v426_v18  ;;  %v1292_v18 = vmul.f32 %v3205_v25, %v1290_v16 }
 0x102   : > { %v1228_v55 = vadd.f32 %v1227_v23, %v1224_v50  ;;  %v3176_v41 = vpop.permute.xlu1 %1455  ;;  %v1291_v23 = vmul.f32 %v3158_v40, %v1290_v16  ;;  %v1302_v50 = vmul.f32 %v3169_v8, %v1301_v34 }
 0x103   : > { %v436_v3 = vpop.permute.xlu0 %435  ;;  %v1296_v11 = vrot.slane %v1292_v18, 1 }
 0x104   : > { %v1232_v10 = vadd.f32 %v1231_v24, %v1228_v55  ;;  %v438_v44 = vadd.f32 %v436_v3, %v430_v33  ;;  %v3216_v24 = vld [vmem:[%s2282_s6 + $0x68] sm:$0x3]  ;;  %v1295_v43 = vrot.slane %v1291_v23, 1 }
 0x105   : > { %v1303_v33 = vmul.f32 %v3216_v24, %v1301_v34 }
 0x106   : > { %v1240_v56 = vadd.f32 %v3052_v2, %v1232_v10  ;;  %v3182_v14 = vpop.permute.xlu1 %1468  ;;  %v3194_v2 = vld [vmem:[%s2282_s6 + $0xe0] sm:$0xff] }
 0x107   : > { %v444_v57 = vpop.permute.xlu0 %443  ;;  %v1263_v59 = vmul.f32 %v3194_v2, %v1262_v51  ;;  %v1307_v51 = vrot.slane %v1303_v33, 1 }
 0x108   : > { %v1248_v15 = vadd.f32 %v3059_v26, %v1240_v56  ;;  %v446_v17 = vadd.f32 %v444_v57, %v438_v44  ;;  %v490_v26 = vrot.slane %v486_v1, 1  ;;  %v1306_v56 = vrot.slane %v1302_v50, 1 }
 0x109   : > { %v1351_v57 = vstv %s3198_s25  ;;  %s3318_s25 = sld [smem:[#allocation2 + $0x1]] }
 0x10a   : > { %v1256_v21 = vadd.f32 %v3061_v31, %v1248_v15  ;;  %v468_v35 = vpop.permute.xlu1 %467  ;;  %v457_v37 = vadd.f32 %v455_v62, %v446_v17  ;;  %v492_v4 = vsel %vm358_vm0, %v490_v26, %v491_v39  ;;  %v522_v15 = vstv %s3201_s14  ;;  %s3339_s14 = sld [smem:[#allocation2 + $0x5]] }
 0x10b   : > { %v3208_v12 = vpop.permute.xlu0 %1484  ;;  %v542_v17 = vstv %s3210_s16  ;;  %v523_v26 = vmul.f32 %v3194_v2, %v522_v15  ;;  %v1412_v15 = vstv %s3231_s23  ;;  %s3347_s16 = sld [smem:[#allocation2 + $0x2]] }
 0x10c   : > { %v1260_v60 = vadd.f32 %v1259_v22, %v1256_v21  ;;  %v470_v31 = vadd.f32 %v468_v35, %v457_v37  ;;  %v1297_v22 = vsel %vm358_vm0, %v1295_v43, %v1296_v11  ;;  %v1308_v21 = vsel %vm358_vm0, %v1306_v56, %v1307_v51  ;;  %v3241_v35 = vld [vmem:[%s2282_s6 + $0xa8] sm:$0x3]  ;;  %s3371_s23 = sld [smem:[#allocation2 + $0x6]] }
 0x10d   : > { %v1353_v37 = vmul.f32 %v3241_v35, %v1351_v57  ;;  %v543_v18 = vmul.f32 %v3169_v8, %v542_v17 }
 0x10e   : > { %v1264_v55 = vadd.f32 %v1263_v59, %v1260_v60  ;;  %v481_v3 = vpop.permute.xlu1 %480  ;;  %v1362_v59 = vstv %s3212_s17  ;;  %s3349_s17 = sld [smem:[#allocation2 + $0x85]] }
 0x10f   : > { %v483_v10 = vadd.f32 %v481_v3, %v470_v31  ;;  %v3220_v44 = vpop.permute.xlu0 %1492  ;;  %v1363_v60 = vmul.f32 %v3194_v2, %v1362_v59  ;;  %v3249_v31 = vld [vmem:[%s2282_s6 + $0xe8] sm:$0x3]  ;;  %v1357_v43 = vrot.slane %v1353_v37, 1  ;;  %v547_v51 = vrot.slane %v543_v18, 1 }
 0x110   : > { %v1272_v52 = vadd.f32 %v3072_v5, %v1264_v55  ;;  %v1364_v50 = vmul.f32 %v3249_v31, %v1362_v59  ;;  %v1414_v37 = vmul.f32 %v3205_v25, %v1412_v15 }
 0x111   : > { %v494_v1 = vadd.f32 %v492_v4, %v483_v10  ;;  %v579_v10 = vstv %s3223_s22  ;;  %s3359_s22 = sld [smem:[#allocation2 + $0x9]] }
 0x112   : > { %v1280_v36 = vadd.f32 %v3082_v38, %v1272_v52  ;;  %v3227_v62 = vpop.permute.xlu1 %1500  ;;  %v1352_v38 = vmul.f32 %v3189_v28, %v1351_v57  ;;  %v1368_v57 = vrot.slane %v1364_v50, 1  ;;  %v580_v59 = vmul.f32 %v3194_v2, %v579_v10 }
 0x113   : > { %v505_v16 = vpop.permute.xlu0 %504 }
 0x114   : > { %v1288_v5 = vadd.f32 %v3093_v47, %v1280_v36  ;;  %v507_v34 = vadd.f32 %v505_v16, %v494_v1  ;;  %v544_v47 = vmul.f32 %v3216_v24, %v542_v17  ;;  %v1356_v4 = vrot.slane %v1352_v38, 1 }
 0x115   : > { %v1367_v36 = vrot.slane %v1363_v60, 1  ;;  %v1413_v38 = vmul.f32 %v3158_v40, %v1412_v15  ;;  %v584_v50 = vrot.slane %v580_v59, 1  ;;  %v636_v15 = vstv %s3263_s26  ;;  %s3396_s26 = sld [smem:[#allocation2 + $0x7]] }
 0x116   : > { %v1299_v39 = vadd.f32 %v1297_v22, %v1288_v5  ;;  %v518_v23 = vpop.permute.xlu1 %517  ;;  %v548_v1 = vrot.slane %v544_v47, 1  ;;  %v1423_v5 = vstv %s3236_s24  ;;  %s3376_s24 = sld [smem:[#allocation2 + $0x3]] }
 0x117   : > { %v520_v33 = vadd.f32 %v518_v23, %v507_v34  ;;  %v3252_v55 = vpop.permute.xlu0 %1516  ;;  %v581_v34 = vmul.f32 %v3249_v31, %v579_v10  ;;  %v1424_v23 = vmul.f32 %v3169_v8, %v1423_v5 }
 0x118   : > { %v1310_v3 = vadd.f32 %v1308_v21, %v1299_v39  ;;  %v1369_v39 = vsel %vm358_vm0, %v1367_v36, %v1368_v57 }
 0x119   : > { %v524_v11 = vadd.f32 %v523_v26, %v520_v33  ;;  %v549_v26 = vsel %vm358_vm0, %v547_v51, %v548_v1  ;;  %v585_v33 = vrot.slane %v581_v34, 1  ;;  %v1477_v34 = vstv %s3271_s28  ;;  %s3442_s28 = sld [smem:[#allocation2 + $0x89]] }
 0x11a   : > { %v1323_v52 = vadd.f32 %v3095_v58, %v1310_v3  ;;  %v530_v56 = vpop.permute.xlu1 %529  ;;  %v1358_v58 = vsel %vm358_vm0, %v1356_v4, %v1357_v43  ;;  %v1417_v43 = vrot.slane %v1413_v38, 2 }
 0x11b   : > { %v532_v22 = vadd.f32 %v530_v56, %v524_v11  ;;  %v3257_v16 = vpop.permute.xlu0 %1524  ;;  %v1418_v11 = vrot.slane %v1414_v37, 2  ;;  %v586_v57 = vsel %vm358_vm0, %v584_v50, %v585_v33  ;;  %v616_v50 = vstv %s3281_s30  ;;  %v2098_v33 = vld [vmem:[%s2282_s6 + $0x80] sm:$0xff]  ;;  %s3473_s30 = sld [smem:[#allocation2 + $0x8e]] }
 0x11c   : > { %v1336_v17 = vadd.f32 %v3107_v29, %v1323_v52  ;;  %v1428_v52 = vrot.slane %v1424_v23, 2 }
 0x11d   : > { %v1419_v59 = vsel %vm922_vm1, %v1417_v43, %v1418_v11 }
 0x11e   : > { %v1349_v21 = vadd.f32 %v3111_v20, %v1336_v17  ;;  %v538_v29 = vpop.permute.xlu1 %537  ;;  %v1425_v20 = vmul.f32 %v3216_v24, %v1423_v5 }
 0x11f   : > { %v540_v18 = vadd.f32 %v538_v29, %v532_v22  ;;  %v3278_v47 = vpop.permute.xlu0 %1532  ;;  %v1473_v22 = vstv %s3266_s27  ;;  %v3306_v29 = vld [vmem:[%s2282_s6 + $0x70] sm:$0xff]  ;;  %s3420_s27 = sld [smem:[#allocation2 + $0x8]] }
 0x120   : > { %v1360_v60 = vadd.f32 %v1358_v58, %v1349_v21  ;;  %v1429_v36 = vrot.slane %v1425_v20, 2  ;;  %v1505_v21 = vstv %s3276_s29  ;;  %v3321_v20 = vmul.f32 %v3306_v29, %v1477_v34  ;;  %s3453_s29 = sld [smem:[#allocation2 + $0x8a]] }
 0x121   : > { %v551_v3 = vadd.f32 %v549_v26, %v540_v18  ;;  %v637_v26 = vmul.f32 %v3306_v29, %v636_v15  ;;  %v3315_v18 = vld [vmem:[%s2282_s6 + $0x30] sm:$0xff]  ;;  %v201_v34 = vmax.f32 %v3023_v63, %v3031_v9 }
 0x122   : > { %v1371_v4 = vadd.f32 %v1369_v39, %v1360_v60  ;;  %v562_v10 = vpop.permute.xlu1 %561  ;;  %v1430_v23 = vsel %vm922_vm1, %v1428_v52, %v1429_v36  ;;  %v1474_v60 = vmul.f32 %v3315_v18, %v1473_v22 }
 0x123   : > { %v564_v56 = vadd.f32 %v562_v10, %v551_v3  ;;  %v575_v51 = vpop.permute.xlu0 %574  ;;  %v217_v10 = vadd.f32 %v2999_v42, %v2990_v45 }
 0x124   : > { %v1384_v1 = vadd.f32 %v3127_v27, %v1371_v4  ;;  %v215_v27 = vadd.f32 %v2903_v19, %v2863_v48  ;;  %v3329_v4 = vld [vmem:[%s2282_s6 + $0xb0] sm:$0xff] }
 0x125   : > { %v577_v17 = vadd.f32 %v575_v51, %v564_v56  ;;  %v3332_v43 = vmul.f32 %v3329_v4, %v1505_v21  ;;  %v1509_v56 = vstv %s3283_s3  ;;  %v641_v51 = vrot.slane %v637_v26, 1  ;;  %s3490_s3 = sld [smem:[#allocation2 + $0x8f]] }
 0x126   : > { %v1397_v5 = vadd.f32 %v3140_v7, %v1384_v1  ;;  %v3298_v58 = vpop.permute.xlu1 %1567  ;;  %v638_v7 = vmul.f32 %v2791_v46, %v636_v15  ;;  %v191_v46 = vmax.f32 %v2863_v48, %v2903_v19  ;;  %v223_v52 = vadd.f32 %v2098_v33, %v215_v27  ;;  %v3343_v15 = vld [vmem:[%s2282_s6 + $0xf0] sm:$0xff] }
 0x127   : > { %v3303_v38 = vpop.permute.xlu0 %1580  ;;  %v588_v37 = vadd.f32 %v586_v57, %v577_v17  ;;  %v1537_v57 = vstv %s3285_s4  ;;  %v617_v22 = vmul.f32 %v3343_v15, %v616_v50  ;;  %v673_v17 = vstv %s3290_s5  ;;  %s2192_s4 = smov 1  }
 0x128   : > { %v1410_v39 = vadd.f32 %v3144_v54, %v1397_v5  ;;  %v199_v54 = vmax.f32 %v2098_v33, %v3098_v61  ;;  %v642_v1 = vrot.slane %v638_v7, 1  ;;  %v250_v5 = vstv %s3293_s7 }
 0x129   : > { %v219_v26 = vadd.f32 %v3169_v8, %v3158_v40  ;;  %v225_v7 = vadd.f32 %v3023_v63, %v217_v10  ;;  %v3367_v50 = vmul.f32 %v3343_v15, %v673_v17  ;;  %v253_v33 = vstv %s3310_s8  ;;  %s2018_s8 = sshll.u32 %s2232_s13, 9 }
 0x12a   : > { %v1421_v3 = vadd.f32 %v1419_v59, %v1410_v39  ;;  %v599_v11 = vpop.permute.xlu1 %598  ;;  %v193_v59 = vmax.f32 %v2990_v45, %v2999_v42  ;;  %v3356_v27 = vmax.f32 %v191_v46, %v199_v54  ;;  %v231_v45 = vadd.f32 %v3098_v61, %v223_v52 }
 0x12b   : > { %v601_v48 = vadd.f32 %v599_v11, %v588_v37  ;;  %v3337_v19 = vpop.permute.xlu0 %1593  ;;  %v264_v54 = vstv %s3318_s25  ;;  %v203_v63 = vmax.f32 %v3189_v28, %v3194_v2  ;;  %v227_v10 = vadd.f32 %v3189_v28, %v219_v26 }
 0x12c   : > { %v1432_v36 = vadd.f32 %v1430_v23, %v1421_v3  ;;  %v643_v23 = vsel %vm358_vm0, %v641_v51, %v642_v1  ;;  %v3380_v3 = vmax.f32 %v193_v59, %v201_v34  ;;  %v251_v11 = vmul.f32 %v250_v5, %v3356_v27 }
 0x12d   : > { %v233_v52 = vadd.f32 %v3031_v9, %v225_v7  ;;  %v257_v59 = vstv %s3339_s14  ;;  %v276_v34 = vstv %s3347_s16  ;;  %v205_v9 = vmax.f32 %v3329_v4, %v3343_v15 }
 0x12e   : > { %v1445_v21 = vadd.f32 %v3163_v6, %v1432_v36  ;;  %v612_v37 = vpop.permute.xlu1 %611  ;;  %v195_v6 = vmax.f32 %v3158_v40, %v3169_v8  ;;  %v221_v40 = vadd.f32 %v3315_v18, %v3306_v29  ;;  %v675_v36 = vmul.f32 %v2883_v0, %v673_v17 }
 0x12f   : > { %v614_v42 = vadd.f32 %v612_v37, %v601_v48  ;;  %v624_v39 = vpop.permute.xlu0 %623  ;;  %v239_v48 = vmul.f32 0.25, %v231_v45  ;;  %v254_v0 = vadd.f32 %v253_v33, %v251_v11  ;;  %v265_v17 = vmul.f32 %v264_v54, %v3380_v3 }
 0x130   : > { %v1458_v46 = vadd.f32 %v3176_v41, %v1445_v21  ;;  %v3401_v28 = vmax.f32 %v195_v6, %v203_v63  ;;  %v229_v37 = vadd.f32 %v3329_v4, %v221_v40  ;;  %v235_v7 = vadd.f32 %v3194_v2, %v227_v10 }
 0x131   : > { %v618_v61 = vadd.f32 %v617_v22, %v614_v42  ;;  %v197_v22 = vmax.f32 %v3315_v18, %v3306_v29  ;;  %v241_v45 = vmul.f32 0.25, %v233_v52  ;;  %v258_v42 = vmul.f32 %v257_v59, %v239_v48 }
 0x132   : > { %v1471_v8 = vadd.f32 %v3182_v14, %v1458_v46  ;;  %v3388_v41 = vpop.permute.xlu1 %1628  ;;  %v3634_v63 = vstv %s3359_s22  ;;  %v678_v11 = vrot.slane %v3367_v50, 1  ;;  %v679_v2 = vrot.slane %v675_v36, 1 }
 0x133   : > { %v626_v51 = vadd.f32 %v624_v39, %v618_v61  ;;  %v632_v1 = vpop.permute.xlu0 %631  ;;  %v1548_v39 = vstv %s3349_s17  ;;  %v3633_v61 = vstv %s3371_s23  ;;  %v288_v40 = vstv %s3376_s24  ;;  %s3583_s17 = scalar_lea.hbm %s3632_s2, %s2018_s8 }
 0x134   : > { %v1475_v14 = vadd.f32 %v1474_v60, %v1471_v8  ;;  %v3425_v8 = vmax.f32 %v197_v22, %v205_v9  ;;  %v267_v10 = vadd.f32 %v265_v17, %v254_v0  ;;  %v237_v52 = vadd.f32 %v3343_v15, %v229_v37  ;;  %v3447_v0 = vld [vmem:[%s2282_s6 + $0x38] sm:$0x3] }
 0x135   : > { %v634_v21 = vadd.f32 %v632_v1, %v626_v51  ;;  %v261_v50 = vadd.f32 %v3634_v63, %v258_v42  ;;  %v271_v1 = vmul.f32 %v3633_v61, %v241_v45  ;;  %v1510_v36 = vmul.f32 %v3343_v15, %v1509_v56 }
 0x136   : > { %v1479_v26 = vadd.f32 %v3321_v20, %v1475_v14  ;;  %v3410_v60 = vpop.permute.xlu1 %1641  ;;  %v1538_v22 = vmul.f32 %v3315_v18, %v1537_v57  ;;  %v1539_v17 = vmul.f32 %v3447_v0, %v1537_v57  ;;  %v1549_v56 = vmul.f32 %v3306_v29, %v1548_v39 }
 0x137   : > { %v3416_v6 = vpop.permute.xlu0 %1654  ;;  %v645_v46 = vadd.f32 %v643_v23, %v634_v21  ;;  %v277_v23 = vmul.f32 %v276_v34, %v3401_v28  ;;  %v680_v37 = vsel %vm358_vm0, %v678_v11, %v679_v2  ;;  %v273_v57 = vadd.f32 %v271_v1, %v261_v50 }
 0x138   : > { %v1487_v20 = vadd.f32 %v3208_v12, %v1479_v26  ;;  %v243_v12 = vmul.f32 0.25, %v235_v7  ;;  %v3457_v26 = vld [vmem:[%s2282_s6 + $0x78] sm:$0x3]  ;;  %v294_v2 = vstv %s3420_s27  ;;  %v1542_v63 = vrot.slane %v1538_v22, 1 }
 0x139   : > { %v1550_v7 = vmul.f32 %v3457_v26, %v1548_v39  ;;  %v279_v42 = vadd.f32 %v277_v23, %v267_v10  ;;  %v1543_v39 = vrot.slane %v1539_v17, 1  ;;  %v1553_v10 = vrot.slane %v1549_v56, 1  ;;  %v2103_v56 = vld [vmem:[%s2282_s6 + $0x8] sm:$0x3] }
 0x13a   : > { %v1495_v48 = vadd.f32 %v3220_v44, %v1487_v20  ;;  %v656_v51 = vpop.permute.xlu1 %655  ;;  %v282_v44 = vstv %s3396_s26  ;;  %v245_v20 = vmul.f32 0.25, %v237_v52 }
 0x13b   : > { %v658_v14 = vadd.f32 %v656_v51, %v645_v46  ;;  %v669_v9 = vpop.permute.xlu0 %668  ;;  %v1554_v23 = vrot.slane %v1550_v7, 1  ;;  %v1544_v22 = vsel %vm358_vm0, %v1542_v63, %v1543_v39  ;;  %v3487_v63 = vld [vmem:[%s2282_s6 + $0xf8] sm:$0x3]  ;;  %v2107_v39 = vld [vmem:[%s2282_s6 + $0x88] sm:$0x3] }
 0x13c   : > { %v1503_v21 = vadd.f32 %v3227_v62, %v1495_v48  ;;  %v289_v62 = vmul.f32 %v288_v40, %v3425_v8  ;;  %v283_v48 = vmul.f32 %v282_v44, %v243_v12  ;;  %v295_v50 = vmul.f32 %v294_v2, %v245_v20 }
 0x13d   : > { %v671_v45 = vadd.f32 %v669_v9, %v658_v14  ;;  %v1555_v17 = vsel %vm358_vm0, %v1553_v10, %v1554_v23  ;;  %v200_v10 = vmax.f32 %v2107_v39, %v3122_v53 }
 0x13e   : > { %v1507_v46 = vadd.f32 %v3332_v43, %v1503_v21  ;;  %v291_v9 = vadd.f32 %v289_v62, %v279_v42  ;;  %v285_v52 = vadd.f32 %v283_v48, %v273_v57  ;;  %v1598_v21 = vstv %s3442_s28 }
 0x13f   : > { %v682_v51 = vadd.f32 %v680_v37, %v671_v45  ;;  %v693_v11 = vpop.permute.xlu0 %692  ;;  %v1609_v37 = vstv %s3453_s29 }
 0x140   : > { %v1511_v61 = vadd.f32 %v1510_v36, %v1507_v46  ;;  %v299_v42 = vmax.f32 %v291_v9, 0.0  ;;  %v297_v62 = vadd.f32 %v295_v50, %v285_v52  ;;  %v3482_v46 = vld [vmem:[%s2282_s6 + $0xb8] sm:$0x3]  ;;  %v1610_v57 = vmul.f32 %v3343_v15, %v1609_v37 }
 0x141   : > { %v695_v14 = vadd.f32 %v693_v11, %v682_v51  ;;  %v1600_v20 = vmul.f32 %v3482_v46, %v1598_v21  ;;  %v1611_v48 = vmul.f32 %v3487_v63, %v1609_v37  ;;  %v194_v37 = vmax.f32 %v3040_v13, %v3049_v30 }
 0x142   : > { %v1519_v43 = vadd.f32 %v3252_v55, %v1511_v61  ;;  %v2104_v55 = vld [vmem:[%s2282_s6 + $0x48] sm:$0x3]  ;;  %v301_v15 = vadd.f32 %v299_v42, %v3356_v27  ;;  %v1614_v50 = vrot.slane %v1610_v57, 1  ;;  %v220_v27 = vadd.f32 %v3216_v24, %v3205_v25  ;;  %s148_s6 = sand.u32 1, %s2179_s10  }
 0x143   : > { %v706_v12 = vpop.permute.xlu0 %705  ;;  %v216_v61 = vadd.f32 %v2104_v55, %v2103_v56  ;;  %v1604_v52 = vrot.slane %v1600_v20, 1  ;;  %v1670_v42 = vstv %s3490_s3  ;;  %s1832_s5 = sshll.u32 %s148_s6, 5 }
 0x144   : > { %v1527_v1 = vadd.f32 %v3257_v16, %v1519_v43  ;;  %v708_v36 = vadd.f32 %v706_v12, %v695_v14  ;;  %v1599_v16 = vmul.f32 %v3329_v4, %v1598_v21  ;;  %v218_v4 = vadd.f32 %v3049_v30, %v3040_v13  ;;  %s150_s7 = scalar_lea.vmem [#allocation5], %s1832_s5 }
 0x145   : > { %v224_v14 = vadd.f32 %v2107_v39, %v216_v61  ;;  %v315_v43 = vmax.f32 %v297_v62, 0.0  ;;  %v1615_v12 = vrot.slane %v1611_v48, 1  ;;  %v1659_v21 = vstv %s3473_s30  ;;  %s1752_s25 = sshll.u32 %s150_s7, 4  ;;  %s3585_s25 = int_to_ptr.vmem [resolvable:$true] %s1752_s25 }
 0x146   : > { %v1535_v7 = vadd.f32 %v3278_v47, %v1527_v1  ;;  %v709_v45 = vmax.f32 %v708_v36, 0.0  ;;  %v192_v47 = vmax.f32 %v2103_v56, %v2104_v55  ;;  %v1603_v9 = vrot.slane %v1599_v16, 1  ;;  %s2123_s13 = scalar_lea.vmem %s3585_s25, 512 }
 0x147   : > { %v202_v36 = vmax.f32 %v3077_v49, %v3089_v32  ;;  %v232_v56 = vadd.f32 %v3122_v53, %v224_v14  ;;  %v317_v55 = vadd.f32 %v315_v43, %v3380_v3  ;;  %v1616_v30 = vsel %vm358_vm0, %v1614_v50, %v1615_v12  ;;  %p2124_p9 = scmp.ne.s32.totalorder %s3585_s25, %s2123_s13 }
 0x148   : > { %v1546_v51 = vadd.f32 %v1544_v22, %v1535_v7  ;;  %v711_v11 = vrot.slane %v709_v45, 7  ;;  %v3504_v22 = vmax.f32 %v192_v47, %v200_v10  ;;  %v1605_v13 = vsel %vm358_vm0, %v1603_v9, %v1604_v52 }
 0x149   : > { %v1660_v61 = vmul.f32 %v3315_v18, %v1659_v21  ;;  %v1661_v45 = vmul.f32 %v3447_v0, %v1659_v21  ;;  %v210_v53 = vmax.f32 %v194_v37, %v202_v36  ;;  %v222_v62 = vadd.f32 %v3457_v26, %v3447_v0  ;;  %p2125_p10 = pnand %p2124_p9, %p2249_p5 }
 0x14a   : > { %v1557_v23 = vadd.f32 %v1555_v17, %v1546_v51  ;;  %712 = vrot.lane.b32.xlu0 %v711_v11, %s2192_s4  ;;  %v252_v3 = vmul.f32 %v250_v5, %v3504_v22  ;;  %v240_v20 = vmul.f32 0.25, %v232_v56  ;;  %v1672_v57 = vmul.f32 %v3457_v26, %v1670_v42 }
 0x14b   : > { %v1665_v48 = vrot.slane %v1661_v45, 2  ;;  %v198_v51 = vmax.f32 %v3447_v0, %v3457_v26  ;;  %v206_v11 = vmax.f32 %v3482_v46, %v3487_v63  ;;  %v266_v39 = vmul.f32 %v264_v54, %v210_v53  ;;  %p2126_p12 = pneg %p2125_p10 }
 0x14c   : > { %v1570_v1 = vadd.f32 %v3298_v58, %v1557_v23  ;;  %v226_v58 = vadd.f32 %v3077_v49, %v218_v4  ;;  %v204_v49 = vmax.f32 %v3241_v35, %v3249_v31  ;;  %v255_v47 = vadd.f32 %v253_v33, %v252_v3 }
 0x14d   : > { %v259_v0 = vmul.f32 %v257_v59, %v240_v20  ;;  %v214_v43 = vmax.f32 %v198_v51, %v206_v11  ;;  %v3638_v52 = vstv %s3359_s22  ;;  %v3639_v59 = vstv %s3371_s23  ;;  %s2193_s22 = smov [#allocation5]  }
 0x14e   : > { %v1583_v17 = vadd.f32 %v3303_v38, %v1570_v1  ;;  %305 = vrot.lane.b32.xlu0 %v301_v15, %s2190_s21  ;;  %v196_v38 = vmax.f32 %v3205_v25, %v3216_v24  ;;  %v234_v16 = vadd.f32 %v3089_v32, %v226_v58  ;;  %v1664_v25 = vrot.slane %v1660_v61, 2  ;;  %s2127_s23 = sshll.u32 %s2193_s22, 4  ;;  %s2128_s23 = int_to_ptr.vmem [resolvable:$false] %s2127_s23 }
 0x14f   : > { %v1671_v24 = vmul.f32 %v3306_v29, %v1670_v42  ;;  %v230_v29 = vadd.f32 %v3482_v46, %v222_v62  ;;  %v1676_v15 = vrot.slane %v1672_v57, 2  ;;  %v268_v54 = vadd.f32 %v266_v39, %v255_v47  ;;  %s2129_s24 = scalar_lea.vmem %s2128_s23, 1024  ;;  %p2130_p13 = scmp.lt.s32.totalorder %s3585_s25, %s2128_s23 }
 0x150   : > { %v1596_v7 = vadd.f32 %v3337_v19, %v1583_v17  ;;  %v228_v19 = vadd.f32 %v3241_v35, %v220_v27  ;;  %v1690_v35 = vpop.permute.xlu1 %1689  ;;  %v212_v32 = vmax.f32 %v196_v38, %v204_v49  ;;  %v242_v23 = vmul.f32 0.25, %v234_v16  ;;  %p2131_p0 = scmp.lt.s32.totalorder %s2129_s24, %s2123_s13 }
 0x151   : > { %v1675_v26 = vrot.slane %v1671_v24, 2  ;;  %v1666_v33 = vsel %vm922_vm1, %v1664_v25, %v1665_v48  ;;  %v238_v9 = vadd.f32 %v3487_v63, %v230_v29  ;;  %v262_v50 = vadd.f32 %v3638_v52, %v259_v0 }
 0x152   : > { %v1607_v18 = vadd.f32 %v1605_v13, %v1596_v7  ;;  %321 = vrot.lane.b32.xlu0 %v317_v55, %s2190_s21  ;;  %v236_v4 = vadd.f32 %v3249_v31, %v228_v19  ;;  %v278_v46 = vmul.f32 %v276_v34, %v212_v32  ;;  %v272_v12 = vmul.f32 %v3639_v59, %v242_v23  ;;  %p2132_p1 = por %p2131_p0, %p2130_p13 }
 0x153   : > { %v1677_v1 = vsel %vm922_vm1, %v1675_v26, %v1676_v15  ;;  %v290_v36 = vmul.f32 %v288_v40, %v214_v43  ;;  %v246_v17 = vmul.f32 0.25, %v238_v9 }
 0x154   : > { %v1618_v5 = vadd.f32 %v1616_v30, %v1607_v18  ;;  %v244_v31 = vmul.f32 0.25, %v236_v4  ;;  %v280_v37 = vadd.f32 %v278_v46, %v268_v54  ;;  %v274_v34 = vadd.f32 %v272_v12, %v262_v50  ;;  %p2133_p2 = pnand %p2132_p1, %p2126_p12 }
 0x155   : > { %v296_v30 = vmul.f32 %v294_v2, %v246_v17 }
 0x156   : > { %v1631_v10 = vadd.f32 %v3388_v41, %v1618_v5  ;;  %v284_v63 = vmul.f32 %v282_v44, %v244_v31  ;;  %v292_v55 = vadd.f32 %v290_v36, %v280_v37 }
 0x158   : > { %v1644_v14 = vadd.f32 %v3410_v60, %v1631_v10  ;;  %v1703_v60 = vpop.permute.xlu1 %1702  ;;  %v286_v13 = vadd.f32 %v284_v63, %v274_v34  ;;  %v300_v45 = vmax.f32 %v292_v55, 0.0 }
 0x15a   : > { %v1657_v41 = vadd.f32 %v3416_v6, %v1644_v14  ;;  %v298_v42 = vadd.f32 %v296_v30, %v286_v13  ;;  %v302_v40 = vadd.f32 %v300_v45, %v3504_v22 }
 0x15c   : > { %v1668_v21 = vadd.f32 %v1666_v33, %v1657_v41  ;;  %v1716_v6 = vpop.permute.xlu1 %1715  ;;  %v316_v49 = vmax.f32 %v298_v42, 0.0 }
 0x15e   : > { %v1679_v27 = vadd.f32 %v1677_v1, %v1668_v21  ;;  %v318_v44 = vadd.f32 %v316_v49, %v210_v53 }
 0x160   : > { %v1692_v58 = vadd.f32 %v1690_v35, %v1679_v27 }
 0x162   : > { %v1705_v56 = vadd.f32 %v1703_v60, %v1692_v58 }
 0x164   : > { %v1718_v61 = vadd.f32 %v1716_v6, %v1705_v56 }
 0x166   : > { %v1719_v7 = vmax.f32 %v1718_v61, 0.0 }
 0x168   : > { %v1721_v38 = vrot.slane %v1719_v7, 7 }
 0x16a   : > { %1722 = vrot.lane.b32.xlu1 %v1721_v38, %s2192_s4 }
 0x16e   : > { %307 = vrot.lane.b32.xlu1 %v302_v40, %s2190_s21 }
 0x172   : > { %323 = vrot.lane.b32.xlu1 %v318_v44, %s2190_s21 }
 0x1bc   : > { %v713_v3 = vpop.permute.xlu0 %712 }
 0x1bd   : > { %v715_v2 = vadd.f32 %v713_v3, %v3401_v28  ;;  %v716_v62 = vadd.f32 %v713_v3, %v212_v32 }
 0x1bf   : > { %721 = vrot.lane.b32.xlu1 %v716_v62, %s2190_s21  ;;  %719 = vrot.lane.b32.xlu0 %v715_v2, %s2190_s21 }
 0x1c0   : > { %v306_v18 = vpop.permute.xlu0 %305 }
 0x1c1   : > { %312 = vst.msk [vmem:[%s150_s7 - $0x1] sm:$0xfe] %vm311_vm2, %v306_v18 }
 0x1c4   : > { %v322_v22 = vpop.permute.xlu0 %321 }
 0x1c5   : > { %1868 = vst.msk [vmem:[%s150_s7 + $0x7] sm:$0xfe] %vm311_vm2, %v322_v22 }
 0x1dc   : > { %v1723_v53 = vpop.permute.xlu1 %1722 }
 0x1dd   : > { %v1725_v19 = vadd.f32 %v1723_v53, %v3425_v8  ;;  %v1726_v28 = vadd.f32 %v1723_v53, %v214_v43 }
 0x1df   : > { %1731 = vrot.lane.b32.xlu1 %v1726_v28, %s2190_s21  ;;  %1729 = vrot.lane.b32.xlu0 %v1725_v19, %s2190_s21  ;;  %s3590_s21 = scalar_lea.sflag [#allocation3], %s148_s6 }
 0x1e0   : > { %v308_v16 = vpop.permute.xlu1 %307 }
 0x1e1   : > { %314 = vst.msk [vmem:[%s150_s7 + $0x7] sm:$0x1] %vm313_vm3, %v308_v16 }
 0x1e4   : > { %v324_v20 = vpop.permute.xlu1 %323 }
 0x1e5   : > { %1869 = vst.msk [vmem:[%s150_s7 + $0xf] sm:$0x1] %vm313_vm3, %v324_v20 }
 0x231   : > { %v722_v25 = vpop.permute.xlu1 %721  ;;  %v720_v24 = vpop.permute.xlu0 %719 }
 0x232   : > { %1908 = vst.msk [vmem:[%s150_s7 + $0x17] sm:$0x1] %vm313_vm3, %v722_v25 }
 0x233   : > { %1907 = vst.msk [vmem:[%s150_s7 + $0xf] sm:$0xfe] %vm311_vm2, %v720_v24 }
 0x251   : > { %v1732_v8 = vpop.permute.xlu1 %1731  ;;  %v1730_v57 = vpop.permute.xlu0 %1729 }
 0x252   : > { %2011 = vst.msk [vmem:[%s150_s7 + $0x1f] sm:$0x1] %vm313_vm3, %v1732_v8 }
 0x253   : > { %2010 = vst.msk [vmem:[%s150_s7 + $0x17] sm:$0xfe] %vm311_vm2, %v1730_v57 }
 0x254   : > { %2136 = shalt.err (!%p2133_p2)
}
 0x255   : > { %s2137_s26 = scalar_lea.hbm %s3583_s17, 512  ;;  %s2141_s29 = scalar_lea.hbm %s3632_s2, 1024 }
 0x256   : > { %p2138_p3 = scmp.ne.s32.totalorder %s3583_s17, %s2137_s26  ;;  %p2142_p8 = scmp.lt.s32.totalorder %s3583_s17, %s3632_s2 }
 0x257   : > { %p2143_p11 = scmp.lt.s32.totalorder %s2141_s29, %s2137_s26 }
 0x258   : > { %p2139_p4 = pnand %p2138_p3, %p2249_p5 }
 0x259   : > { %p2144_p9 = por %p2143_p11, %p2142_p8 }
 0x25a   : > { %p2140_p7 = pneg %p2139_p4 }
 0x25c   : > { %p2145_p10 = pnand %p2144_p9, %p2140_p7 }
 0x25e   : > { %2148 = shalt.err (!%p2145_p10)
}
 0x25f   : > { %s2194_s4 = smov 128   ;;  %s2195_s6 = smov 8  }
 0x260   : > { %2023 = dma.vmem_to_hbm [thread:$0]  (%p2249_p5), %s3585_s25, 512, %s3583_s17, %s3590_s21, %s2194_s4, %s2194_s4, %s2195_s6  }
 0x261 PF: > { %p2035_p12 = scmp.ge.s32.totalorder %s2187_s12, 2  ;;  %s1767_s5 = sand.u32 1, %s2175_s9  }
 0x262   : > { %s1768_s7 = scalar_lea.sflag [#allocation3], %s1767_s5 }
 0x263   : > { %p2030_p13 = pnand %p2035_p12, %p2253_p6 }
 0x265   : > { %p2031_p0 = pneg %p2030_p13 }
 0x267   : > { %2170 = dma.done.wait (%p2031_p0), %s1768_s7, 512  }
 0x268   : > { %2172 = vsyncadd (%p2031_p0), %s1768_s7, 4294966784  ;;  %p13_p1 = scmp.ge.s32.totalorder %s2236_s15, 4   ;;  %s3640_s9 = smov %s2179_s10 }
 0x269   : > { %s3641_s10 = smov %s2183_s11  ;;  %s3642_s11 = smov %s2247_s18 }
 0x26a   : > { %s3643_s12 = smov %s2236_s15  ;;  %15 = sbr.rel (!%p13_p1) target bundleno = 4 (0x4), region = 74 }
 0x26f   :  { %1773 = vsyncpa [#allocation3], 1 }
 0x270   :  { %1775 = vsyncpa [#allocation3 + $0x1], 1 }
 0x271   :  { %1776 = vsyncpa [#allocation4], 1 }
 0x272   :  { %1778 = vsyncpa [#allocation4 + $0x1], 1 }

</bundles_post_ra>
